<compile_context>
chip_gen: v7x
topology: tpu7x:2x2x1
jax: 0.10.0
libtpu: 0.0.40
codegen_flags: <defaults>
</compile_context>

<pallas_src>
import jax
import jax.numpy as jnp
from jax.experimental import pallas as pl
from jax.experimental.pallas import tpu as pltpu

BN_EPS = 1e-5
LANE = 128


def _round_up(x, m):
    return (x + m - 1) // m * m


# --------------------------------------------------------------------------
# Kernel: one batch tile through the whole (BN-folded) MLP.
# --------------------------------------------------------------------------
def mlp_kernel(x_ref,
               w1_ref, b1_ref,
               w2_ref, b2_ref,
               w3_ref, b3_ref,
               w4_ref, b4_ref,
               o_ref):
    # Blocks 1..3: (Linear + folded eval-BN) -> ReLU. Dropout is identity here.
    h = x_ref[...].astype(jnp.bfloat16)                                # [TM, D] (cast in-kernel)
    z = jnp.dot(h, w1_ref[...], preferred_element_type=jnp.float32) + b1_ref[...]
    h = jnp.maximum(z, 0.0).astype(jnp.bfloat16)                       # [TM, 1024]
    z = jnp.dot(h, w2_ref[...], preferred_element_type=jnp.float32) + b2_ref[...]
    h = jnp.maximum(z, 0.0).astype(jnp.bfloat16)                       # [TM, 512]
    z = jnp.dot(h, w3_ref[...], preferred_element_type=jnp.float32) + b3_ref[...]
    h = jnp.maximum(z, 0.0).astype(jnp.bfloat16)                       # [TM, 256]
    # Output head, padded to a lane-dense 128-wide tile (unmasked vst).
    out = jnp.dot(h, w4_ref[...], preferred_element_type=jnp.float32) + b4_ref[...]
    o_ref[...] = out.astype(o_ref.dtype)


# --------------------------------------------------------------------------
# Parameter helpers
# --------------------------------------------------------------------------
def init_params(key, input_dim, output_dim):
    dims = [input_dim, 1024, 512, 256, output_dim]
    params = {}
    keys = jax.random.split(key, 32)
    ki = iter(range(32))
    for layer in range(4):
        d_in, d_out = dims[layer], dims[layer + 1]
        params[f"w{layer+1}"] = (
            jax.random.normal(keys[next(ki)], (d_in, d_out), jnp.float32) * 0.02)
        params[f"b{layer+1}"] = (
            jax.random.normal(keys[next(ki)], (1, d_out), jnp.float32) * 0.01)
        if layer < 3:  # BatchNorm1d params (eval mode)
            params[f"g{layer+1}"] = 1.0 + 0.1 * jax.random.normal(
                keys[next(ki)], (1, d_out), jnp.float32)
            params[f"be{layer+1}"] = 0.1 * jax.random.normal(
                keys[next(ki)], (1, d_out), jnp.float32)
            params[f"m{layer+1}"] = 0.1 * jax.random.normal(
                keys[next(ki)], (1, d_out), jnp.float32)
            params[f"v{layer+1}"] = 0.5 + jnp.abs(
                jax.random.normal(keys[next(ki)], (1, d_out), jnp.float32))
    return params


def _fold_bn(w, b, g, beta, mean, var):
    """Fold eval-mode BatchNorm1d into the preceding Linear (f32 math)."""
    scale = g * jax.lax.rsqrt(var + BN_EPS)      # (1, d_out)
    return w * scale, (b - mean) * scale + beta


def prepare_params(params):
    """One-time prep, hoisted out of the per-call path:
    BN fold (f32), pad output head to 128 lanes, cast weights to bf16."""
    w1, b1 = _fold_bn(params["w1"], params["b1"], params["g1"],
                      params["be1"], params["m1"], params["v1"])
    w2, b2 = _fold_bn(params["w2"], params["b2"], params["g2"],
                      params["be2"], params["m2"], params["v2"])
    w3, b3 = _fold_bn(params["w3"], params["b3"], params["g3"],
                      params["be3"], params["m3"], params["v3"])
    w4, b4 = params["w4"], params["b4"]

    out_dim = w4.shape[1]
    o_pad = _round_up(out_dim, LANE)
    w4 = jnp.pad(w4, ((0, 0), (0, o_pad - out_dim)))
    b4 = jnp.pad(b4, ((0, 0), (0, o_pad - out_dim)))

    prep = {"out_dim": out_dim}
    for i, (w, b) in enumerate(((w1, b1), (w2, b2), (w3, b3), (w4, b4)), start=1):
        prep[f"w{i}"] = w.astype(jnp.bfloat16)   # MXU operands
        prep[f"b{i}"] = b.astype(jnp.float32)    # biases stay in f32 accumulate path
    return prep


# --------------------------------------------------------------------------
# pallas_call builder
# --------------------------------------------------------------------------
def _build_and_call(x_in, weights, biases, tm_eff, o_pad, single_buffer_weights):
    n_pad, d_in = x_in.shape

    if single_buffer_weights:
        # Constant block index -> VMEM resident; single-buffer to halve its VMEM.
        def const_spec(a):
            return pl.BlockSpec(a.shape, lambda i: (0, 0),
                                pipeline_mode=pl.Buffered(1))
    else:
        def const_spec(a):
            return pl.BlockSpec(a.shape, lambda i: (0, 0))

    in_specs = [pl.BlockSpec((tm_eff, d_in), lambda i: (i, 0))]
    args = [x_in]
    for w, b in zip(weights, biases):
        in_specs.append(const_spec(w))
        in_specs.append(const_spec(b))
        args.append(w)
        args.append(b)

    out_spec = pl.BlockSpec((tm_eff, o_pad), lambda i: (i, 0))

    return pl.pallas_call(
        mlp_kernel,
        out_shape=jax.ShapeDtypeStruct((n_pad, o_pad), jnp.float32),
        grid_spec=pltpu.PrefetchScalarGridSpec(
            num_scalar_prefetch=0,
            grid=(n_pad // tm_eff,),
            in_specs=in_specs,
            out_specs=out_spec,
        ),
        compiler_params=pltpu.CompilerParams(
            dimension_semantics=("parallel",),   # megacore sharding on v7x
            vmem_limit_bytes=48 << 20,           # headroom for TM=1024 tiles
        ),
    )(*args)


# --------------------------------------------------------------------------
# Wrapper
# --------------------------------------------------------------------------
def multilabel_mlp_forward(x, prepared, tm=1024):
    n, d_in = x.shape
    out_dim = prepared["out_dim"]
    weights = [prepared[f"w{i}"] for i in range(1, 5)]
    biases = [prepared[f"b{i}"] for i in range(1, 5)]
    o_pad = weights[3].shape[1]
    assert weights[0].shape[0] == d_in, "prepared params do not match input_dim"

    # Batch tile: multiple of 16 (bf16 sublane packing), bounded by tm and n.
    tm_eff = _round_up(max(1, min(tm, n)), 16)
    n_pad = _round_up(n, tm_eff)
    # If the whole batch fits one large tile, split into two balanced steps so
    # both TensorCores get work on v7x (cheap no-op elsewhere).
    if n_pad // tm_eff == 1 and tm_eff >= 512 and tm_eff % 32 == 0:
        tm_eff //= 2
        n_pad = _round_up(n, tm_eff)

    # Only pad batch rows when the tile doesn't divide N; no feature pad, no
    # wrapper-side bf16 cast (done in-kernel) -> no extra HBM roundtrip of x.
    x_in = x if n_pad == n else jnp.pad(x, ((0, n_pad - n), (0, 0)))

    try:
        out = _build_and_call(x_in, weights, biases, tm_eff, o_pad, True)
    except Exception:
        # Installed JAX rejected pipeline_mode=pl.Buffered(1); use default
        # double-buffered specs (correctness identical, slightly more VMEM).
        out = _build_and_call(x_in, weights, biases, tm_eff, o_pad, False)

    return out[:n, :out_dim]


# --------------------------------------------------------------------------
# Pure-JAX reference (f32, original module math)
# --------------------------------------------------------------------------
def reference_forward(x, params):
    h = x.astype(jnp.float32)
    for layer in range(1, 4):
        h = h @ params[f"w{layer}"] + params[f"b{layer}"]
        scale = params[f"g{layer}"] * jax.lax.rsqrt(params[f"v{layer}"] + BN_EPS)
        h = (h - params[f"m{layer}"]) * scale + params[f"be{layer}"]
        h = jnp.maximum(h, 0.0)
    return h @ params["w4"] + params["b4"]


if __name__ == "__main__":
    key = jax.random.PRNGKey(0)
    k_x, k_p = jax.random.split(key)

    batch = 32
    input_dim = 32      # number of tabular feature columns (synthetic)
    output_dim = 6      # number of cancer_type_detailed classes kept (synthetic)

    x = jax.random.normal(k_x, (batch, input_dim), jnp.float32)
    params = init_params(k_p, input_dim, output_dim)

    prepared = prepare_params(params)            # one-time: BN fold + bf16 weights
    out = multilabel_mlp_forward(x, prepared)    # default tm=1024 -> one tile here
    out = jax.block_until_ready(out)

    ref = reference_forward(x, params)
    assert out.shape == (batch, output_dim)
    assert jnp.allclose(out, ref, atol=2e-2, rtol=2e-2), "mismatch vs. JAX reference"

    print("KERNEL_OK")
</pallas_src>

<mosaic_0001>
module attributes {stable_mosaic.version = 11 : i64} {
  func.func @mlp_kernel(%arg0: i32, %arg1: memref<32x32xf32, #tpu.memory_space<vmem>>, %arg2: memref<32x1024xbf16, #tpu.memory_space<vmem>>, %arg3: memref<1x1024xf32, #tpu.memory_space<vmem>>, %arg4: memref<1024x512xbf16, #tpu.memory_space<vmem>>, %arg5: memref<1x512xf32, #tpu.memory_space<vmem>>, %arg6: memref<512x256xbf16, #tpu.memory_space<vmem>>, %arg7: memref<1x256xf32, #tpu.memory_space<vmem>>, %arg8: memref<256x128xbf16, #tpu.memory_space<vmem>>, %arg9: memref<1x128xf32, #tpu.memory_space<vmem>>, %arg10: memref<32x128xf32, #tpu.memory_space<vmem>>) attributes {dimension_semantics = [#tpu.dimension_semantics<parallel>], iteration_bounds = array<i64: 1>, scalar_prefetch = 0 : i64, scratch_operands = 0 : i64, tpu.core_type = #tpu.core_type<tc>, window_params = [{transform_indices = @transform_0, window_bounds = array<i64: 32, 32>}, {pipeline_mode = #tpu.pipeline_mode<synchronous>, transform_indices = @transform_1, window_bounds = array<i64: 32, 1024>}, {pipeline_mode = #tpu.pipeline_mode<synchronous>, transform_indices = @transform_2, window_bounds = array<i64: 1, 1024>}, {pipeline_mode = #tpu.pipeline_mode<synchronous>, transform_indices = @transform_3, window_bounds = array<i64: 1024, 512>}, {pipeline_mode = #tpu.pipeline_mode<synchronous>, transform_indices = @transform_4, window_bounds = array<i64: 1, 512>}, {pipeline_mode = #tpu.pipeline_mode<synchronous>, transform_indices = @transform_5, window_bounds = array<i64: 512, 256>}, {pipeline_mode = #tpu.pipeline_mode<synchronous>, transform_indices = @transform_6, window_bounds = array<i64: 1, 256>}, {pipeline_mode = #tpu.pipeline_mode<synchronous>, transform_indices = @transform_7, window_bounds = array<i64: 256, 128>}, {pipeline_mode = #tpu.pipeline_mode<synchronous>, transform_indices = @transform_8, window_bounds = array<i64: 1, 128>}, {transform_indices = @transform_9, window_bounds = array<i64: 32, 128>}]} {
    %c0 = arith.constant 0 : index
    %c0_0 = arith.constant 0 : index
    %0 = vector.load %arg1[%c0, %c0_0] : memref<32x32xf32, #tpu.memory_space<vmem>>, vector<32x32xf32>
    %1 = arith.truncf %0 : vector<32x32xf32> to vector<32x32xbf16>
    %c0_1 = arith.constant 0 : index
    %c0_2 = arith.constant 0 : index
    %2 = vector.load %arg2[%c0_1, %c0_2] : memref<32x1024xbf16, #tpu.memory_space<vmem>>, vector<32x1024xbf16>
    %cst = arith.constant dense<0.000000e+00> : vector<32x1024xf32>
    %3 = tpu.matmul %1, %2, %cst {dimension_numbers = #tpu.dot_dimension_numbers<[1], [0], [0], [1], [0, 0, 1, 1], [], []>} : vector<32x32xbf16>, vector<32x1024xbf16>, vector<32x1024xf32> -> vector<32x1024xf32>
    %c0_3 = arith.constant 0 : index
    %c0_4 = arith.constant 0 : index
    %4 = vector.load %arg3[%c0_3, %c0_4] : memref<1x1024xf32, #tpu.memory_space<vmem>>, vector<1x1024xf32>
    %5 = vector.broadcast %4 : vector<1x1024xf32> to vector<32x1024xf32>
    %6 = arith.addf %3, %5 : vector<32x1024xf32>
    %cst_5 = arith.constant 0.000000e+00 : f32
    %7 = vector.broadcast %cst_5 : f32 to vector<32x1024xf32>
    %8 = arith.maximumf %6, %7 : vector<32x1024xf32>
    %9 = arith.truncf %8 : vector<32x1024xf32> to vector<32x1024xbf16>
    %c0_6 = arith.constant 0 : index
    %c0_7 = arith.constant 0 : index
    %10 = vector.load %arg4[%c0_6, %c0_7] : memref<1024x512xbf16, #tpu.memory_space<vmem>>, vector<1024x512xbf16>
    %cst_8 = arith.constant dense<0.000000e+00> : vector<32x512xf32>
    %11 = tpu.matmul %9, %10, %cst_8 {dimension_numbers = #tpu.dot_dimension_numbers<[1], [0], [0], [1], [0, 0, 1, 1], [], []>} : vector<32x1024xbf16>, vector<1024x512xbf16>, vector<32x512xf32> -> vector<32x512xf32>
    %c0_9 = arith.constant 0 : index
    %c0_10 = arith.constant 0 : index
    %12 = vector.load %arg5[%c0_9, %c0_10] : memref<1x512xf32, #tpu.memory_space<vmem>>, vector<1x512xf32>
    %13 = vector.broadcast %12 : vector<1x512xf32> to vector<32x512xf32>
    %14 = arith.addf %11, %13 : vector<32x512xf32>
    %cst_11 = arith.constant 0.000000e+00 : f32
    %15 = vector.broadcast %cst_11 : f32 to vector<32x512xf32>
    %16 = arith.maximumf %14, %15 : vector<32x512xf32>
    %17 = arith.truncf %16 : vector<32x512xf32> to vector<32x512xbf16>
    %c0_12 = arith.constant 0 : index
    %c0_13 = arith.constant 0 : index
    %18 = vector.load %arg6[%c0_12, %c0_13] : memref<512x256xbf16, #tpu.memory_space<vmem>>, vector<512x256xbf16>
    %cst_14 = arith.constant dense<0.000000e+00> : vector<32x256xf32>
    %19 = tpu.matmul %17, %18, %cst_14 {dimension_numbers = #tpu.dot_dimension_numbers<[1], [0], [0], [1], [0, 0, 1, 1], [], []>} : vector<32x512xbf16>, vector<512x256xbf16>, vector<32x256xf32> -> vector<32x256xf32>
    %c0_15 = arith.constant 0 : index
    %c0_16 = arith.constant 0 : index
    %20 = vector.load %arg7[%c0_15, %c0_16] : memref<1x256xf32, #tpu.memory_space<vmem>>, vector<1x256xf32>
    %21 = vector.broadcast %20 : vector<1x256xf32> to vector<32x256xf32>
    %22 = arith.addf %19, %21 : vector<32x256xf32>
    %cst_17 = arith.constant 0.000000e+00 : f32
    %23 = vector.broadcast %cst_17 : f32 to vector<32x256xf32>
    %24 = arith.maximumf %22, %23 : vector<32x256xf32>
    %25 = arith.truncf %24 : vector<32x256xf32> to vector<32x256xbf16>
    %c0_18 = arith.constant 0 : index
    %c0_19 = arith.constant 0 : index
    %26 = vector.load %arg8[%c0_18, %c0_19] : memref<256x128xbf16, #tpu.memory_space<vmem>>, vector<256x128xbf16>
    %cst_20 = arith.constant dense<0.000000e+00> : vector<32x128xf32>
    %27 = tpu.matmul %25, %26, %cst_20 {dimension_numbers = #tpu.dot_dimension_numbers<[1], [0], [0], [1], [0, 0, 1, 1], [], []>} : vector<32x256xbf16>, vector<256x128xbf16>, vector<32x128xf32> -> vector<32x128xf32>
    %c0_21 = arith.constant 0 : index
    %c0_22 = arith.constant 0 : index
    %28 = vector.load %arg9[%c0_21, %c0_22] : memref<1x128xf32, #tpu.memory_space<vmem>>, vector<1x128xf32>
    %29 = vector.broadcast %28 : vector<1x128xf32> to vector<32x128xf32>
    %30 = arith.addf %27, %29 : vector<32x128xf32>
    %c0_23 = arith.constant 0 : index
    %c0_24 = arith.constant 0 : index
    %31 = vector.load %arg10[%c0_23, %c0_24] : memref<32x128xf32, #tpu.memory_space<vmem>>, vector<32x128xf32>
    tpu.vector_store %arg10[%c0_23, %c0_24], %30 {strides = array<i32>} : memref<32x128xf32, #tpu.memory_space<vmem>>, vector<32x128xf32>,
    return
  }
  func.func @transform_0(%arg0: i32) -> (i32, i32) {
    %c0_i32 = arith.constant 0 : i32
    %c0_i32_0 = arith.constant 0 : i32
    return %arg0, %c0_i32 : i32, i32
  }
  func.func @transform_1(%arg0: i32) -> (i32, i32) {
    %c0_i32 = arith.constant 0 : i32
    %c0_i32_0 = arith.constant 0 : i32
    %c0_i32_1 = arith.constant 0 : i32
    return %c0_i32, %c0_i32_0 : i32, i32
  }
  func.func @transform_2(%arg0: i32) -> (i32, i32) {
    %c0_i32 = arith.constant 0 : i32
    %c0_i32_0 = arith.constant 0 : i32
    %c0_i32_1 = arith.constant 0 : i32
    return %c0_i32, %c0_i32_0 : i32, i32
  }
  func.func @transform_3(%arg0: i32) -> (i32, i32) {
    %c0_i32 = arith.constant 0 : i32
    %c0_i32_0 = arith.constant 0 : i32
    %c0_i32_1 = arith.constant 0 : i32
    return %c0_i32, %c0_i32_0 : i32, i32
  }
  func.func @transform_4(%arg0: i32) -> (i32, i32) {
    %c0_i32 = arith.constant 0 : i32
    %c0_i32_0 = arith.constant 0 : i32
    %c0_i32_1 = arith.constant 0 : i32
    return %c0_i32, %c0_i32_0 : i32, i32
  }
  func.func @transform_5(%arg0: i32) -> (i32, i32) {
    %c0_i32 = arith.constant 0 : i32
    %c0_i32_0 = arith.constant 0 : i32
    %c0_i32_1 = arith.constant 0 : i32
    return %c0_i32, %c0_i32_0 : i32, i32
  }
  func.func @transform_6(%arg0: i32) -> (i32, i32) {
    %c0_i32 = arith.constant 0 : i32
    %c0_i32_0 = arith.constant 0 : i32
    %c0_i32_1 = arith.constant 0 : i32
    return %c0_i32, %c0_i32_0 : i32, i32
  }
  func.func @transform_7(%arg0: i32) -> (i32, i32) {
    %c0_i32 = arith.constant 0 : i32
    %c0_i32_0 = arith.constant 0 : i32
    %c0_i32_1 = arith.constant 0 : i32
    return %c0_i32, %c0_i32_0 : i32, i32
  }
  func.func @transform_8(%arg0: i32) -> (i32, i32) {
    %c0_i32 = arith.constant 0 : i32
    %c0_i32_0 = arith.constant 0 : i32
    %c0_i32_1 = arith.constant 0 : i32
    return %c0_i32, %c0_i32_0 : i32, i32
  }
  func.func @transform_9(%arg0: i32) -> (i32, i32) {
    %c0_i32 = arith.constant 0 : i32
    %c0_i32_0 = arith.constant 0 : i32
    return %arg0, %c0_i32 : i32, i32
  }
}

module attributes {stable_mosaic.version = 11 : i64} {
  func.func @mlp_kernel(%arg0: i32, %arg1: memref<32x32xf32, #tpu.memory_space<vmem>>, %arg2: memref<32x1024xbf16, #tpu.memory_space<vmem>>, %arg3: memref<1x1024xf32, #tpu.memory_space<vmem>>, %arg4: memref<1024x512xbf16, #tpu.memory_space<vmem>>, %arg5: memref<1x512xf32, #tpu.memory_space<vmem>>, %arg6: memref<512x256xbf16, #tpu.memory_space<vmem>>, %arg7: memref<1x256xf32, #tpu.memory_space<vmem>>, %arg8: memref<256x128xbf16, #tpu.memory_space<vmem>>, %arg9: memref<1x128xf32, #tpu.memory_space<vmem>>, %arg10: memref<32x128xf32, #tpu.memory_space<vmem>>) attributes {dimension_semantics = [#tpu.dimension_semantics<parallel>], iteration_bounds = array<i64: 1>, scalar_prefetch = 0 : i64, scratch_operands = 0 : i64, tpu.core_type = #tpu.core_type<tc>, window_params = [{transform_indices = @transform_0, window_bounds = array<i64: 32, 32>}, {pipeline_mode = #tpu.pipeline_mode<synchronous>, transform_indices = @transform_1, window_bounds = array<i64: 32, 1024>}, {pipeline_mode = #tpu.pipeline_mode<synchronous>, transform_indices = @transform_2, window_bounds = array<i64: 1, 1024>}, {pipeline_mode = #tpu.pipeline_mode<synchronous>, transform_indices = @transform_3, window_bounds = array<i64: 1024, 512>}, {pipeline_mode = #tpu.pipeline_mode<synchronous>, transform_indices = @transform_4, window_bounds = array<i64: 1, 512>}, {pipeline_mode = #tpu.pipeline_mode<synchronous>, transform_indices = @transform_5, window_bounds = array<i64: 512, 256>}, {pipeline_mode = #tpu.pipeline_mode<synchronous>, transform_indices = @transform_6, window_bounds = array<i64: 1, 256>}, {pipeline_mode = #tpu.pipeline_mode<synchronous>, transform_indices = @transform_7, window_bounds = array<i64: 256, 128>}, {pipeline_mode = #tpu.pipeline_mode<synchronous>, transform_indices = @transform_8, window_bounds = array<i64: 1, 128>}, {transform_indices = @transform_9, window_bounds = array<i64: 32, 128>}]} {
    %c0 = arith.constant 0 : index
    %c0_0 = arith.constant 0 : index
    %0 = vector.load %arg1[%c0, %c0_0] : memref<32x32xf32, #tpu.memory_space<vmem>>, vector<32x32xf32>
    %1 = arith.truncf %0 : vector<32x32xf32> to vector<32x32xbf16>
    %c0_1 = arith.constant 0 : index
    %c0_2 = arith.constant 0 : index
    %2 = vector.load %arg2[%c0_1, %c0_2] : memref<32x1024xbf16, #tpu.memory_space<vmem>>, vector<32x1024xbf16>
    %cst = arith.constant dense<0.000000e+00> : vector<32x1024xf32>
    %3 = tpu.matmul %1, %2, %cst {dimension_numbers = #tpu.dot_dimension_numbers<[1], [0], [0], [1], [0, 0, 1, 1], [], []>} : vector<32x32xbf16>, vector<32x1024xbf16>, vector<32x1024xf32> -> vector<32x1024xf32>
    %c0_3 = arith.constant 0 : index
    %c0_4 = arith.constant 0 : index
    %4 = vector.load %arg3[%c0_3, %c0_4] : memref<1x1024xf32, #tpu.memory_space<vmem>>, vector<1x1024xf32>
    %5 = vector.broadcast %4 : vector<1x1024xf32> to vector<32x1024xf32>
    %6 = arith.addf %3, %5 : vector<32x1024xf32>
    %cst_5 = arith.constant 0.000000e+00 : f32
    %7 = vector.broadcast %cst_5 : f32 to vector<32x1024xf32>
    %8 = arith.maximumf %6, %7 : vector<32x1024xf32>
    %9 = arith.truncf %8 : vector<32x1024xf32> to vector<32x1024xbf16>
    %c0_6 = arith.constant 0 : index
    %c0_7 = arith.constant 0 : index
    %10 = vector.load %arg4[%c0_6, %c0_7] : memref<1024x512xbf16, #tpu.memory_space<vmem>>, vector<1024x512xbf16>
    %cst_8 = arith.constant dense<0.000000e+00> : vector<32x512xf32>
    %11 = tpu.matmul %9, %10, %cst_8 {dimension_numbers = #tpu.dot_dimension_numbers<[1], [0], [0], [1], [0, 0, 1, 1], [], []>} : vector<32x1024xbf16>, vector<1024x512xbf16>, vector<32x512xf32> -> vector<32x512xf32>
    %c0_9 = arith.constant 0 : index
    %c0_10 = arith.constant 0 : index
    %12 = vector.load %arg5[%c0_9, %c0_10] : memref<1x512xf32, #tpu.memory_space<vmem>>, vector<1x512xf32>
    %13 = vector.broadcast %12 : vector<1x512xf32> to vector<32x512xf32>
    %14 = arith.addf %11, %13 : vector<32x512xf32>
    %cst_11 = arith.constant 0.000000e+00 : f32
    %15 = vector.broadcast %cst_11 : f32 to vector<32x512xf32>
    %16 = arith.maximumf %14, %15 : vector<32x512xf32>
    %17 = arith.truncf %16 : vector<32x512xf32> to vector<32x512xbf16>
    %c0_12 = arith.constant 0 : index
    %c0_13 = arith.constant 0 : index
    %18 = vector.load %arg6[%c0_12, %c0_13] : memref<512x256xbf16, #tpu.memory_space<vmem>>, vector<512x256xbf16>
    %cst_14 = arith.constant dense<0.000000e+00> : vector<32x256xf32>
    %19 = tpu.matmul %17, %18, %cst_14 {dimension_numbers = #tpu.dot_dimension_numbers<[1], [0], [0], [1], [0, 0, 1, 1], [], []>} : vector<32x512xbf16>, vector<512x256xbf16>, vector<32x256xf32> -> vector<32x256xf32>
    %c0_15 = arith.constant 0 : index
    %c0_16 = arith.constant 0 : index
    %20 = vector.load %arg7[%c0_15, %c0_16] : memref<1x256xf32, #tpu.memory_space<vmem>>, vector<1x256xf32>
    %21 = vector.broadcast %20 : vector<1x256xf32> to vector<32x256xf32>
    %22 = arith.addf %19, %21 : vector<32x256xf32>
    %cst_17 = arith.constant 0.000000e+00 : f32
    %23 = vector.broadcast %cst_17 : f32 to vector<32x256xf32>
    %24 = arith.maximumf %22, %23 : vector<32x256xf32>
    %25 = arith.truncf %24 : vector<32x256xf32> to vector<32x256xbf16>
    %c0_18 = arith.constant 0 : index
    %c0_19 = arith.constant 0 : index
    %26 = vector.load %arg8[%c0_18, %c0_19] : memref<256x128xbf16, #tpu.memory_space<vmem>>, vector<256x128xbf16>
    %cst_20 = arith.constant dense<0.000000e+00> : vector<32x128xf32>
    %27 = tpu.matmul %25, %26, %cst_20 {dimension_numbers = #tpu.dot_dimension_numbers<[1], [0], [0], [1], [0, 0, 1, 1], [], []>} : vector<32x256xbf16>, vector<256x128xbf16>, vector<32x128xf32> -> vector<32x128xf32>
    %c0_21 = arith.constant 0 : index
    %c0_22 = arith.constant 0 : index
    %28 = vector.load %arg9[%c0_21, %c0_22] : memref<1x128xf32, #tpu.memory_space<vmem>>, vector<1x128xf32>
    %29 = vector.broadcast %28 : vector<1x128xf32> to vector<32x128xf32>
    %30 = arith.addf %27, %29 : vector<32x128xf32>
    %c0_23 = arith.constant 0 : index
    %c0_24 = arith.constant 0 : index
    %31 = vector.load %arg10[%c0_23, %c0_24] : memref<32x128xf32, #tpu.memory_space<vmem>>, vector<32x128xf32>
    tpu.vector_store %arg10[%c0_23, %c0_24], %30 {strides = array<i32>} : memref<32x128xf32, #tpu.memory_space<vmem>>, vector<32x128xf32>,
    return
  }
  func.func @transform_0(%arg0: i32) -> (i32, i32) {
    %c0_i32 = arith.constant 0 : i32
    %c0_i32_0 = arith.constant 0 : i32
    return %arg0, %c0_i32 : i32, i32
  }
  func.func @transform_1(%arg0: i32) -> (i32, i32) {
    %c0_i32 = arith.constant 0 : i32
    %c0_i32_0 = arith.constant 0 : i32
    %c0_i32_1 = arith.constant 0 : i32
    return %c0_i32, %c0_i32_0 : i32, i32
  }
  func.func @transform_2(%arg0: i32) -> (i32, i32) {
    %c0_i32 = arith.constant 0 : i32
    %c0_i32_0 = arith.constant 0 : i32
    %c0_i32_1 = arith.constant 0 : i32
    return %c0_i32, %c0_i32_0 : i32, i32
  }
  func.func @transform_3(%arg0: i32) -> (i32, i32) {
    %c0_i32 = arith.constant 0 : i32
    %c0_i32_0 = arith.constant 0 : i32
    %c0_i32_1 = arith.constant 0 : i32
    return %c0_i32, %c0_i32_0 : i32, i32
  }
  func.func @transform_4(%arg0: i32) -> (i32, i32) {
    %c0_i32 = arith.constant 0 : i32
    %c0_i32_0 = arith.constant 0 : i32
    %c0_i32_1 = arith.constant 0 : i32
    return %c0_i32, %c0_i32_0 : i32, i32
  }
  func.func @transform_5(%arg0: i32) -> (i32, i32) {
    %c0_i32 = arith.constant 0 : i32
    %c0_i32_0 = arith.constant 0 : i32
    %c0_i32_1 = arith.constant 0 : i32
    return %c0_i32, %c0_i32_0 : i32, i32
  }
  func.func @transform_6(%arg0: i32) -> (i32, i32) {
    %c0_i32 = arith.constant 0 : i32
    %c0_i32_0 = arith.constant 0 : i32
    %c0_i32_1 = arith.constant 0 : i32
    return %c0_i32, %c0_i32_0 : i32, i32
  }
  func.func @transform_7(%arg0: i32) -> (i32, i32) {
    %c0_i32 = arith.constant 0 : i32
    %c0_i32_0 = arith.constant 0 : i32
    %c0_i32_1 = arith.constant 0 : i32
    return %c0_i32, %c0_i32_0 : i32, i32
  }
  func.func @transform_8(%arg0: i32) -> (i32, i32) {
    %c0_i32 = arith.constant 0 : i32
    %c0_i32_0 = arith.constant 0 : i32
    %c0_i32_1 = arith.constant 0 : i32
    return %c0_i32, %c0_i32_0 : i32, i32
  }
  func.func @transform_9(%arg0: i32) -> (i32, i32) {
    %c0_i32 = arith.constant 0 : i32
    %c0_i32_0 = arith.constant 0 : i32
    return %arg0, %c0_i32 : i32, i32
  }
}

</mosaic_0001>

<bundles_post_ra>
// kernel: tpu_custom_call.1
= control target key start
LH: loop header
LB: loop body
LE: loop exit
PB: predicated region body
PF: predicated region fallthrough
CT: control target
= control target key end

     0   :  { %14 = vsyncpa [#allocation3], 0  ;;  %s4734_s0 = inlined_call_operand.hbm [shape: f32[32,32], index: 0, kind: input, shape index: {}]   ;;  %s4735_s1 = inlined_call_operand.hbm [shape: bf16[32,1024], index: 1, kind: input, shape index: {}]   ;;  %s4736_s2 = inlined_call_operand.hbm [shape: f32[1,1024], index: 2, kind: input, shape index: {}]   ;;  %s4737_s3 = inlined_call_operand.hbm [shape: bf16[1024,512], index: 3, kind: input, shape index: {}]   ;;  %s4738_s4 = inlined_call_operand.vmem [shape: f32[1,512], index: 4, kind: input, shape index: {}]   ;;  %s4739_s5 = inlined_call_operand.hbm [shape: bf16[512,256], index: 5, kind: input, shape index: {}]   ;;  %s4740_s6 = inlined_call_operand.vmem [shape: f32[1,256], index: 6, kind: input, shape index: {}]   ;;  %s4741_s7 = inlined_call_operand.hbm [shape: bf16[256,128], index: 7, kind: input, shape index: {}]   ;;  %s4742_s8 = inlined_call_operand.vmem [shape: f32[1,128], index: 8, kind: input, shape index: {}]   ;;  %s4743_s9 = inlined_call_operand.hbm [shape: f32[32,128], index: 9, kind: output, shape index: {}]  }
   0x1   :  { %15 = vsyncpa [#allocation6], 0 }
   0x2   :  { %16 = vsyncpa [#allocation9], 0 }
   0x3   :  { %17 = vsyncpa [#allocation12], 0 }
   0x4   :  { %18 = vsyncpa [#allocation4], 0  ;;  %s4398_s30 = smov [#allocation5]   ;;  %s4234_s13 = scalar_lea.hbm %s4735_s1, 2048 }
   0x5   :  { %s36_s10 = sshll.u32 %s4398_s30, 4  ;;  %p4235_p0 = scmp.ne.s32.totalorder %s4735_s1, %s4234_s13  ;;  %s37_s10 = int_to_ptr.vmem [resolvable:$true] %s36_s10 }
   0x6   :  { %p4238_p1 = scmp.lt.u32.totalorder %s4234_s13, %s4735_s1 }
   0x8   :  { %p4240_p2 = pnand %p4238_p1, %p4235_p0 }
   0xa   :  { %4243 = shalt.err (!%p4240_p2)
}
   0xb   :  { %s4244_s18 = scalar_lea.vmem %s37_s10, 2048  ;;  %p4249_p4 = scmp.lt.s32.totalorder %s37_s10, %s37_s10 }
   0xc   :  { %p4245_p3 = scmp.ne.s32.totalorder %s37_s10, %s4244_s18  ;;  %p4250_p5 = scmp.lt.s32.totalorder %s4244_s18, %s4244_s18 }
   0xe   :  { %p4251_p6 = por %p4250_p5, %p4249_p4 }
  0x10   :  { %p4252_p7 = pnand %p4251_p6, %p4245_p3 }
  0x12   :  { %4255 = shalt.err (!%p4252_p7)
}
  0x13   :  { %s4399_s19 = smov 512   ;;  %s4400_s20 = smov 32  }
  0x14   :  { %42 = dma.hbm_to_vmem [thread:$0]  %s4735_s1, 2048, %s37_s10, [#allocation6], %s4399_s19, %s4399_s19, %s4400_s20  }
  0x15   :  { %s4401_s23 = smov [#allocation8]   ;;  %s4256_s27 = scalar_lea.hbm %s4737_s3, 32768 }
  0x16   :  { %s58_s24 = sshll.u32 %s4401_s23, 4  ;;  %p4257_p8 = scmp.ne.s32.totalorder %s4737_s3, %s4256_s27  ;;  %s59_s24 = int_to_ptr.vmem [resolvable:$true] %s58_s24 }
  0x17   :  { %p4260_p9 = scmp.lt.u32.totalorder %s4256_s27, %s4737_s3 }
  0x19   :  { %p4262_p10 = pnand %p4260_p9, %p4257_p8 }
  0x1b   :  { %4265 = shalt.err (!%p4262_p10)
}
  0x1c   :  { %s4266_s12 = scalar_lea.vmem %s59_s24, 32768  ;;  %p4271_p12 = scmp.lt.s32.totalorder %s59_s24, %s59_s24 }
  0x1d   :  { %p4267_p11 = scmp.ne.s32.totalorder %s59_s24, %s4266_s12  ;;  %p4272_p13 = scmp.lt.s32.totalorder %s4266_s12, %s4266_s12 }
  0x1f   :  { %p4273_p0 = por %p4272_p13, %p4271_p12 }
  0x21   :  { %p4274_p1 = pnand %p4273_p0, %p4267_p11 }
  0x23   :  { %4277 = shalt.err (!%p4274_p1)
}
  0x24   :  { %s4402_s1 = smov 256   ;;  %s4403_s10 = smov 16  }
  0x25   :  { %64 = dma.hbm_to_vmem [thread:$0]  %s4737_s3, 32768, %s59_s24, [#allocation9], %s4402_s1, %s4402_s1, %s4403_s10  }
  0x26   :  { %s4404_s15 = smov [#allocation2]   ;;  %s4278_s19 = scalar_lea.hbm %s4734_s0, 512 }
  0x27   :  { %s24_s16 = sshll.u32 %s4404_s15, 4  ;;  %p4279_p2 = scmp.ne.s32.totalorder %s4734_s0, %s4278_s19  ;;  %s25_s16 = int_to_ptr.vmem [resolvable:$true] %s24_s16 }
  0x28   :  { %p4282_p3 = scmp.lt.u32.totalorder %s4278_s19, %s4734_s0 }
  0x2a   :  { %p4284_p4 = pnand %p4282_p3, %p4279_p2 }
  0x2c   :  { %4287 = shalt.err (!%p4284_p4)
}
  0x2d   :  { %s4288_s25 = scalar_lea.vmem %s25_s16, 512  ;;  %p4293_p6 = scmp.lt.s32.totalorder %s25_s16, %s25_s16 }
  0x2e   :  { %p4289_p5 = scmp.ne.s32.totalorder %s25_s16, %s4288_s25  ;;  %p4294_p7 = scmp.lt.s32.totalorder %s4288_s25, %s4288_s25 }
  0x30   :  { %p4295_p8 = por %p4294_p7, %p4293_p6 }
  0x32   :  { %p4296_p9 = pnand %p4295_p8, %p4289_p5 }
  0x34   :  { %4299 = shalt.err (!%p4296_p9)
}
  0x35   :  { %s4405_s3 = smov 128   ;;  %s4406_s24 = smov 8  }
  0x36   :  { %30 = dma.hbm_to_vmem [thread:$0]  %s4734_s0, 512, %s25_s16, [#allocation3], %s4405_s3, %s4405_s3, %s4406_s24  }
  0x37   :  { %s4407_s28 = smov [#allocation7]   ;;  %s4408_s30 = smov [#allocation10]  }
  0x38   :  { %s49_s29 = sshll.u32 %s4407_s28, 4  ;;  %s72_s11 = sshll.u32 %s4408_s30, 4  ;;  %s50_s29 = int_to_ptr.vmem [resolvable:$true] %s49_s29  ;;  %s73_s11 = int_to_ptr.vmem [resolvable:$true] %s72_s11 }
  0x39   :  { %s4300_s10 = scalar_lea.hbm %s4736_s2, 128 }
  0x3a   :  { %p4301_p10 = scmp.ne.s32.totalorder %s4736_s2, %s4300_s10  ;;  %p4304_p11 = scmp.lt.u32.totalorder %s4300_s10, %s4736_s2 }
  0x3c   :  { %p4306_p12 = pnand %p4304_p11, %p4301_p10 }
  0x3e   :  { %4309 = shalt.err (!%p4306_p12)
}
  0x3f   :  { %s4310_s0 = scalar_lea.vmem %s50_s29, 128  ;;  %p4315_p0 = scmp.lt.s32.totalorder %s50_s29, %s50_s29 }
  0x40   :  { %p4311_p13 = scmp.ne.s32.totalorder %s50_s29, %s4310_s0  ;;  %p4316_p1 = scmp.lt.s32.totalorder %s4310_s0, %s4310_s0 }
  0x42   :  { %p4317_p2 = por %p4316_p1, %p4315_p0 }
  0x44   :  { %p4318_p3 = pnand %p4317_p2, %p4311_p13 }
  0x46   :  { %4321 = shalt.err (!%p4318_p3)
}
  0x47   :  { %52 = dma.hbm_to_vmem [thread:$0]  %s4736_s2, 128, %s50_s29, [#allocation6]  }
  0x48   :  { %s4322_s21 = scalar_lea.hbm %s4739_s5, 8192 }
  0x49   :  { %p4323_p4 = scmp.ne.s32.totalorder %s4739_s5, %s4322_s21  ;;  %p4326_p5 = scmp.lt.u32.totalorder %s4322_s21, %s4739_s5 }
  0x4b   :  { %p4328_p6 = pnand %p4326_p5, %p4323_p4 }
  0x4d   :  { %4331 = shalt.err (!%p4328_p6)
}
  0x4e   :  { %s4332_s27 = scalar_lea.vmem %s73_s11, 8192  ;;  %p4337_p8 = scmp.lt.s32.totalorder %s73_s11, %s73_s11 }
  0x4f   :  { %p4333_p7 = scmp.ne.s32.totalorder %s73_s11, %s4332_s27  ;;  %p4338_p9 = scmp.lt.s32.totalorder %s4332_s27, %s4332_s27 }
  0x51   :  { %p4339_p10 = por %p4338_p9, %p4337_p8 }
  0x53   :  { %p4340_p11 = pnand %p4339_p10, %p4333_p7 }
  0x55   :  { %4343 = shalt.err (!%p4340_p11)
}
  0x56   :  { %78 = dma.hbm_to_vmem [thread:$0]  %s4739_s5, 8192, %s73_s11, [#allocation9], %s4405_s3, %s4405_s3, %s4406_s24  }
  0x57   :  { %s4409_s29 = smov [#allocation11]   ;;  %s4344_s10 = scalar_lea.hbm %s4741_s7, 2048 }
  0x58   :  { %s86_s30 = sshll.u32 %s4409_s29, 4  ;;  %p4345_p12 = scmp.ne.s32.totalorder %s4741_s7, %s4344_s10  ;;  %s87_s30 = int_to_ptr.vmem [resolvable:$true] %s86_s30 }
  0x59   :  { %p4348_p13 = scmp.lt.u32.totalorder %s4344_s10, %s4741_s7 }
  0x5b   :  { %p4350_p0 = pnand %p4348_p13, %p4345_p12 }
  0x5d   :  { %4353 = shalt.err (!%p4350_p0)
}
  0x5e   :  { %s4354_s0 = scalar_lea.vmem %s87_s30, 2048  ;;  %p4359_p2 = scmp.lt.s32.totalorder %s87_s30, %s87_s30 }
  0x5f   :  { %p4355_p1 = scmp.ne.s32.totalorder %s87_s30, %s4354_s0  ;;  %p4360_p3 = scmp.lt.s32.totalorder %s4354_s0, %s4354_s0 }
  0x61   :  { %p4361_p4 = por %p4360_p3, %p4359_p2 }
  0x63   :  { %p4362_p5 = pnand %p4361_p4, %p4355_p1 }
  0x65   :  { %4365 = shalt.err (!%p4362_p5)
}
  0x66   :  { %s4410_s5 = smov 64   ;;  %s4411_s11 = smov 4  }
  0x67   :  { %92 = dma.hbm_to_vmem [thread:$0]  %s4741_s7, 2048, %s87_s30, [#allocation12], %s4410_s5, %s4410_s5, %s4411_s11  }
  0x68   :  { %4388 = dma.done.wait [#allocation3], 512  }
  0x69   :  { %4389 = vsyncadd [#allocation3], 4294966784 }
  0x6a   :  { %4390 = dma.done.wait [#allocation6], 2176  }
  0x6b   :  { %4391 = vsyncadd [#allocation6], 4294965120 }
  0x6c   :  { %4392 = dma.done.wait [#allocation9], 40960  }
  0x6d   :  { %4393 = vsyncadd [#allocation9], 4294926336 }
  0x6e   :  { %4394 = dma.done.wait [#allocation12], 2048  }
  0x6f   :  { %4395 = vsyncadd [#allocation12], 4294965248  ;;  %v4412_v0 = vmov 0   ;;  %v120_v1 = vld [vmem:[#allocation5] sm:$0xff]  ;;  %v121_v8 = vld [vmem:[#allocation5 + $0x8] sm:$0xff]  ;;  %vm258_vm0 = vcmask 261120  }
  0x70   :  { %297 = vmatprep.mubr.bf16.mxu0 %v4412_v0  ;;  %456 = vmatprep.mubr.bf16.mxu1 %v4412_v0  ;;  %v124_v2 = vld [vmem:[#allocation5 + $0x20] sm:$0xff]  ;;  %v125_v9 = vld [vmem:[#allocation5 + $0x28] sm:$0xff]  ;;  %v123_v16 = vld [vmem:[#allocation5 + $0x18] sm:$0xff]  ;;  %s4413_s22 = smov [#allocation13]  }
  0x71   :  { %v128_v3 = vld [vmem:[#allocation5 + $0x40] sm:$0xff]  ;;  %v3254_v4 = vcombine.high %v120_v1, %v124_v2  ;;  %v3253_v5 = vcombine.low %v120_v1, %v124_v2  ;;  %v115_v12 = vld [vmem:[#allocation2 + $0x8] sm:$0xff]  ;;  %v3256_v14 = vcombine.high %v121_v8, %v125_v9  ;;  %v127_v17 = vld [vmem:[#allocation5 + $0x38] sm:$0xff]  ;;  %v3255_v24 = vcombine.low %v121_v8, %v125_v9  ;;  %s3238_s23 = sshll.u32 %s4413_s22, 4  ;;  %s3239_s23 = int_to_ptr.vmem [resolvable:$true] %s3238_s23 }
  0x72   :  { %v132_v6 = vld [vmem:[#allocation5 + $0x60] sm:$0xff]  ;;  %v129_v13 = vld [vmem:[#allocation5 + $0x48] sm:$0xff]  ;;  %v3260_v18 = vcombine.high %v123_v16, %v127_v17  ;;  %v3259_v19 = vcombine.low %v123_v16, %v127_v17  ;;  %v131_v20 = vld [vmem:[#allocation5 + $0x58] sm:$0xff]  ;;  %p4371_p7 = scmp.lt.s32.totalorder %s3239_s23, %s3239_s23 }
  0x73   :  { %v3262_v7 = vcombine.high %v128_v3, %v132_v6  ;;  %265 = vmatprep.subr.bf16.mxu0 %v3254_v4  ;;  %v3261_v10 = vcombine.low %v128_v3, %v132_v6  ;;  %v114_v11 = vld [vmem:[#allocation2] sm:$0xff]  ;;  %v133_v15 = vld [vmem:[#allocation5 + $0x68] sm:$0xff]  ;;  %v135_v21 = vld [vmem:[#allocation5 + $0x78] sm:$0xff] }
  0x74   :  { %266 = vmatpush1.bf16.msra.mxu0 %v3253_v5  ;;  %v4544_v22 = vpack.c.bf16 %v115_v12, %v114_v11  ;;  %v3268_v23 = vcombine.high %v131_v20, %v135_v21  ;;  %424 = vmatprep.subr.bf16.mxu1 %v3260_v18  ;;  %v3264_v25 = vcombine.high %v129_v13, %v133_v15  ;;  %v122_v26 = vld [vmem:[#allocation5 + $0x10] sm:$0xff]  ;;  %v3740_v29 = vld [vmem:[#allocation8 + $0x4] ss:$16 sps:$4 sm:$0xff]   ;;  %v3738_v34 = vld [vmem:[#allocation8] ss:$16 sps:$4 sm:$0xff]  }
  0x75   :  { %267 = vmatprep.subr.bf16.mxu0 %v3262_v7  ;;  %425 = vmatpush1.bf16.msra.mxu1 %v3259_v19  ;;  %v3267_v27 = vcombine.low %v131_v20, %v135_v21  ;;  %v126_v28 = vld [vmem:[#allocation5 + $0x30] sm:$0xff]  ;;  %v117_v31 = vld [vmem:[#allocation2 + $0x18] sm:$0xff]  ;;  %v3263_v32 = vcombine.low %v129_v13, %v133_v15 }
  0x76   :  { %426 = vmatprep.subr.bf16.mxu1 %v3268_v23  ;;  %v116_v30 = vld [vmem:[#allocation2 + $0x10] sm:$0xff]  ;;  %v3258_v33 = vcombine.high %v122_v26, %v126_v28  ;;  %v3743_v36 = vld [vmem:[#allocation8 + $0x24] ss:$16 sps:$4 sm:$0xff]   ;;  %v3741_v37 = vld [vmem:[#allocation8 + $0x20] ss:$16 sps:$4 sm:$0xff]   ;;  %v3257_v43 = vcombine.low %v122_v26, %v126_v28 }
  0x77   :  { %v4549_v35 = vpack.c.bf16 %v117_v31, %v116_v30  ;;  %v3746_v38 = vld [vmem:[#allocation8 + $0x44] ss:$16 sps:$4 sm:$0xff]   ;;  %v130_v39 = vld [vmem:[#allocation5 + $0x50] sm:$0xff]  ;;  %v3744_v41 = vld [vmem:[#allocation8 + $0x40] ss:$16 sps:$4 sm:$0xff]  }
  0x78   :  { %268 = vmatpush1.bf16.msra.mxu0 %v3261_v10  ;;  %v134_v40 = vld [vmem:[#allocation5 + $0x70] sm:$0xff]  ;;  %v3749_v42 = vld [vmem:[#allocation8 + $0x64] ss:$16 sps:$4 sm:$0xff]   ;;  %v3747_v45 = vld [vmem:[#allocation8 + $0x60] ss:$16 sps:$4 sm:$0xff]  }
  0x79   :  { %318 = vmatprep.subr.bf16.mxu0 %v3256_v14  ;;  %427 = vmatpush1.bf16.msra.mxu1 %v3267_v27  ;;  %v3266_v44 = vcombine.high %v130_v39, %v134_v40  ;;  %v3752_v46 = vld [vmem:[#allocation8 + $0x84] ss:$16 sps:$4 sm:$0xff]   ;;  %v3265_v47 = vcombine.low %v130_v39, %v134_v40  ;;  %v3750_v49 = vld [vmem:[#allocation8 + $0x80] ss:$16 sps:$4 sm:$0xff]  }
  0x7a   :  { %2083 = vmatprep.subr.bf16.mxu1 %v3740_v29  ;;  %v3755_v48 = vld [vmem:[#allocation8 + $0x204] ss:$16 sps:$4 sm:$0xff]   ;;  %v3756_v51 = vld [vmem:[#allocation8 + $0xa0] ss:$16 sps:$4 sm:$0xff]  }
  0x7b   :  { %3269 = vmatmul.mubr.msk.bf16.vlgmr.msra.gmra.mrb[0].mxu0 %vm258_vm0, %v4544_v22  ;;  %v3758_v50 = vld [vmem:[#allocation8 + $0xa4] ss:$16 sps:$4 sm:$0xff]   ;;  %v3753_v53 = vld [vmem:[#allocation8 + $0x200] ss:$16 sps:$4 sm:$0xff]  }
  0x7c   :  { %307 = vmatprep.mubr.bf16.mxu0 %v4412_v0  ;;  %319 = vmatpush1.bf16.msra.mxu0 %v3255_v24  ;;  %v3764_v52 = vld [vmem:[#allocation8 + $0xc4] ss:$16 sps:$4 sm:$0xff]   ;;  %v3762_v54 = vld [vmem:[#allocation8 + $0xc0] ss:$16 sps:$4 sm:$0xff]  }
  0x7d   :  { %320 = vmatprep.subr.bf16.mxu0 %v3264_v25  ;;  %3275 = vmatmul.mubr.msk.bf16.vlgmr.msra.gmra.mrb[0].mxu1 %vm258_vm0, %v4544_v22  ;;  %v3770_v55 = vld [vmem:[#allocation8 + $0xe4] ss:$16 sps:$4 sm:$0xff]   ;;  %v3768_v57 = vld [vmem:[#allocation8 + $0xe0] ss:$16 sps:$4 sm:$0xff]  }
  0x7e   :  { %466 = vmatprep.mubr.bf16.mxu1 %v4412_v0  ;;  %2084 = vmatpush1.bf16.msra.mxu1 %v3738_v34  ;;  %v3761_v56 = vld [vmem:[#allocation8 + $0x224] ss:$16 sps:$4 sm:$0xff]   ;;  %v3759_v59 = vld [vmem:[#allocation8 + $0x220] ss:$16 sps:$4 sm:$0xff]  }
  0x7f   :  { %2085 = vmatprep.subr.bf16.mxu1 %v3743_v36  ;;  %v3776_v58 = vld [vmem:[#allocation8 + $0x104] ss:$16 sps:$4 sm:$0xff]   ;;  %v3774_v61 = vld [vmem:[#allocation8 + $0x100] ss:$16 sps:$4 sm:$0xff]  }
  0x80   :  { %321 = vmatpush1.bf16.msra.mxu0 %v3263_v32  ;;  %v3767_v60 = vld [vmem:[#allocation8 + $0x244] ss:$16 sps:$4 sm:$0xff]   ;;  %v3765_v63 = vld [vmem:[#allocation8 + $0x240] ss:$16 sps:$4 sm:$0xff]   ;;  %v3827_v32 = vld [vmem:[#allocation8 + $0xc] ss:$16 sps:$4 sm:$0xff]  }
  0x81   :  { %371 = vmatprep.subr.bf16.mxu0 %v3258_v33  ;;  %v3782_v62 = vld [vmem:[#allocation8 + $0x124] ss:$16 sps:$4 sm:$0xff]   ;;  %v3780_v2 = vld [vmem:[#allocation8 + $0x120] ss:$16 sps:$4 sm:$0xff]  }
  0x82   :  { %2086 = vmatpush1.bf16.msra.mxu1 %v3741_v37  ;;  %v3773_v1 = vld [vmem:[#allocation8 + $0x264] ss:$16 sps:$4 sm:$0xff]   ;;  %v3771_v4 = vld [vmem:[#allocation8 + $0x260] ss:$16 sps:$4 sm:$0xff]  }
  0x83   :  { %3270 = vmatmul.mubr.msk.bf16.gmra.mrb[4].mxu0 %vm258_vm0, %v4549_v35  ;;  %2087 = vmatprep.subr.bf16.mxu1 %v3746_v38  ;;  %v3788_v3 = vld [vmem:[#allocation8 + $0x144] ss:$16 sps:$4 sm:$0xff]   ;;  %v3777_v7 = vld [vmem:[#allocation8 + $0x280] ss:$16 sps:$4 sm:$0xff]  }
  0x84   :  { %350 = vmatprep.mubr.bf16.mxu0 %v4412_v0  ;;  %v3779_v5 = vld [vmem:[#allocation8 + $0x284] ss:$16 sps:$4 sm:$0xff]   ;;  %v3792_v9 = vld [vmem:[#allocation8 + $0x160] ss:$16 sps:$4 sm:$0xff]  }
  0x85   :  { %3276 = vmatmul.mubr.msk.bf16.gmra.mrb[4].mxu1 %vm258_vm0, %v4549_v35  ;;  %v3794_v6 = vld [vmem:[#allocation8 + $0x164] ss:$16 sps:$4 sm:$0xff]   ;;  %v3783_v11 = vld [vmem:[#allocation8 + $0x2a0] ss:$16 sps:$4 sm:$0xff]  }
  0x86   :  { %2088 = vmatpush1.bf16.msra.mxu1 %v3744_v41  ;;  %v3785_v8 = vld [vmem:[#allocation8 + $0x2a4] ss:$16 sps:$4 sm:$0xff]   ;;  %v3798_v13 = vld [vmem:[#allocation8 + $0x180] ss:$16 sps:$4 sm:$0xff]   ;;  %v138_v41 = vlaneseq }
  0x87   :  { %2089 = vmatprep.subr.bf16.mxu1 %v3749_v42  ;;  %v3800_v10 = vld [vmem:[#allocation8 + $0x184] ss:$16 sps:$4 sm:$0xff]   ;;  %v3789_v15 = vld [vmem:[#allocation8 + $0x2c0] ss:$16 sps:$4 sm:$0xff]  }
  0x88   :  { %v3791_v12 = vld [vmem:[#allocation8 + $0x2c4] ss:$16 sps:$4 sm:$0xff]   ;;  %v3804_v17 = vld [vmem:[#allocation8 + $0x1a0] ss:$16 sps:$4 sm:$0xff]   ;;  %v4570_v42 = vshrl.u32 %v138_v41, 7 }
  0x89   :  { %v3806_v14 = vld [vmem:[#allocation8 + $0x1a4] ss:$16 sps:$4 sm:$0xff]   ;;  %v3795_v18 = vld [vmem:[#allocation8 + $0x2e0] ss:$16 sps:$4 sm:$0xff]  }
  0x8a   :  { %2090 = vmatpush1.bf16.msra.mxu1 %v3747_v45  ;;  %v3797_v16 = vld [vmem:[#allocation8 + $0x2e4] ss:$16 sps:$4 sm:$0xff]   ;;  %v3801_v20 = vld [vmem:[#allocation8 + $0x300] ss:$16 sps:$4 sm:$0xff]   ;;  %v4578_v45 = vsub.s32 1, %v4570_v42 }
  0x8b   :  { %3271 = vmatmul.mubr.msk.bf16.vlgmr.msra.gmra.mrb[8].mxu0 %vm258_vm0, %v4544_v22  ;;  %2091 = vmatprep.subr.bf16.mxu1 %v3752_v46  ;;  %v3803_v19 = vld [vmem:[#allocation8 + $0x304] ss:$16 sps:$4 sm:$0xff]   ;;  %v3810_v25 = vld [vmem:[#allocation8 + $0x1c0] ss:$16 sps:$4 sm:$0xff]  }
  0x8c   :  { %360 = vmatprep.mubr.bf16.mxu0 %v4412_v0  ;;  %372 = vmatpush1.bf16.msra.mxu0 %v3257_v43  ;;  %v3809_v21 = vld [vmem:[#allocation8 + $0x324] ss:$16 sps:$4 sm:$0xff]   ;;  %v3813_v26 = vld [vmem:[#allocation8 + $0x340] ss:$16 sps:$4 sm:$0xff]   ;;  %v4573_v43 = vsub.s32 0, %v4570_v42 }
  0x8d   :  { %373 = vmatprep.subr.bf16.mxu0 %v3266_v44  ;;  %v3812_v23 = vld [vmem:[#allocation8 + $0x1c4] ss:$16 sps:$4 sm:$0xff]   ;;  %v3816_v29 = vld [vmem:[#allocation8 + $0x1e0] ss:$16 sps:$4 sm:$0xff]   ;;  %v4575_v44 = vld [vmem:[#allocation7] sm:$0xff] }
  0x8e   :  { %2092 = vmatpush1.bf16.msra.mxu1 %v3750_v49  ;;  %v3815_v24 = vld [vmem:[#allocation8 + $0x344] ss:$16 sps:$4 sm:$0xff]   ;;  %v3819_v30 = vld [vmem:[#allocation8 + $0x360] ss:$16 sps:$4 sm:$0xff]   ;;  %v141_v46 = vrot.slane %v4575_v44, %v4573_v43 }
  0x8f   :  { %2093 = vmatprep.subr.bf16.mxu1 %v3758_v50  ;;  %v3818_v27 = vld [vmem:[#allocation8 + $0x1e4] ss:$16 sps:$4 sm:$0xff]   ;;  %v3822_v33 = vld [vmem:[#allocation8 + $0x380] ss:$16 sps:$4 sm:$0xff]  }
  0x90   :  { %374 = vmatpush1.bf16.msra.mxu0 %v3265_v47  ;;  %v3821_v28 = vld [vmem:[#allocation8 + $0x364] ss:$16 sps:$4 sm:$0xff]   ;;  %v3834_v37 = vld [vmem:[#allocation8 + $0x3c0] ss:$16 sps:$4 sm:$0xff]   ;;  %v145_v47 = vrot.slane %v4575_v44, %v4578_v45 }
  0x91   :  { %2136 = vmatprep.subr.bf16.mxu0 %v3755_v48  ;;  %v3824_v31 = vld [vmem:[#allocation8 + $0x384] ss:$16 sps:$4 sm:$0xff]   ;;  %v3840_v39 = vld [vmem:[#allocation8 + $0x3e0] ss:$16 sps:$4 sm:$0xff]  }
  0x92   :  { %2094 = vmatpush1.bf16.msra.mxu1 %v3756_v51  ;;  %v3830_v34 = vld [vmem:[#allocation8 + $0x3a4] ss:$16 sps:$4 sm:$0xff]  }
  0x93   :  { %3272 = vmatmul.mubr.msk.bf16.gmra.mrb[12].mxu0 %vm258_vm0, %v4549_v35  ;;  %2095 = vmatprep.subr.bf16.mxu1 %v3764_v52  ;;  %v3836_v36 = vld [vmem:[#allocation8 + $0x3c4] ss:$16 sps:$4 sm:$0xff]  }
  0x94   :  { %403 = vmatprep.mubr.bf16.mxu0 %v4412_v0  ;;  %v3842_v38 = vld [vmem:[#allocation8 + $0x3e4] ss:$16 sps:$4 sm:$0xff]  }
  0x95   :  { %v3848_v40 = vld [vmem:[#allocation8 + $0x404] ss:$16 sps:$4 sm:$0xff]  }
  0x96   :  { %2096 = vmatpush1.bf16.msra.mxu1 %v3762_v54 }
  0x97   :  { %2097 = vmatprep.subr.bf16.mxu1 %v3770_v55 }
  0x9a   :  { %2098 = vmatpush1.bf16.msra.mxu1 %v3768_v57 }
  0x9b   :  { %3273 = vmatmul.mubr.msk.bf16.vlgmr.msra.gmra.mrb[16].mxu0 %vm258_vm0, %v4544_v22  ;;  %2099 = vmatprep.subr.bf16.mxu1 %v3776_v58  ;;  %v3807_v22 = vld [vmem:[#allocation8 + $0x320] ss:$16 sps:$4 sm:$0xff]  }
  0x9c   :  { %413 = vmatprep.mubr.bf16.mxu0 %v4412_v0  ;;  %2137 = vmatpush1.bf16.msra.mxu0 %v3753_v53  ;;  %v3786_v0 = vld [vmem:[#allocation8 + $0x140] ss:$16 sps:$4 sm:$0xff]  }
  0x9d   :  { %2138 = vmatprep.subr.bf16.mxu0 %v3761_v56 }
  0x9e   :  { %2100 = vmatpush1.bf16.msra.mxu1 %v3774_v61 }
  0x9f   :  { %2101 = vmatprep.subr.bf16.mxu1 %v3782_v62 }
  0xa0   :  { %2139 = vmatpush1.bf16.msra.mxu0 %v3759_v59 }
  0xa1   :  { %2140 = vmatprep.subr.bf16.mxu0 %v3767_v60 }
  0xa2   :  { %2102 = vmatpush1.bf16.msra.mxu1 %v3780_v2 }
  0xa3   :  { %3274 = vmatmul.mubr.msk.bf16.gmra.mrb[20].mxu0 %vm258_vm0, %v4549_v35  ;;  %2103 = vmatprep.subr.bf16.mxu1 %v3788_v3  ;;  %v3828_v35 = vld [vmem:[#allocation8 + $0x3a0] ss:$16 sps:$4 sm:$0xff]   ;;  %v3833_v3 = vld [vmem:[#allocation8 + $0x2c] ss:$16 sps:$4 sm:$0xff]  }
  0xa4   :  { %2141 = vmatpush1.bf16.msra.mxu0 %v3765_v63  ;;  %v3825_v63 = vld [vmem:[#allocation8 + $0x8] ss:$16 sps:$4 sm:$0xff]  }
  0xa5   :  { %2142 = vmatprep.subr.bf16.mxu0 %v3773_v1 }
  0xa6   :  { %2104 = vmatpush1.bf16.msra.mxu1 %v3786_v0 }
  0xa7   :  { %2105 = vmatprep.subr.bf16.mxu1 %v3794_v6  ;;  %v152_v6 = vsub.s32 3, %v4570_v42 }
  0xa8   :  { %2143 = vmatpush1.bf16.msra.mxu0 %v3771_v4  ;;  %v148_v4 = vsub.s32 2, %v4570_v42 }
  0xa9   :  { %2144 = vmatprep.subr.bf16.mxu0 %v3779_v5 }
  0xaa   :  { %2106 = vmatpush1.bf16.msra.mxu1 %v3792_v9 }
  0xab   :  { %2107 = vmatprep.subr.bf16.mxu1 %v3800_v10 }
  0xac   :  { %2145 = vmatpush1.bf16.msra.mxu0 %v3777_v7 }
  0xad   :  { %2146 = vmatprep.subr.bf16.mxu0 %v3785_v8 }
  0xae   :  { %2108 = vmatpush1.bf16.msra.mxu1 %v3798_v13 }
  0xaf   :  { %2109 = vmatprep.subr.bf16.mxu1 %v3806_v14  ;;  %v4592_v14 = vrot.slane %v4575_v44, %v148_v4 }
  0xb0   :  { %2147 = vmatpush1.bf16.msra.mxu0 %v3783_v11 }
  0xb1   :  { %2148 = vmatprep.subr.bf16.mxu0 %v3791_v12  ;;  %v3831_v12 = vld [vmem:[#allocation8 + $0x28] ss:$16 sps:$4 sm:$0xff]  }
  0xb2   :  { %2110 = vmatpush1.bf16.msra.mxu1 %v3804_v17  ;;  %v4597_v17 = vrot.slane %v4575_v44, %v152_v6 }
  0xb3   :  { %2111 = vmatprep.subr.bf16.mxu1 %v3812_v23  ;;  %v3837_v23 = vld [vmem:[#allocation8 + $0x48] ss:$16 sps:$4 sm:$0xff]  }
  0xb4   :  { %2149 = vmatpush1.bf16.msra.mxu0 %v3789_v15  ;;  %v3839_v15 = vld [vmem:[#allocation8 + $0x4c] ss:$16 sps:$4 sm:$0xff]  }
  0xb5   :  { %2150 = vmatprep.subr.bf16.mxu0 %v3797_v16 }
  0xb6   :  { %2112 = vmatpush1.bf16.msra.mxu1 %v3810_v25 }
  0xb7   :  { %2113 = vmatprep.subr.bf16.mxu1 %v3818_v27  ;;  %v3845_v27 = vld [vmem:[#allocation8 + $0x6c] ss:$16 sps:$4 sm:$0xff]  }
  0xb8   :  { %2151 = vmatpush1.bf16.msra.mxu0 %v3795_v18  ;;  %v164_v18 = vsub.s32 6, %v4570_v42 }
  0xb9   :  { %2152 = vmatprep.subr.bf16.mxu0 %v3803_v19 }
  0xba   :  { %2114 = vmatpush1.bf16.msra.mxu1 %v3816_v29 }
  0xbb   :  { %2295 = vmatprep.subr.bf16.mxu1 %v3827_v32 }
  0xbc   :  { %2153 = vmatpush1.bf16.msra.mxu0 %v3801_v20 }
  0xbd   :  { %2154 = vmatprep.subr.bf16.mxu0 %v3809_v21 }
  0xc0   :  { %2155 = vmatpush1.bf16.msra.mxu0 %v3807_v22 }
  0xc1   :  { %2156 = vmatprep.subr.bf16.mxu0 %v3815_v24  ;;  %v165_v24 = vrot.slane %v4575_v44, %v164_v18 }
  0xc4   :  { %2157 = vmatpush1.bf16.msra.mxu0 %v3813_v26 }
  0xc5   :  { %2158 = vmatprep.subr.bf16.mxu0 %v3821_v28  ;;  %v168_v28 = vsub.s32 7, %v4570_v42 }
  0xc8   :  { %2159 = vmatpush1.bf16.msra.mxu0 %v3819_v30 }
  0xc9   :  { %2160 = vmatprep.subr.bf16.mxu0 %v3824_v31 }
  0xcc   :  { %2161 = vmatpush1.bf16.msra.mxu0 %v3822_v33 }
  0xcd   :  { %2162 = vmatprep.subr.bf16.mxu0 %v3830_v34 }
  0xd0   :  { %2163 = vmatpush1.bf16.msra.mxu0 %v3828_v35 }
  0xd1   :  { %2164 = vmatprep.subr.bf16.mxu0 %v3836_v36 }
  0xd4   :  { %2165 = vmatpush1.bf16.msra.mxu0 %v3834_v37  ;;  %v169_v37 = vrot.slane %v4575_v44, %v168_v28 }
  0xd5   :  { %2166 = vmatprep.subr.bf16.mxu0 %v3842_v38 }
  0xd8   :  { %2167 = vmatpush1.bf16.msra.mxu0 %v3840_v39 }
  0xd9   :  { %2189 = vmatprep.subr.bf16.mxu0 %v3848_v40 }
 0x14e   :  { %v299_v48 = vpop.f32.mrb[0].mxu0 }
 0x14f   :  { %v300_v49 = vadd.f32 %v299_v48, %v141_v46  ;;  %v301_v50 = vpop.f32.mrb[1].mxu0 }
 0x150   :  { %v302_v51 = vadd.f32 %v301_v50, %v145_v47  ;;  %v303_v52 = vpop.f32.mrb[2].mxu0  ;;  %v458_v20 = vpop.f32.mrb[0].mxu1 }
 0x151   :  { %v304_v53 = vadd.f32 %v303_v52, %v141_v46  ;;  %v305_v54 = vpop.f32.mrb[3].mxu0  ;;  %v477_v56 = vmax.f32 %v300_v49, 0.0  ;;  %v460_v29 = vpop.f32.mrb[1].mxu1  ;;  %v459_v32 = vadd.f32 %v458_v20, %v165_v24  ;;  %v3851_v49 = vld [vmem:[#allocation8 + $0x8c] ss:$16 sps:$4 sm:$0xff]  }
 0x152   :  { %v306_v55 = vadd.f32 %v305_v54, %v145_v47  ;;  %v478_v58 = vmax.f32 %v302_v51, 0.0  ;;  %v462_v33 = vpop.f32.mrb[2].mxu1  ;;  %v461_v50 = vadd.f32 %v460_v29, %v169_v37 }
 0x153   :  { %v485_v57 = vmax.f32 %v304_v53, 0.0  ;;  %v463_v38 = vadd.f32 %v462_v33, %v165_v24  ;;  %v464_v39 = vpop.f32.mrb[3].mxu1  ;;  %v3863_v33 = vld [vmem:[#allocation8 + $0xcc] ss:$16 sps:$4 sm:$0xff]  }
 0x154   :  { %v486_v59 = vmax.f32 %v306_v55, 0.0  ;;  %v465_v52 = vadd.f32 %v464_v39, %v169_v37 }
 0x155   :  { %v4584_v60 = vpack.c.bf16 %v485_v57, %v477_v56  ;;  %v491_v51 = vmax.f32 %v463_v38, 0.0  ;;  %v3846_v56 = vld [vmem:[#allocation8 + $0x400] ss:$16 sps:$4 sm:$0xff]   ;;  %v484_v57 = vmax.f32 %v461_v50, 0.0 }
 0x156   :  { %v510_v61 = vpack.c.bf16 %v486_v59, %v478_v58  ;;  %v309_v62 = vpop.f32.mrb[4].mxu0  ;;  %v492_v59 = vmax.f32 %v465_v52, 0.0 }
 0x157   :  { %v310_v1 = vadd.f32 %v309_v62, %v141_v46  ;;  %v311_v2 = vpop.f32.mrb[5].mxu0 }
 0x158   :  { %v312_v5 = vadd.f32 %v311_v2, %v145_v47  ;;  %v313_v0 = vpop.f32.mrb[6].mxu0  ;;  %2115 = vmatprep.mubr.bf16.mxu1 %v510_v61  ;;  %v468_v54 = vpop.f32.mrb[4].mxu1 }
 0x159   :  { %v493_v7 = vmax.f32 %v310_v1, 0.0  ;;  %v314_v8 = vadd.f32 %v313_v0, %v141_v46  ;;  %v315_v9 = vpop.f32.mrb[7].mxu0  ;;  %2116 = vmatmul.mubr.bf16.vlgmr.msra.gmra.mrb[8].mxu1 %v4584_v60  ;;  %v3843_v46 = vld [vmem:[#allocation8 + $0x68] ss:$16 sps:$4 sm:$0xff]   ;;  %v469_v2 = vadd.f32 %v468_v54, %v165_v24 }
 0x15a   :  { %v494_v10 = vmax.f32 %v312_v5, 0.0  ;;  %v316_v11 = vadd.f32 %v315_v9, %v145_v47  ;;  %2296 = vmatpush1.bf16.msra.mxu1 %v3825_v63  ;;  %v483_v47 = vmax.f32 %v459_v32, 0.0  ;;  %v3854_v63 = vld [vmem:[#allocation8 + $0x424] ss:$16 sps:$4 sm:$0xff]   ;;  %v470_v9 = vpop.f32.mrb[5].mxu1 }
 0x15b   :  { %v501_v13 = vmax.f32 %v314_v8, 0.0  ;;  %2297 = vmatprep.subr.bf16.mxu1 %v3833_v3  ;;  %v3857_v3 = vld [vmem:[#allocation8 + $0xac] ss:$16 sps:$4 sm:$0xff]   ;;  %v4621_v8 = vpack.c.bf16 %v492_v59, %v484_v57  ;;  %v3860_v32 = vld [vmem:[#allocation8 + $0x444] ss:$16 sps:$4 sm:$0xff]  }
 0x15c   :  { %v502_v16 = vmax.f32 %v316_v11, 0.0  ;;  %v4615_v58 = vpack.c.bf16 %v491_v51, %v483_v47  ;;  %v3864_v57 = vld [vmem:[#allocation8 + $0x460] ss:$16 sps:$4 sm:$0xff]   ;;  %v3867_v59 = vld [vmem:[#allocation8 + $0xe8] ss:$16 sps:$4 sm:$0xff]  }
 0x15d   :  { %v4600_v19 = vpack.c.bf16 %v501_v13, %v493_v7  ;;  %v156_v7 = vsub.s32 4, %v4570_v42  ;;  %v471_v13 = vadd.f32 %v470_v9, %v169_v37  ;;  %v3873_v9 = vld [vmem:[#allocation8 + $0x108] ss:$16 sps:$4 sm:$0xff]  }
 0x15e   :  { %v4602_v21 = vpack.c.bf16 %v502_v16, %v494_v10  ;;  %2298 = vmatpush1.bf16.msra.mxu1 %v3831_v12  ;;  %v352_v22 = vpop.f32.mrb[8].mxu0  ;;  %v160_v12 = vsub.s32 5, %v4570_v42 }
 0x15f   :  { %v353_v25 = vadd.f32 %v352_v22, %v4592_v14  ;;  %v354_v26 = vpop.f32.mrb[9].mxu0  ;;  %2299 = vmatprep.subr.bf16.mxu1 %v3839_v15  ;;  %v472_v15 = vpop.f32.mrb[6].mxu1  ;;  %v499_v22 = vmax.f32 %v469_v2, 0.0  ;;  %v3875_v2 = vld [vmem:[#allocation8 + $0x10c] ss:$16 sps:$4 sm:$0xff]  }
 0x160   :  { %v355_v30 = vadd.f32 %v354_v26, %v4597_v17  ;;  %v356_v31 = vpop.f32.mrb[10].mxu0  ;;  %2125 = vmatprep.mubr.bf16.mxu1 %v4602_v21  ;;  %v3852_v26 = vld [vmem:[#allocation8 + $0x420] ss:$16 sps:$4 sm:$0xff]  }
 0x161   :  { %v479_v34 = vmax.f32 %v353_v25, 0.0  ;;  %v357_v35 = vadd.f32 %v356_v31, %v4592_v14  ;;  %v358_v36 = vpop.f32.mrb[11].mxu0  ;;  %2126 = vmatmul.mubr.bf16.gmra.mrb[12].mxu1 %v4600_v19  ;;  %v474_v25 = vpop.f32.mrb[7].mxu1 }
 0x162   :  { %v480_v40 = vmax.f32 %v355_v30, 0.0  ;;  %v359_v41 = vadd.f32 %v358_v36, %v4597_v17  ;;  %2300 = vmatpush1.bf16.msra.mxu1 %v3837_v23  ;;  %2327 = vmatprep.mubr.bf16.mxu1 %v510_v61  ;;  %v3849_v61 = vld [vmem:[#allocation8 + $0x88] ss:$16 sps:$4 sm:$0xff]   ;;  %v473_v23 = vadd.f32 %v472_v15, %v165_v24  ;;  %v500_v30 = vmax.f32 %v471_v13, 0.0  ;;  %v3881_v13 = vld [vmem:[#allocation8 + $0x12c] ss:$16 sps:$4 sm:$0xff]  }
 0x163   :  { %v487_v48 = vmax.f32 %v357_v35, 0.0  ;;  %2301 = vmatprep.subr.bf16.mxu1 %v3845_v27  ;;  %v3855_v27 = vld [vmem:[#allocation8 + $0xa8] ss:$16 sps:$4 sm:$0xff]   ;;  %v475_v31 = vadd.f32 %v474_v25, %v169_v37  ;;  %v161_v24 = vrot.slane %v4575_v44, %v160_v12  ;;  %v3878_v12 = vld [vmem:[#allocation8 + $0x4a4] ss:$16 sps:$4 sm:$0xff]  }
 0x164   :  { %v488_v53 = vmax.f32 %v359_v41, 0.0  ;;  %v507_v35 = vmax.f32 %v473_v23, 0.0  ;;  %v3861_v37 = vld [vmem:[#allocation8 + $0xc8] ss:$16 sps:$4 sm:$0xff]  }
 0x165   :  { %v4613_v55 = vpack.c.bf16 %v487_v48, %v479_v34  ;;  %v508_v38 = vmax.f32 %v475_v31, 0.0  ;;  %v3866_v48 = vld [vmem:[#allocation8 + $0x464] ss:$16 sps:$4 sm:$0xff]   ;;  %v3887_v31 = vld [vmem:[#allocation8 + $0x14c] ss:$16 sps:$4 sm:$0xff]  }
 0x166   :  { %v4617_v62 = vpack.c.bf16 %v488_v53, %v480_v40  ;;  %2302 = vmatpush1.bf16.msra.mxu1 %v3843_v46  ;;  %v362_v1 = vpop.f32.mrb[12].mxu0  ;;  %v4633_v40 = vpack.c.bf16 %v507_v35, %v499_v22  ;;  %v3882_v35 = vld [vmem:[#allocation8 + $0x4c0] ss:$16 sps:$4 sm:$0xff]  }
 0x167   :  { %2303 = vmatprep.subr.bf16.mxu1 %v3851_v49  ;;  %v363_v5 = vadd.f32 %v362_v1, %v4592_v14  ;;  %v364_v0 = vpop.f32.mrb[13].mxu0  ;;  %v4637_v47 = vpack.c.bf16 %v508_v38, %v500_v30  ;;  %v3869_v49 = vld [vmem:[#allocation8 + $0xec] ss:$16 sps:$4 sm:$0xff]   ;;  %v3872_v1 = vld [vmem:[#allocation8 + $0x484] ss:$16 sps:$4 sm:$0xff]  }
 0x168   :  { %2168 = vmatprep.mubr.bf16.mxu0 %v4617_v62  ;;  %v365_v10 = vadd.f32 %v364_v0, %v4597_v17  ;;  %v366_v11 = vpop.f32.mrb[14].mxu0  ;;  %v3884_v30 = vld [vmem:[#allocation8 + $0x4c4] ss:$16 sps:$4 sm:$0xff]  }
 0x169   :  { %2169 = vmatmul.mubr.bf16.vlgmr.msra.gmra.mrb[24].mxu0 %v4613_v55  ;;  %v495_v16 = vmax.f32 %v363_v5, 0.0  ;;  %v367_v18 = vadd.f32 %v366_v11, %v4592_v14  ;;  %v368_v20 = vpop.f32.mrb[15].mxu0  ;;  %v157_v14 = vrot.slane %v4575_v44, %v156_v7  ;;  %v3870_v7 = vld [vmem:[#allocation8 + $0x480] ss:$16 sps:$4 sm:$0xff]   ;;  %v3890_v38 = vld [vmem:[#allocation8 + $0x4e4] ss:$16 sps:$4 sm:$0xff]  }
 0x16a   :  { %2190 = vmatpush1.bf16.msra.mxu0 %v3846_v56  ;;  %2304 = vmatpush1.bf16.msra.mxu1 %v3849_v61  ;;  %v496_v28 = vmax.f32 %v365_v10, 0.0  ;;  %v369_v29 = vadd.f32 %v368_v20, %v4597_v17  ;;  %v3858_v17 = vld [vmem:[#allocation8 + $0x440] ss:$16 sps:$4 sm:$0xff]  }
 0x16b   :  { %2191 = vmatprep.subr.bf16.mxu0 %v3854_v63  ;;  %2305 = vmatprep.subr.bf16.mxu1 %v3857_v3  ;;  %v503_v34 = vmax.f32 %v367_v18, 0.0 }
 0x16c   :  { %v504_v36 = vmax.f32 %v369_v29, 0.0 }
 0x16d   :  { %v4631_v39 = vpack.c.bf16 %v503_v34, %v495_v16 }
 0x16e   :  { %2192 = vmatpush1.bf16.msra.mxu0 %v3852_v26  ;;  %2306 = vmatpush1.bf16.msra.mxu1 %v3855_v27  ;;  %v4635_v41 = vpack.c.bf16 %v504_v36, %v496_v28  ;;  %v405_v46 = vpop.f32.mrb[16].mxu0  ;;  %v3876_v26 = vld [vmem:[#allocation8 + $0x4a0] ss:$16 sps:$4 sm:$0xff]   ;;  %v3879_v27 = vld [vmem:[#allocation8 + $0x128] ss:$16 sps:$4 sm:$0xff]  }
 0x16f   :  { %2193 = vmatprep.subr.bf16.mxu0 %v3860_v32  ;;  %2307 = vmatprep.subr.bf16.mxu1 %v3863_v33  ;;  %v406_v50 = vadd.f32 %v405_v46, %v157_v14  ;;  %v407_v44 = vpop.f32.mrb[17].mxu0  ;;  %v3885_v36 = vld [vmem:[#allocation8 + $0x148] ss:$16 sps:$4 sm:$0xff]   ;;  %v3896_v46 = vld [vmem:[#allocation8 + $0x504] ss:$16 sps:$4 sm:$0xff]  }
 0x170   :  { %v408_v51 = vadd.f32 %v407_v44, %v161_v24  ;;  %v409_v52 = vpop.f32.mrb[18].mxu0  ;;  %2178 = vmatprep.mubr.bf16.mxu0 %v4635_v41  ;;  %v3902_v44 = vld [vmem:[#allocation8 + $0x524] ss:$16 sps:$4 sm:$0xff]  }
 0x171   :  { %v481_v53 = vmax.f32 %v406_v50, 0.0  ;;  %v410_v54 = vadd.f32 %v409_v52, %v157_v14  ;;  %v411_v56 = vpop.f32.mrb[19].mxu0  ;;  %2179 = vmatmul.mubr.bf16.gmra.mrb[28].mxu0 %v4631_v39  ;;  %v3897_v50 = vld [vmem:[#allocation8 + $0x188] ss:$16 sps:$4 sm:$0xff]   ;;  %v3900_v52 = vld [vmem:[#allocation8 + $0x520] ss:$16 sps:$4 sm:$0xff]  }
 0x172   :  { %2194 = vmatpush1.bf16.msra.mxu0 %v3858_v17  ;;  %2308 = vmatpush1.bf16.msra.mxu1 %v3861_v37  ;;  %v482_v61 = vmax.f32 %v408_v51, 0.0  ;;  %v412_v63 = vadd.f32 %v411_v56, %v161_v24  ;;  %v3893_v17 = vld [vmem:[#allocation8 + $0x16c] ss:$16 sps:$4 sm:$0xff]   ;;  %v3891_v37 = vld [vmem:[#allocation8 + $0x168] ss:$16 sps:$4 sm:$0xff]  }
 0x173   :  { %2195 = vmatprep.subr.bf16.mxu0 %v3866_v48  ;;  %2309 = vmatprep.subr.bf16.mxu1 %v3869_v49  ;;  %v489_v3 = vmax.f32 %v410_v54, 0.0  ;;  %v3899_v48 = vld [vmem:[#allocation8 + $0x18c] ss:$16 sps:$4 sm:$0xff]   ;;  %v3894_v49 = vld [vmem:[#allocation8 + $0x500] ss:$16 sps:$4 sm:$0xff]  }
 0x174   :  { %v490_v5 = vmax.f32 %v412_v63, 0.0  ;;  %v3905_v51 = vld [vmem:[#allocation8 + $0x1ac] ss:$16 sps:$4 sm:$0xff]   ;;  %v3908_v54 = vld [vmem:[#allocation8 + $0x544] ss:$16 sps:$4 sm:$0xff]  }
 0x175   :  { %v4641_v0 = vpack.c.bf16 %v489_v3, %v481_v53  ;;  %v3903_v53 = vld [vmem:[#allocation8 + $0x1a8] ss:$16 sps:$4 sm:$0xff]   ;;  %v3911_v56 = vld [vmem:[#allocation8 + $0x1cc] ss:$16 sps:$4 sm:$0xff]   ;;  %v3920_v3 = vld [vmem:[#allocation8 + $0x584] ss:$16 sps:$4 sm:$0xff]  }
 0x176   :  { %2196 = vmatpush1.bf16.msra.mxu0 %v3864_v57  ;;  %2310 = vmatpush1.bf16.msra.mxu1 %v3867_v59  ;;  %v4643_v10 = vpack.c.bf16 %v490_v5, %v482_v61  ;;  %v415_v11 = vpop.f32.mrb[20].mxu0  ;;  %v3906_v57 = vld [vmem:[#allocation8 + $0x540] ss:$16 sps:$4 sm:$0xff]   ;;  %v3909_v59 = vld [vmem:[#allocation8 + $0x1c8] ss:$16 sps:$4 sm:$0xff]  }
 0x177   :  { %2197 = vmatprep.subr.bf16.mxu0 %v3872_v1  ;;  %2311 = vmatprep.subr.bf16.mxu1 %v3875_v2  ;;  %v416_v15 = vadd.f32 %v415_v11, %v157_v14  ;;  %v417_v16 = vpop.f32.mrb[21].mxu0  ;;  %v3914_v61 = vld [vmem:[#allocation8 + $0x564] ss:$16 sps:$4 sm:$0xff]   ;;  %v3917_v63 = vld [vmem:[#allocation8 + $0x1ec] ss:$16 sps:$4 sm:$0xff]  }
 0x178   :  { %2221 = vmatprep.mubr.bf16.mxu0 %v4643_v10  ;;  %v418_v18 = vadd.f32 %v417_v16, %v161_v24  ;;  %v419_v20 = vpop.f32.mrb[22].mxu0  ;;  %v3912_v1 = vld [vmem:[#allocation8 + $0x560] ss:$16 sps:$4 sm:$0xff]   ;;  %v3915_v2 = vld [vmem:[#allocation8 + $0x1e8] ss:$16 sps:$4 sm:$0xff]  }
 0x179   :  { %v497_v22 = vmax.f32 %v416_v15, 0.0  ;;  %v420_v23 = vadd.f32 %v419_v20, %v157_v14  ;;  %v421_v25 = vpop.f32.mrb[23].mxu0  ;;  %v3923_v5 = vld [vmem:[#allocation8 + $0x20c] ss:$16 sps:$4 sm:$0xff]   ;;  %v3926_v11 = vld [vmem:[#allocation8 + $0x5a4] ss:$16 sps:$4 sm:$0xff]  }
 0x17a   :  { %2198 = vmatpush1.bf16.msra.mxu0 %v3870_v7  ;;  %2312 = vmatpush1.bf16.msra.mxu1 %v3873_v9  ;;  %v498_v28 = vmax.f32 %v418_v18, 0.0  ;;  %v422_v29 = vadd.f32 %v421_v25, %v161_v24  ;;  %v3888_v24 = vld [vmem:[#allocation8 + $0x4e0] ss:$16 sps:$4 sm:$0xff]   ;;  %v3921_v9 = vld [vmem:[#allocation8 + $0x208] ss:$16 sps:$4 sm:$0xff]  }
 0x17b   :  { %2199 = vmatprep.subr.bf16.mxu0 %v3878_v12  ;;  %2313 = vmatprep.subr.bf16.mxu1 %v3881_v13  ;;  %v505_v32 = vmax.f32 %v420_v23, 0.0  ;;  %v3918_v7 = vld [vmem:[#allocation8 + $0x580] ss:$16 sps:$4 sm:$0xff]   ;;  %v3929_v12 = vld [vmem:[#allocation8 + $0x22c] ss:$16 sps:$4 sm:$0xff]  }
 0x17c   :  { %v506_v33 = vmax.f32 %v422_v29, 0.0  ;;  %v3924_v13 = vld [vmem:[#allocation8 + $0x5a0] ss:$16 sps:$4 sm:$0xff]   ;;  %v3927_v15 = vld [vmem:[#allocation8 + $0x228] ss:$16 sps:$4 sm:$0xff]  }
 0x17d   :  { %v4646_v34 = vpack.c.bf16 %v505_v32, %v497_v22  ;;  %v3932_v16 = vld [vmem:[#allocation8 + $0x5c4] ss:$16 sps:$4 sm:$0xff]   ;;  %v3935_v18 = vld [vmem:[#allocation8 + $0x24c] ss:$16 sps:$4 sm:$0xff]   ;;  %v3930_v20 = vld [vmem:[#allocation8 + $0x5c0] ss:$16 sps:$4 sm:$0xff]  }
 0x17e   :  { %2200 = vmatpush1.bf16.msra.mxu0 %v3876_v26  ;;  %2314 = vmatpush1.bf16.msra.mxu1 %v3879_v27  ;;  %v4648_v14 = vpack.c.bf16 %v506_v33, %v498_v28  ;;  %v3933_v22 = vld [vmem:[#allocation8 + $0x248] ss:$16 sps:$4 sm:$0xff]   ;;  %v3938_v23 = vld [vmem:[#allocation8 + $0x5e4] ss:$16 sps:$4 sm:$0xff]   ;;  %v3941_v25 = vld [vmem:[#allocation8 + $0x26c] ss:$16 sps:$4 sm:$0xff]  }
 0x17f   :  { %2201 = vmatprep.subr.bf16.mxu0 %v3884_v30  ;;  %2315 = vmatprep.subr.bf16.mxu1 %v3887_v31  ;;  %v3944_v26 = vld [vmem:[#allocation8 + $0x604] ss:$16 sps:$4 sm:$0xff]   ;;  %v3947_v27 = vld [vmem:[#allocation8 + $0x28c] ss:$16 sps:$4 sm:$0xff]   ;;  %v3942_v28 = vld [vmem:[#allocation8 + $0x600] ss:$16 sps:$4 sm:$0xff]  }
 0x180   :  { %v3945_v29 = vld [vmem:[#allocation8 + $0x288] ss:$16 sps:$4 sm:$0xff]   ;;  %v3950_v30 = vld [vmem:[#allocation8 + $0x624] ss:$16 sps:$4 sm:$0xff]   ;;  %v3953_v31 = vld [vmem:[#allocation8 + $0x2ac] ss:$16 sps:$4 sm:$0xff]  }
 0x181   :  { %v3956_v32 = vld [vmem:[#allocation8 + $0x644] ss:$16 sps:$4 sm:$0xff]   ;;  %v3959_v33 = vld [vmem:[#allocation8 + $0x2cc] ss:$16 sps:$4 sm:$0xff]  }
 0x182   :  { %2202 = vmatpush1.bf16.msra.mxu0 %v3882_v35  ;;  %2316 = vmatpush1.bf16.msra.mxu1 %v3885_v36  ;;  %v3954_v35 = vld [vmem:[#allocation8 + $0x640] ss:$16 sps:$4 sm:$0xff]   ;;  %v3957_v36 = vld [vmem:[#allocation8 + $0x2c8] ss:$16 sps:$4 sm:$0xff]  }
 0x183   :  { %2203 = vmatprep.subr.bf16.mxu0 %v3890_v38  ;;  %2317 = vmatprep.subr.bf16.mxu1 %v3893_v17  ;;  %v3962_v38 = vld [vmem:[#allocation8 + $0x664] ss:$16 sps:$4 sm:$0xff]   ;;  %v3965_v17 = vld [vmem:[#allocation8 + $0x2ec] ss:$16 sps:$4 sm:$0xff]  }
 0x186   :  { %2204 = vmatpush1.bf16.msra.mxu0 %v3888_v24  ;;  %2318 = vmatpush1.bf16.msra.mxu1 %v3891_v37  ;;  %v3960_v24 = vld [vmem:[#allocation8 + $0x660] ss:$16 sps:$4 sm:$0xff]   ;;  %v3963_v37 = vld [vmem:[#allocation8 + $0x2e8] ss:$16 sps:$4 sm:$0xff]  }
 0x187   :  { %2205 = vmatprep.subr.bf16.mxu0 %v3896_v46  ;;  %2319 = vmatprep.subr.bf16.mxu1 %v3899_v48  ;;  %v3968_v46 = vld [vmem:[#allocation8 + $0x684] ss:$16 sps:$4 sm:$0xff]   ;;  %v3971_v48 = vld [vmem:[#allocation8 + $0x30c] ss:$16 sps:$4 sm:$0xff]  }
 0x18a   :  { %2206 = vmatpush1.bf16.msra.mxu0 %v3894_v49  ;;  %2320 = vmatpush1.bf16.msra.mxu1 %v3897_v50  ;;  %v3966_v49 = vld [vmem:[#allocation8 + $0x680] ss:$16 sps:$4 sm:$0xff]   ;;  %v3969_v50 = vld [vmem:[#allocation8 + $0x308] ss:$16 sps:$4 sm:$0xff]  }
 0x18b   :  { %2207 = vmatprep.subr.bf16.mxu0 %v3902_v44  ;;  %2321 = vmatprep.subr.bf16.mxu1 %v3905_v51  ;;  %v3974_v44 = vld [vmem:[#allocation8 + $0x6a4] ss:$16 sps:$4 sm:$0xff]   ;;  %v3977_v51 = vld [vmem:[#allocation8 + $0x32c] ss:$16 sps:$4 sm:$0xff]  }
 0x18e   :  { %2208 = vmatpush1.bf16.msra.mxu0 %v3900_v52  ;;  %2322 = vmatpush1.bf16.msra.mxu1 %v3903_v53  ;;  %v3972_v52 = vld [vmem:[#allocation8 + $0x6a0] ss:$16 sps:$4 sm:$0xff]   ;;  %v3975_v53 = vld [vmem:[#allocation8 + $0x328] ss:$16 sps:$4 sm:$0xff]  }
 0x18f   :  { %2209 = vmatprep.subr.bf16.mxu0 %v3908_v54  ;;  %2323 = vmatprep.subr.bf16.mxu1 %v3911_v56  ;;  %v3980_v54 = vld [vmem:[#allocation8 + $0x6c4] ss:$16 sps:$4 sm:$0xff]   ;;  %v3983_v56 = vld [vmem:[#allocation8 + $0x34c] ss:$16 sps:$4 sm:$0xff]  }
 0x192   :  { %2210 = vmatpush1.bf16.msra.mxu0 %v3906_v57  ;;  %2324 = vmatpush1.bf16.msra.mxu1 %v3909_v59  ;;  %v3978_v57 = vld [vmem:[#allocation8 + $0x6c0] ss:$16 sps:$4 sm:$0xff]   ;;  %v3981_v59 = vld [vmem:[#allocation8 + $0x348] ss:$16 sps:$4 sm:$0xff]  }
 0x193   :  { %2211 = vmatprep.subr.bf16.mxu0 %v3914_v61  ;;  %2325 = vmatprep.subr.bf16.mxu1 %v3917_v63  ;;  %v3986_v61 = vld [vmem:[#allocation8 + $0x6e4] ss:$16 sps:$4 sm:$0xff]   ;;  %v3989_v63 = vld [vmem:[#allocation8 + $0x36c] ss:$16 sps:$4 sm:$0xff]  }
 0x196   :  { %2212 = vmatpush1.bf16.msra.mxu0 %v3912_v1  ;;  %2326 = vmatpush1.bf16.msra.mxu1 %v3915_v2  ;;  %v3984_v1 = vld [vmem:[#allocation8 + $0x6e0] ss:$16 sps:$4 sm:$0xff]   ;;  %v3987_v2 = vld [vmem:[#allocation8 + $0x368] ss:$16 sps:$4 sm:$0xff]  }
 0x197   :  { %2213 = vmatprep.subr.bf16.mxu0 %v3920_v3  ;;  %2348 = vmatprep.subr.bf16.mxu1 %v3923_v5  ;;  %v3992_v3 = vld [vmem:[#allocation8 + $0x704] ss:$16 sps:$4 sm:$0xff]   ;;  %v3995_v5 = vld [vmem:[#allocation8 + $0x38c] ss:$16 sps:$4 sm:$0xff]  }
 0x199   :  { %2328 = vmatmul.mubr.bf16.vlgmr.msra.gmra.mrb[16].mxu1 %v4584_v60  ;;  %v3936_v60 = vld [vmem:[#allocation8 + $0x5e0] ss:$16 sps:$4 sm:$0xff]  }
 0x19a   :  { %2214 = vmatpush1.bf16.msra.mxu0 %v3918_v7  ;;  %2337 = vmatprep.mubr.bf16.mxu1 %v4602_v21  ;;  %v3939_v21 = vld [vmem:[#allocation8 + $0x268] ss:$16 sps:$4 sm:$0xff]   ;;  %v3990_v7 = vld [vmem:[#allocation8 + $0x700] ss:$16 sps:$4 sm:$0xff]  }
 0x19b   :  { %2349 = vmatpush1.bf16.msra.mxu1 %v3921_v9  ;;  %2215 = vmatprep.subr.bf16.mxu0 %v3926_v11  ;;  %v3993_v9 = vld [vmem:[#allocation8 + $0x388] ss:$16 sps:$4 sm:$0xff]   ;;  %v3998_v11 = vld [vmem:[#allocation8 + $0x724] ss:$16 sps:$4 sm:$0xff]  }
 0x19c   :  { %2350 = vmatprep.subr.bf16.mxu1 %v3929_v12  ;;  %v4001_v12 = vld [vmem:[#allocation8 + $0x3ac] ss:$16 sps:$4 sm:$0xff]  }
 0x19e   :  { %2216 = vmatpush1.bf16.msra.mxu0 %v3924_v13  ;;  %v3996_v13 = vld [vmem:[#allocation8 + $0x720] ss:$16 sps:$4 sm:$0xff]  }
 0x19f   :  { %2351 = vmatpush1.bf16.msra.mxu1 %v3927_v15  ;;  %2217 = vmatprep.subr.bf16.mxu0 %v3932_v16  ;;  %v3999_v15 = vld [vmem:[#allocation8 + $0x3a8] ss:$16 sps:$4 sm:$0xff]   ;;  %v4004_v16 = vld [vmem:[#allocation8 + $0x744] ss:$16 sps:$4 sm:$0xff]  }
 0x1a0   :  { %2352 = vmatprep.subr.bf16.mxu1 %v3935_v18  ;;  %v4007_v18 = vld [vmem:[#allocation8 + $0x3cc] ss:$16 sps:$4 sm:$0xff]  }
 0x1a1   :  { %2338 = vmatmul.mubr.bf16.gmra.mrb[20].mxu1 %v4600_v19  ;;  %v3948_v19 = vld [vmem:[#allocation8 + $0x620] ss:$16 sps:$4 sm:$0xff]  }
 0x1a2   :  { %2218 = vmatpush1.bf16.msra.mxu0 %v3930_v20  ;;  %2380 = vmatprep.mubr.bf16.mxu1 %v4617_v62  ;;  %v3951_v62 = vld [vmem:[#allocation8 + $0x2a8] ss:$16 sps:$4 sm:$0xff]   ;;  %v4002_v20 = vld [vmem:[#allocation8 + $0x740] ss:$16 sps:$4 sm:$0xff]  }
 0x1a3   :  { %2353 = vmatpush1.bf16.msra.mxu1 %v3933_v22  ;;  %2219 = vmatprep.subr.bf16.mxu0 %v3938_v23  ;;  %v4005_v22 = vld [vmem:[#allocation8 + $0x3c8] ss:$16 sps:$4 sm:$0xff]   ;;  %v4010_v23 = vld [vmem:[#allocation8 + $0x764] ss:$16 sps:$4 sm:$0xff]  }
 0x1a4   :  { %2354 = vmatprep.subr.bf16.mxu1 %v3941_v25  ;;  %v4013_v25 = vld [vmem:[#allocation8 + $0x3ec] ss:$16 sps:$4 sm:$0xff]  }
 0x1a6   :  { %2220 = vmatpush1.bf16.msra.mxu0 %v3936_v60  ;;  %v4008_v60 = vld [vmem:[#allocation8 + $0x760] ss:$16 sps:$4 sm:$0xff]  }
 0x1a7   :  { %2355 = vmatpush1.bf16.msra.mxu1 %v3939_v21  ;;  %2242 = vmatprep.subr.bf16.mxu0 %v3944_v26  ;;  %v4011_v21 = vld [vmem:[#allocation8 + $0x3e8] ss:$16 sps:$4 sm:$0xff]   ;;  %v4016_v26 = vld [vmem:[#allocation8 + $0x784] ss:$16 sps:$4 sm:$0xff]  }
 0x1a8   :  { %2356 = vmatprep.subr.bf16.mxu1 %v3947_v27  ;;  %v4019_v27 = vld [vmem:[#allocation8 + $0x40c] ss:$16 sps:$4 sm:$0xff]  }
 0x1a9   :  { %2222 = vmatmul.mubr.bf16.vlgmr.msra.gmra.mrb[24].mxu0 %v4641_v0 }
 0x1aa   :  { %2243 = vmatpush1.bf16.msra.mxu0 %v3942_v28  ;;  %2231 = vmatprep.mubr.bf16.mxu0 %v4648_v14  ;;  %v4014_v28 = vld [vmem:[#allocation8 + $0x780] ss:$16 sps:$4 sm:$0xff]  }
 0x1ab   :  { %2357 = vmatpush1.bf16.msra.mxu1 %v3945_v29  ;;  %2244 = vmatprep.subr.bf16.mxu0 %v3950_v30  ;;  %v4017_v29 = vld [vmem:[#allocation8 + $0x408] ss:$16 sps:$4 sm:$0xff]   ;;  %v4022_v30 = vld [vmem:[#allocation8 + $0x7a4] ss:$16 sps:$4 sm:$0xff]  }
 0x1ac   :  { %2358 = vmatprep.subr.bf16.mxu1 %v3953_v31  ;;  %v4025_v31 = vld [vmem:[#allocation8 + $0x42c] ss:$16 sps:$4 sm:$0xff]  }
 0x1ae   :  { %2245 = vmatpush1.bf16.msra.mxu0 %v3948_v19  ;;  %v4020_v19 = vld [vmem:[#allocation8 + $0x7a0] ss:$16 sps:$4 sm:$0xff]  }
 0x1af   :  { %2359 = vmatpush1.bf16.msra.mxu1 %v3951_v62  ;;  %2246 = vmatprep.subr.bf16.mxu0 %v3956_v32  ;;  %v4023_v62 = vld [vmem:[#allocation8 + $0x428] ss:$16 sps:$4 sm:$0xff]   ;;  %v4028_v32 = vld [vmem:[#allocation8 + $0x7c4] ss:$16 sps:$4 sm:$0xff]  }
 0x1b0   :  { %2360 = vmatprep.subr.bf16.mxu1 %v3959_v33  ;;  %v4031_v33 = vld [vmem:[#allocation8 + $0x44c] ss:$16 sps:$4 sm:$0xff]  }
 0x1b1   :  { %2232 = vmatmul.mubr.bf16.gmra.mrb[28].mxu0 %v4646_v34 }
 0x1b2   :  { %2247 = vmatpush1.bf16.msra.mxu0 %v3954_v35  ;;  %2274 = vmatprep.mubr.bf16.mxu0 %v4621_v8  ;;  %v4026_v35 = vld [vmem:[#allocation8 + $0x7c0] ss:$16 sps:$4 sm:$0xff]  }
 0x1b3   :  { %2361 = vmatpush1.bf16.msra.mxu1 %v3957_v36  ;;  %2248 = vmatprep.subr.bf16.mxu0 %v3962_v38  ;;  %v4029_v36 = vld [vmem:[#allocation8 + $0x448] ss:$16 sps:$4 sm:$0xff]   ;;  %v4034_v38 = vld [vmem:[#allocation8 + $0x7e4] ss:$16 sps:$4 sm:$0xff]  }
 0x1b4   :  { %2362 = vmatprep.subr.bf16.mxu1 %v3965_v17  ;;  %v4037_v17 = vld [vmem:[#allocation8 + $0x46c] ss:$16 sps:$4 sm:$0xff]  }
 0x1b6   :  { %2249 = vmatpush1.bf16.msra.mxu0 %v3960_v24  ;;  %v4124_v24 = vld [vmem:[#allocation10 + $0x4] ss:$8 sps:$4 sm:$0xff]  }
 0x1b7   :  { %2363 = vmatpush1.bf16.msra.mxu1 %v3963_v37  ;;  %2250 = vmatprep.subr.bf16.mxu0 %v3968_v46  ;;  %v4040_v37 = vld [vmem:[#allocation8 + $0x48c] ss:$16 sps:$4 sm:$0xff]   ;;  %v4122_v46 = vld [vmem:[#allocation10] ss:$8 sps:$4 sm:$0xff]  }
 0x1b8   :  { %2364 = vmatprep.subr.bf16.mxu1 %v3971_v48  ;;  %v4038_v48 = vld [vmem:[#allocation8 + $0x488] ss:$16 sps:$4 sm:$0xff]  }
 0x1ba   :  { %2251 = vmatpush1.bf16.msra.mxu0 %v3966_v49  ;;  %v4127_v49 = vld [vmem:[#allocation10 + $0x14] ss:$8 sps:$4 sm:$0xff]  }
 0x1bb   :  { %2365 = vmatpush1.bf16.msra.mxu1 %v3969_v50  ;;  %2252 = vmatprep.subr.bf16.mxu0 %v3974_v44  ;;  %v4043_v50 = vld [vmem:[#allocation8 + $0x4ac] ss:$16 sps:$4 sm:$0xff]  }
 0x1bc   :  { %2366 = vmatprep.subr.bf16.mxu1 %v3977_v51  ;;  %v4130_v44 = vld [vmem:[#allocation10 + $0x24] ss:$8 sps:$4 sm:$0xff]  }
 0x1bd   :  { %v4046_v51 = vld [vmem:[#allocation8 + $0x4cc] ss:$16 sps:$4 sm:$0xff]  }
 0x1be   :  { %2253 = vmatpush1.bf16.msra.mxu0 %v3972_v52  ;;  %v4128_v52 = vld [vmem:[#allocation10 + $0x20] ss:$8 sps:$4 sm:$0xff]  }
 0x1bf   :  { %2367 = vmatpush1.bf16.msra.mxu1 %v3975_v53  ;;  %2254 = vmatprep.subr.bf16.mxu0 %v3980_v54  ;;  %v4044_v53 = vld [vmem:[#allocation8 + $0x4c8] ss:$16 sps:$4 sm:$0xff]   ;;  %v4133_v54 = vld [vmem:[#allocation10 + $0x34] ss:$8 sps:$4 sm:$0xff]  }
 0x1c0   :  { %2368 = vmatprep.subr.bf16.mxu1 %v3983_v56  ;;  %v4049_v56 = vld [vmem:[#allocation8 + $0x4ec] ss:$16 sps:$4 sm:$0xff]  }
 0x1c2   :  { %2255 = vmatpush1.bf16.msra.mxu0 %v3978_v57  ;;  %v4131_v57 = vld [vmem:[#allocation10 + $0x30] ss:$8 sps:$4 sm:$0xff]  }
 0x1c3   :  { %2369 = vmatpush1.bf16.msra.mxu1 %v3981_v59  ;;  %2256 = vmatprep.subr.bf16.mxu0 %v3986_v61  ;;  %v4047_v59 = vld [vmem:[#allocation8 + $0x4e8] ss:$16 sps:$4 sm:$0xff]   ;;  %v4136_v61 = vld [vmem:[#allocation10 + $0x44] ss:$8 sps:$4 sm:$0xff]  }
 0x1c4   :  { %2370 = vmatprep.subr.bf16.mxu1 %v3989_v63  ;;  %v4052_v63 = vld [vmem:[#allocation8 + $0x50c] ss:$16 sps:$4 sm:$0xff]  }
 0x1c6   :  { %2257 = vmatpush1.bf16.msra.mxu0 %v3984_v1  ;;  %v4134_v1 = vld [vmem:[#allocation10 + $0x40] ss:$8 sps:$4 sm:$0xff]  }
 0x1c7   :  { %2371 = vmatpush1.bf16.msra.mxu1 %v3987_v2  ;;  %2258 = vmatprep.subr.bf16.mxu0 %v3992_v3  ;;  %v4050_v2 = vld [vmem:[#allocation8 + $0x508] ss:$16 sps:$4 sm:$0xff]   ;;  %v4139_v3 = vld [vmem:[#allocation10 + $0x54] ss:$8 sps:$4 sm:$0xff]  }
 0x1c8   :  { %2372 = vmatprep.subr.bf16.mxu1 %v3995_v5  ;;  %v4055_v5 = vld [vmem:[#allocation8 + $0x52c] ss:$16 sps:$4 sm:$0xff]  }
 0x1ca   :  { %2259 = vmatpush1.bf16.msra.mxu0 %v3990_v7  ;;  %v4137_v7 = vld [vmem:[#allocation10 + $0x50] ss:$8 sps:$4 sm:$0xff]  }
 0x1cb   :  { %2373 = vmatpush1.bf16.msra.mxu1 %v3993_v9  ;;  %2260 = vmatprep.subr.bf16.mxu0 %v3998_v11  ;;  %v4053_v9 = vld [vmem:[#allocation8 + $0x528] ss:$16 sps:$4 sm:$0xff]   ;;  %v4142_v11 = vld [vmem:[#allocation10 + $0x64] ss:$8 sps:$4 sm:$0xff]  }
 0x1cc   :  { %2374 = vmatprep.subr.bf16.mxu1 %v4001_v12  ;;  %v4058_v12 = vld [vmem:[#allocation8 + $0x54c] ss:$16 sps:$4 sm:$0xff]  }
 0x1ce   :  { %2261 = vmatpush1.bf16.msra.mxu0 %v3996_v13  ;;  %v4140_v13 = vld [vmem:[#allocation10 + $0x60] ss:$8 sps:$4 sm:$0xff]  }
 0x1cf   :  { %2375 = vmatpush1.bf16.msra.mxu1 %v3999_v15  ;;  %2262 = vmatprep.subr.bf16.mxu0 %v4004_v16  ;;  %v4056_v15 = vld [vmem:[#allocation8 + $0x548] ss:$16 sps:$4 sm:$0xff]   ;;  %v4145_v16 = vld [vmem:[#allocation10 + $0x74] ss:$8 sps:$4 sm:$0xff]  }
 0x1d0   :  { %2376 = vmatprep.subr.bf16.mxu1 %v4007_v18  ;;  %v4061_v18 = vld [vmem:[#allocation8 + $0x56c] ss:$16 sps:$4 sm:$0xff]  }
 0x1d2   :  { %2263 = vmatpush1.bf16.msra.mxu0 %v4002_v20  ;;  %v4143_v20 = vld [vmem:[#allocation10 + $0x70] ss:$8 sps:$4 sm:$0xff]  }
 0x1d3   :  { %2377 = vmatpush1.bf16.msra.mxu1 %v4005_v22  ;;  %2264 = vmatprep.subr.bf16.mxu0 %v4010_v23  ;;  %v4059_v22 = vld [vmem:[#allocation8 + $0x568] ss:$16 sps:$4 sm:$0xff]   ;;  %v4148_v23 = vld [vmem:[#allocation10 + $0x84] ss:$8 sps:$4 sm:$0xff]  }
 0x1d4   :  { %2378 = vmatprep.subr.bf16.mxu1 %v4013_v25  ;;  %v4064_v25 = vld [vmem:[#allocation8 + $0x58c] ss:$16 sps:$4 sm:$0xff]  }
 0x1d6   :  { %2265 = vmatpush1.bf16.msra.mxu0 %v4008_v60  ;;  %v4146_v60 = vld [vmem:[#allocation10 + $0x80] ss:$8 sps:$4 sm:$0xff]  }
 0x1d7   :  { %2379 = vmatpush1.bf16.msra.mxu1 %v4011_v21  ;;  %2266 = vmatprep.subr.bf16.mxu0 %v4016_v26  ;;  %v4062_v21 = vld [vmem:[#allocation8 + $0x588] ss:$16 sps:$4 sm:$0xff]   ;;  %v4151_v26 = vld [vmem:[#allocation10 + $0x94] ss:$8 sps:$4 sm:$0xff]  }
 0x1d8   :  { %2401 = vmatprep.subr.bf16.mxu1 %v4019_v27  ;;  %v4067_v27 = vld [vmem:[#allocation8 + $0x5ac] ss:$16 sps:$4 sm:$0xff]  }
 0x1da   :  { %2381 = vmatmul.mubr.bf16.vlgmr.msra.gmra.mrb[16].mxu1 %v4613_v55  ;;  %2267 = vmatpush1.bf16.msra.mxu0 %v4014_v28  ;;  %v4032_v55 = vld [vmem:[#allocation8 + $0x7e0] ss:$16 sps:$4 sm:$0xff]  }
 0x1db   :  { %2390 = vmatprep.mubr.bf16.mxu1 %v4635_v41  ;;  %2402 = vmatpush1.bf16.msra.mxu1 %v4017_v29  ;;  %v4035_v41 = vld [vmem:[#allocation8 + $0x468] ss:$16 sps:$4 sm:$0xff]  }
 0x1dc   :  { %2268 = vmatprep.subr.bf16.mxu0 %v4022_v30  ;;  %2403 = vmatprep.subr.bf16.mxu1 %v4025_v31  ;;  %v4149_v28 = vld [vmem:[#allocation10 + $0x90] ss:$8 sps:$4 sm:$0xff]   ;;  %v4154_v30 = vld [vmem:[#allocation10 + $0xa4] ss:$8 sps:$4 sm:$0xff]  }
 0x1dd   :  { %v4065_v29 = vld [vmem:[#allocation8 + $0x5a8] ss:$16 sps:$4 sm:$0xff]   ;;  %v4070_v31 = vld [vmem:[#allocation8 + $0x5cc] ss:$16 sps:$4 sm:$0xff]  }
 0x1de   :  { %2269 = vmatpush1.bf16.msra.mxu0 %v4020_v19  ;;  %v4152_v19 = vld [vmem:[#allocation10 + $0xa0] ss:$8 sps:$4 sm:$0xff]  }
 0x1df   :  { %2404 = vmatpush1.bf16.msra.mxu1 %v4023_v62  ;;  %2270 = vmatprep.subr.bf16.mxu0 %v4028_v32  ;;  %v4068_v62 = vld [vmem:[#allocation8 + $0x5c8] ss:$16 sps:$4 sm:$0xff]   ;;  %v4157_v32 = vld [vmem:[#allocation10 + $0xb4] ss:$8 sps:$4 sm:$0xff]  }
 0x1e0   :  { %2405 = vmatprep.subr.bf16.mxu1 %v4031_v33  ;;  %v4073_v33 = vld [vmem:[#allocation8 + $0x5ec] ss:$16 sps:$4 sm:$0xff]  }
 0x1e2   :  { %2391 = vmatmul.mubr.bf16.gmra.mrb[20].mxu1 %v4631_v39  ;;  %2271 = vmatpush1.bf16.msra.mxu0 %v4026_v35  ;;  %v4125_v39 = vld [vmem:[#allocation10 + $0x10] ss:$8 sps:$4 sm:$0xff]  }
 0x1e3   :  { %2406 = vmatpush1.bf16.msra.mxu1 %v4029_v36  ;;  %2433 = vmatprep.mubr.bf16.mxu1 %v4643_v10  ;;  %v4041_v10 = vld [vmem:[#allocation8 + $0x4a8] ss:$16 sps:$4 sm:$0xff]  }
 0x1e4   :  { %2272 = vmatprep.subr.bf16.mxu0 %v4034_v38  ;;  %2407 = vmatprep.subr.bf16.mxu1 %v4037_v17  ;;  %v4155_v35 = vld [vmem:[#allocation10 + $0xb0] ss:$8 sps:$4 sm:$0xff]   ;;  %v4160_v38 = vld [vmem:[#allocation10 + $0xc4] ss:$8 sps:$4 sm:$0xff]  }
 0x1e5   :  { %v4071_v36 = vld [vmem:[#allocation8 + $0x5e8] ss:$16 sps:$4 sm:$0xff]   ;;  %v4076_v17 = vld [vmem:[#allocation8 + $0x60c] ss:$16 sps:$4 sm:$0xff]  }
 0x1e6   :  { %2273 = vmatpush1.bf16.msra.mxu0 %v4032_v55  ;;  %v4158_v55 = vld [vmem:[#allocation10 + $0xc0] ss:$8 sps:$4 sm:$0xff]  }
 0x1e7   :  { %2408 = vmatpush1.bf16.msra.mxu1 %v4035_v41  ;;  %2927 = vmatprep.subr.bf16.mxu0 %v4124_v24  ;;  %v4074_v41 = vld [vmem:[#allocation8 + $0x608] ss:$16 sps:$4 sm:$0xff]   ;;  %v4079_v24 = vld [vmem:[#allocation8 + $0x62c] ss:$16 sps:$4 sm:$0xff]  }
 0x1e8   :  { %2409 = vmatprep.subr.bf16.mxu1 %v4040_v37  ;;  %v4163_v37 = vld [vmem:[#allocation10 + $0xd4] ss:$8 sps:$4 sm:$0xff]  }
 0x1e9   :  { %2275 = vmatmul.mubr.bf16.vlgmr.msra.gmra.mrb[24].mxu0 %v4615_v58 }
 0x1ea   :  { %2284 = vmatprep.mubr.bf16.mxu0 %v4637_v47  ;;  %2928 = vmatpush1.bf16.msra.mxu0 %v4122_v46  ;;  %v4161_v46 = vld [vmem:[#allocation10 + $0xd0] ss:$8 sps:$4 sm:$0xff]  }
 0x1eb   :  { %2410 = vmatpush1.bf16.msra.mxu1 %v4038_v48  ;;  %2929 = vmatprep.subr.bf16.mxu0 %v4127_v49  ;;  %v4077_v48 = vld [vmem:[#allocation8 + $0x628] ss:$16 sps:$4 sm:$0xff]   ;;  %v4082_v49 = vld [vmem:[#allocation8 + $0x64c] ss:$16 sps:$4 sm:$0xff]  }
 0x1ec   :  { %2411 = vmatprep.subr.bf16.mxu1 %v4043_v50  ;;  %v4080_v50 = vld [vmem:[#allocation8 + $0x648] ss:$16 sps:$4 sm:$0xff]  }
 0x1ee   :  { %2930 = vmatpush1.bf16.msra.mxu0 %v4125_v39  ;;  %v4085_v39 = vld [vmem:[#allocation8 + $0x66c] ss:$16 sps:$4 sm:$0xff]  }
 0x1ef   :  { %2412 = vmatpush1.bf16.msra.mxu1 %v4041_v10  ;;  %2931 = vmatprep.subr.bf16.mxu0 %v4130_v44  ;;  %v4088_v10 = vld [vmem:[#allocation8 + $0x68c] ss:$16 sps:$4 sm:$0xff]  }
 0x1f0   :  { %2413 = vmatprep.subr.bf16.mxu1 %v4046_v51  ;;  %v4091_v44 = vld [vmem:[#allocation8 + $0x6ac] ss:$16 sps:$4 sm:$0xff]   ;;  %v4089_v51 = vld [vmem:[#allocation8 + $0x6a8] ss:$16 sps:$4 sm:$0xff]  }
 0x1f1   :  { %2285 = vmatmul.mubr.bf16.gmra.mrb[28].mxu0 %v4633_v40 }
 0x1f2   :  { %2932 = vmatpush1.bf16.msra.mxu0 %v4128_v52 }
 0x1f3   :  { %2414 = vmatpush1.bf16.msra.mxu1 %v4044_v53  ;;  %2933 = vmatprep.subr.bf16.mxu0 %v4133_v54  ;;  %v4094_v53 = vld [vmem:[#allocation8 + $0x6cc] ss:$16 sps:$4 sm:$0xff]  }
 0x1f4   :  { %2415 = vmatprep.subr.bf16.mxu1 %v4049_v56 }
 0x1f6   :  { %2934 = vmatpush1.bf16.msra.mxu0 %v4131_v57  ;;  %v4097_v57 = vld [vmem:[#allocation8 + $0x6ec] ss:$16 sps:$4 sm:$0xff]  }
 0x1f7   :  { %2416 = vmatpush1.bf16.msra.mxu1 %v4047_v59  ;;  %2935 = vmatprep.subr.bf16.mxu0 %v4136_v61  ;;  %v4095_v59 = vld [vmem:[#allocation8 + $0x6e8] ss:$16 sps:$4 sm:$0xff]   ;;  %v4100_v61 = vld [vmem:[#allocation8 + $0x70c] ss:$16 sps:$4 sm:$0xff]  }
 0x1f8   :  { %2417 = vmatprep.subr.bf16.mxu1 %v4052_v63 }
 0x1fa   :  { %2936 = vmatpush1.bf16.msra.mxu0 %v4134_v1 }
 0x1fb   :  { %2418 = vmatpush1.bf16.msra.mxu1 %v4050_v2  ;;  %2937 = vmatprep.subr.bf16.mxu0 %v4139_v3  ;;  %v4098_v3 = vld [vmem:[#allocation8 + $0x708] ss:$16 sps:$4 sm:$0xff]  }
 0x1fc   :  { %2419 = vmatprep.subr.bf16.mxu1 %v4055_v5 }
 0x1fe   :  { %2938 = vmatpush1.bf16.msra.mxu0 %v4137_v7  ;;  %v4103_v7 = vld [vmem:[#allocation8 + $0x72c] ss:$16 sps:$4 sm:$0xff]  }
 0x1ff   :  { %2420 = vmatpush1.bf16.msra.mxu1 %v4053_v9  ;;  %2939 = vmatprep.subr.bf16.mxu0 %v4142_v11  ;;  %v4101_v9 = vld [vmem:[#allocation8 + $0x728] ss:$16 sps:$4 sm:$0xff]   ;;  %v4106_v11 = vld [vmem:[#allocation8 + $0x74c] ss:$16 sps:$4 sm:$0xff]  }
 0x200   :  { %2421 = vmatprep.subr.bf16.mxu1 %v4058_v12  ;;  %v4166_v12 = vld [vmem:[#allocation10 + $0xe4] ss:$8 sps:$4 sm:$0xff]  }
 0x202   :  { %2940 = vmatpush1.bf16.msra.mxu0 %v4140_v13  ;;  %v4104_v13 = vld [vmem:[#allocation8 + $0x748] ss:$16 sps:$4 sm:$0xff]  }
 0x203   :  { %2422 = vmatpush1.bf16.msra.mxu1 %v4056_v15  ;;  %2941 = vmatprep.subr.bf16.mxu0 %v4145_v16  ;;  %v4164_v15 = vld [vmem:[#allocation10 + $0xe0] ss:$8 sps:$4 sm:$0xff]   ;;  %v4109_v16 = vld [vmem:[#allocation8 + $0x76c] ss:$16 sps:$4 sm:$0xff]  }
 0x204   :  { %2423 = vmatprep.subr.bf16.mxu1 %v4061_v18  ;;  %v4169_v18 = vld [vmem:[#allocation10 + $0xf4] ss:$8 sps:$4 sm:$0xff]  }
 0x206   :  { %2942 = vmatpush1.bf16.msra.mxu0 %v4143_v20  ;;  %v4107_v20 = vld [vmem:[#allocation8 + $0x768] ss:$16 sps:$4 sm:$0xff]  }
 0x207   :  { %2424 = vmatpush1.bf16.msra.mxu1 %v4059_v22  ;;  %2943 = vmatprep.subr.bf16.mxu0 %v4148_v23  ;;  %v4167_v22 = vld [vmem:[#allocation10 + $0xf0] ss:$8 sps:$4 sm:$0xff]   ;;  %v4112_v23 = vld [vmem:[#allocation8 + $0x78c] ss:$16 sps:$4 sm:$0xff]  }
 0x208   :  { %2425 = vmatprep.subr.bf16.mxu1 %v4064_v25  ;;  %v4110_v25 = vld [vmem:[#allocation8 + $0x788] ss:$16 sps:$4 sm:$0xff]  }
 0x20a   :  { %2944 = vmatpush1.bf16.msra.mxu0 %v4146_v60  ;;  %v4115_v60 = vld [vmem:[#allocation8 + $0x7ac] ss:$16 sps:$4 sm:$0xff]  }
 0x20b   :  { %2426 = vmatpush1.bf16.msra.mxu1 %v4062_v21  ;;  %2945 = vmatprep.subr.bf16.mxu0 %v4151_v26  ;;  %v4113_v21 = vld [vmem:[#allocation8 + $0x7a8] ss:$16 sps:$4 sm:$0xff]   ;;  %v4118_v26 = vld [vmem:[#allocation8 + $0x7cc] ss:$16 sps:$4 sm:$0xff]  }
 0x20c   :  { %2427 = vmatprep.subr.bf16.mxu1 %v4067_v27  ;;  %v4116_v27 = vld [vmem:[#allocation8 + $0x7c8] ss:$16 sps:$4 sm:$0xff]  }
 0x20e   :  { %2946 = vmatpush1.bf16.msra.mxu0 %v4149_v28  ;;  %v4172_v28 = vld [vmem:[#allocation10 + $0x104] ss:$8 sps:$4 sm:$0xff]  }
 0x20f   :  { %2428 = vmatpush1.bf16.msra.mxu1 %v4065_v29  ;;  %2947 = vmatprep.subr.bf16.mxu0 %v4154_v30  ;;  %v4121_v29 = vld [vmem:[#allocation8 + $0x7ec] ss:$16 sps:$4 sm:$0xff]   ;;  %v4119_v30 = vld [vmem:[#allocation8 + $0x7e8] ss:$16 sps:$4 sm:$0xff]  }
 0x210   :  { %2429 = vmatprep.subr.bf16.mxu1 %v4070_v31  ;;  %v4691_v31 = vld [vmem:[%s4738_s4] sm:$0xf] }
 0x212   :  { %2948 = vmatpush1.bf16.msra.mxu0 %v4152_v19  ;;  %v786_v19 = vrot.slane %v4691_v31, %v4573_v43 }
 0x213   :  { %2430 = vmatpush1.bf16.msra.mxu1 %v4068_v62  ;;  %2949 = vmatprep.subr.bf16.mxu0 %v4157_v32  ;;  %v790_v62 = vrot.slane %v4691_v31, %v4578_v45 }
 0x214   :  { %2431 = vmatprep.subr.bf16.mxu1 %v4073_v33 }
 0x216   :  { %2950 = vmatpush1.bf16.msra.mxu0 %v4155_v35 }
 0x217   :  { %2432 = vmatpush1.bf16.msra.mxu1 %v4071_v36  ;;  %2951 = vmatprep.subr.bf16.mxu0 %v4160_v38 }
 0x218   :  { %2454 = vmatprep.subr.bf16.mxu1 %v4076_v17 }
 0x21a   :  { %2434 = vmatmul.mubr.bf16.vlgmr.msra.gmra.mrb[16].mxu1 %v4641_v0  ;;  %2952 = vmatpush1.bf16.msra.mxu0 %v4158_v55  ;;  %v4083_v0 = vld [vmem:[#allocation8 + $0x668] ss:$16 sps:$4 sm:$0xff]  }
 0x21b   :  { %2443 = vmatprep.mubr.bf16.mxu1 %v4648_v14  ;;  %2455 = vmatpush1.bf16.msra.mxu1 %v4074_v41  ;;  %v4086_v14 = vld [vmem:[#allocation8 + $0x688] ss:$16 sps:$4 sm:$0xff]  }
 0x21c   :  { %2456 = vmatprep.subr.bf16.mxu1 %v4079_v24  ;;  %2953 = vmatprep.subr.bf16.mxu0 %v4163_v37  ;;  %v4218_v37 = vld [vmem:[#allocation11 + $0x40] sm:$0xff]  }
 0x21e   :  { %2954 = vmatpush1.bf16.msra.mxu0 %v4161_v46  ;;  %v4219_v46 = vld [vmem:[#allocation11] sm:$0xff]  }
 0x21f   :  { %2457 = vmatpush1.bf16.msra.mxu1 %v4077_v48  ;;  %2955 = vmatprep.subr.bf16.mxu0 %v4166_v12  ;;  %v4220_v48 = vld [vmem:[#allocation11 + $0x48] sm:$0xff]   ;;  %v4173_v12 = vld [vmem:[#allocation10 + $0x110] ss:$8 sps:$4 sm:$0xff]  }
 0x220   :  { %2458 = vmatprep.subr.bf16.mxu1 %v4082_v49 }
 0x222   :  { %2444 = vmatmul.mubr.bf16.gmra.mrb[20].mxu1 %v4646_v34  ;;  %2956 = vmatpush1.bf16.msra.mxu0 %v4164_v15 }
 0x223   :  { %2459 = vmatpush1.bf16.msra.mxu1 %v4080_v50  ;;  %2486 = vmatprep.mubr.bf16.mxu1 %v4621_v8  ;;  %v4092_v8 = vld [vmem:[#allocation8 + $0x6c8] ss:$16 sps:$4 sm:$0xff]  }
 0x224   :  { %2460 = vmatprep.subr.bf16.mxu1 %v4085_v39  ;;  %2957 = vmatprep.subr.bf16.mxu0 %v4169_v18 }
 0x226   :  { %2958 = vmatpush1.bf16.msra.mxu0 %v4167_v22  ;;  %v4225_v22 = vld [vmem:[#allocation11 + $0x18] sm:$0xff]  }
 0x227   :  { %2461 = vmatpush1.bf16.msra.mxu1 %v4083_v0  ;;  %2980 = vmatprep.subr.bf16.mxu0 %v4172_v28  ;;  %v4228_v28 = vld [vmem:[#allocation11 + $0x68] sm:$0xff]  }
 0x228   :  { %2462 = vmatprep.subr.bf16.mxu1 %v4088_v10 }
 0x22b   :  { %2463 = vmatpush1.bf16.msra.mxu1 %v4086_v14 }
 0x22c   :  { %v4669_v52 = vpop.f32.mrb[8].mxu1  ;;  %2464 = vmatprep.subr.bf16.mxu1 %v4091_v44  ;;  %v4221_v44 = vld [vmem:[#allocation11 + $0x8] sm:$0xff]  }
 0x22d   :  { %v4671_v54 = vpop.f32.mrb[9].mxu1  ;;  %v2118_v32 = vadd.f32 %v4669_v52, %v786_v19 }
 0x22e   :  { %v4673_v56 = vpop.f32.mrb[10].mxu1  ;;  %v2120_v33 = vadd.f32 %v4671_v54, %v790_v62  ;;  %v4170_v54 = vld [vmem:[#allocation10 + $0x100] ss:$8 sps:$4 sm:$0xff]  }
 0x22f   :  { %2465 = vmatpush1.bf16.msra.mxu1 %v4089_v51  ;;  %v4675_v34 = vpop.f32.mrb[11].mxu1 }
 0x230   :  { %2466 = vmatprep.subr.bf16.mxu1 %v4094_v53  ;;  %v2124_v36 = vadd.f32 %v4675_v34, %v790_v62 }
 0x233   :  { %2467 = vmatpush1.bf16.msra.mxu1 %v4092_v8 }
 0x234   :  { %2468 = vmatprep.subr.bf16.mxu1 %v4097_v57  ;;  %v4677_v63 = vpop.f32.mrb[12].mxu1 }
 0x235   :  { %v4679_v1 = vpop.f32.mrb[13].mxu1  ;;  %v2128_v10 = vadd.f32 %v4677_v63, %v786_v19 }
 0x236   :  { %v4681_v2 = vpop.f32.mrb[14].mxu1  ;;  %v2130_v51 = vadd.f32 %v4679_v1, %v790_v62  ;;  %v4223_v1 = vld [vmem:[#allocation11 + $0x10] sm:$0xff]  }
 0x237   :  { %2469 = vmatpush1.bf16.msra.mxu1 %v4095_v59  ;;  %v4683_v5 = vpop.f32.mrb[15].mxu1  ;;  %v2132_v34 = vadd.f32 %v4681_v2, %v786_v19  ;;  %v4175_v59 = vld [vmem:[#allocation10 + $0x114] ss:$8 sps:$4 sm:$0xff]  }
 0x238   :  { %2470 = vmatprep.subr.bf16.mxu1 %v4100_v61  ;;  %v2134_v61 = vadd.f32 %v4683_v5, %v790_v62  ;;  %v4185_v62 = vld [vmem:[#allocation10 + $0x150] ss:$8 sps:$4 sm:$0xff]  }
 0x23b   :  { %2471 = vmatpush1.bf16.msra.mxu1 %v4098_v3 }
 0x23c   :  { %2472 = vmatprep.subr.bf16.mxu1 %v4103_v7 }
 0x23f   :  { %2473 = vmatpush1.bf16.msra.mxu1 %v4101_v9 }
 0x240   :  { %2474 = vmatprep.subr.bf16.mxu1 %v4106_v11 }
 0x243   :  { %2475 = vmatpush1.bf16.msra.mxu1 %v4104_v13  ;;  %v4224_v13 = vld [vmem:[#allocation11 + $0x58] sm:$0xff]  }
 0x244   :  { %2476 = vmatprep.subr.bf16.mxu1 %v4109_v16  ;;  %v4178_v16 = vld [vmem:[#allocation10 + $0x124] ss:$8 sps:$4 sm:$0xff]  }
 0x247   :  { %2477 = vmatpush1.bf16.msra.mxu1 %v4107_v20 }
 0x248   :  { %2478 = vmatprep.subr.bf16.mxu1 %v4112_v23 }
 0x24b   :  { %2479 = vmatpush1.bf16.msra.mxu1 %v4110_v25  ;;  %v4176_v25 = vld [vmem:[#allocation10 + $0x120] ss:$8 sps:$4 sm:$0xff]  }
 0x24c   :  { %2480 = vmatprep.subr.bf16.mxu1 %v4115_v60  ;;  %v4226_v60 = vld [vmem:[#allocation11 + $0x60] sm:$0xff]  }
 0x24f   :  { %2481 = vmatpush1.bf16.msra.mxu1 %v4113_v21  ;;  %v4181_v21 = vld [vmem:[#allocation10 + $0x134] ss:$8 sps:$4 sm:$0xff]  }
 0x250   :  { %2482 = vmatprep.subr.bf16.mxu1 %v4118_v26  ;;  %v4227_v26 = vld [vmem:[#allocation11 + $0x20] sm:$0xff]  }
 0x253   :  { %2483 = vmatpush1.bf16.msra.mxu1 %v4116_v27  ;;  %v4179_v27 = vld [vmem:[#allocation10 + $0x130] ss:$8 sps:$4 sm:$0xff]  }
 0x254   :  { %2484 = vmatprep.subr.bf16.mxu1 %v4121_v29  ;;  %v4184_v29 = vld [vmem:[#allocation10 + $0x144] ss:$8 sps:$4 sm:$0xff]  }
 0x257   :  { %2485 = vmatpush1.bf16.msra.mxu1 %v4119_v30  ;;  %v4182_v30 = vld [vmem:[#allocation10 + $0x140] ss:$8 sps:$4 sm:$0xff]  }
 0x258   :  { %3614 = vmatprep.subr.bf16.mxu1 %v4218_v37  ;;  %v4208_v37 = vld [vmem:[#allocation10 + $0x1c4] ss:$8 sps:$4 sm:$0xff]  }
 0x25a   :  { %2487 = vmatmul.mubr.bf16.vlgmr.msra.gmra.mrb[16].mxu1 %v4615_v58 }
 0x25b   :  { %2496 = vmatprep.mubr.bf16.mxu1 %v4637_v47  ;;  %v2122_v47 = vadd.f32 %v4673_v56, %v786_v19  ;;  %3615 = vmatpush3.bf16.msra.mxu1 %v4219_v46  ;;  %v4222_v56 = vld [vmem:[#allocation11 + $0x50] sm:$0xff]   ;;  %v4206_v46 = vld [vmem:[#allocation10 + $0x1c0] ss:$8 sps:$4 sm:$0xff]  }
 0x25c   :  { %3616 = vmatprep.subr.bf16.mxu1 %v4220_v48  ;;  %v4187_v19 = vld [vmem:[#allocation10 + $0x154] ss:$8 sps:$4 sm:$0xff]  }
 0x25d   :  { %v4211_v48 = vld [vmem:[#allocation10 + $0x1d4] ss:$8 sps:$4 sm:$0xff]  }
 0x25f   :  { %3617 = vmatpush3.bf16.msra.mxu1 %v4221_v44  ;;  %v798_v44 = vrot.slane %v4691_v31, %v152_v6 }
 0x260   :  { %3618 = vmatprep.subr.bf16.mxu1 %v4222_v56 }
 0x262   :  { %2497 = vmatmul.mubr.bf16.gmra.mrb[20].mxu1 %v4633_v40 }
 0x263   :  { %3619 = vmatpush3.bf16.msra.mxu1 %v4223_v1 }
 0x264   :  { %3620 = vmatprep.subr.bf16.mxu1 %v4224_v13 }
 0x267   :  { %3621 = vmatpush3.bf16.msra.mxu1 %v4225_v22  ;;  %v4229_v22 = vld [vmem:[#allocation11 + $0x28] sm:$0xff]  }
 0x268   :  { %3622 = vmatprep.subr.bf16.mxu1 %v4226_v60  ;;  %v4232_v60 = vld [vmem:[#allocation11 + $0x78] sm:$0xff]  }
 0x26b   :  { %3623 = vmatpush3.bf16.msra.mxu1 %v4227_v26  ;;  %v2595_v26 = vld [vmem:[%s4740_s6] sm:$0x3] }
 0x26c   :  { %3624 = vmatprep.subr.bf16.mxu1 %v4228_v28  ;;  %v2604_v28 = vrot.slane %v2595_v26, %v4578_v45 }
 0x26f   :  { %3625 = vmatpush3.bf16.msra.mxu1 %v4229_v22 }
 0x2bc   :  { %v2276_v58 = vpop.f32.mrb[24].mxu0 }
 0x2bd   :  { %v3643_v35 = vadd.f32 %v2276_v58, %v2118_v32  ;;  %v2278_v40 = vpop.f32.mrb[25].mxu0  ;;  %v4190_v32 = vld [vmem:[#allocation10 + $0x164] ss:$8 sps:$4 sm:$0xff]   ;;  %v4193_v58 = vld [vmem:[#allocation10 + $0x174] ss:$8 sps:$4 sm:$0xff]  }
 0x2be   :  { %v3645_v38 = vadd.f32 %v2278_v40, %v2120_v33  ;;  %v2280_v17 = vpop.f32.mrb[26].mxu0  ;;  %v4188_v33 = vld [vmem:[#allocation10 + $0x160] ss:$8 sps:$4 sm:$0xff]  }
 0x2bf   :  { %v3647_v55 = vadd.f32 %v2280_v17, %v2122_v47  ;;  %v2282_v41 = vpop.f32.mrb[27].mxu0  ;;  %v2507_v49 = vmax.f32 %v3643_v35, 0.0  ;;  %v4191_v47 = vld [vmem:[#allocation10 + $0x170] ss:$8 sps:$4 sm:$0xff]   ;;  %v4196_v35 = vld [vmem:[#allocation10 + $0x184] ss:$8 sps:$4 sm:$0xff]  }
 0x2c0   :  { %v3649_v24 = vadd.f32 %v2282_v41, %v2124_v36  ;;  %v2508_v39 = vmax.f32 %v3645_v38, 0.0  ;;  %v4194_v40 = vld [vmem:[#allocation10 + $0x180] ss:$8 sps:$4 sm:$0xff]   ;;  %v4199_v36 = vld [vmem:[#allocation10 + $0x194] ss:$8 sps:$4 sm:$0xff]  }
 0x2c1   :  { %v2511_v50 = vmax.f32 %v3647_v55, 0.0  ;;  %v4197_v38 = vld [vmem:[#allocation10 + $0x190] ss:$8 sps:$4 sm:$0xff]   ;;  %v4202_v17 = vld [vmem:[#allocation10 + $0x1a4] ss:$8 sps:$4 sm:$0xff]  }
 0x2c2   :  { %v2512_v0 = vmax.f32 %v3649_v24, 0.0  ;;  %v4200_v55 = vld [vmem:[#allocation10 + $0x1a0] ss:$8 sps:$4 sm:$0xff]   ;;  %v4205_v41 = vld [vmem:[#allocation10 + $0x1b4] ss:$8 sps:$4 sm:$0xff]  }
 0x2c3   :  { %v2523_v14 = vpack.c.bf16 %v2511_v50, %v2507_v49  ;;  %v4203_v24 = vld [vmem:[#allocation10 + $0x1b0] ss:$8 sps:$4 sm:$0xff]   ;;  %v4214_v50 = vld [vmem:[#allocation10 + $0x1e4] ss:$8 sps:$4 sm:$0xff]  }
 0x2c4   :  { %v2524_v52 = vpack.c.bf16 %v2512_v0, %v2508_v39  ;;  %v2286_v53 = vpop.f32.mrb[28].mxu0  ;;  %v4209_v49 = vld [vmem:[#allocation10 + $0x1d0] ss:$8 sps:$4 sm:$0xff]   ;;  %v4212_v39 = vld [vmem:[#allocation10 + $0x1e0] ss:$8 sps:$4 sm:$0xff]  }
 0x2c5   :  { %v3651_v8 = vadd.f32 %v2286_v53, %v2128_v10  ;;  %v2288_v57 = vpop.f32.mrb[29].mxu0  ;;  %v4217_v0 = vld [vmem:[#allocation10 + $0x1f4] ss:$8 sps:$4 sm:$0xff]   ;;  %v4215_v10 = vld [vmem:[#allocation10 + $0x1f0] ss:$8 sps:$4 sm:$0xff]  }
 0x2c6   :  { %v3653_v3 = vadd.f32 %v2288_v57, %v2130_v51  ;;  %v2290_v7 = vpop.f32.mrb[30].mxu0  ;;  %2959 = vmatprep.mubr.bf16.mxu0 %v2524_v52 }
 0x2c7   :  { %v3655_v63 = vadd.f32 %v2290_v7, %v2132_v34  ;;  %v2292_v9 = vpop.f32.mrb[31].mxu0  ;;  %2960 = vmatmul.mubr.bf16.vlgmr.msra.gmra.mrb[32].mxu0 %v2523_v14  ;;  %v2515_v15 = vmax.f32 %v3651_v8, 0.0  ;;  %v794_v14 = vrot.slane %v4691_v31, %v148_v4 }
 0x2c8   :  { %v3657_v11 = vadd.f32 %v2292_v9, %v2134_v61  ;;  %2981 = vmatpush1.bf16.msra.mxu0 %v4170_v54  ;;  %v2516_v18 = vmax.f32 %v3653_v3, 0.0 }
 0x2c9   :  { %v2519_v2 = vmax.f32 %v3655_v63, 0.0  ;;  %2982 = vmatprep.subr.bf16.mxu0 %v4175_v59 }
 0x2ca   :  { %v2520_v20 = vmax.f32 %v3657_v11, 0.0 }
 0x2cb   :  { %v2527_v5 = vpack.c.bf16 %v2519_v2, %v2515_v15 }
 0x2cc   :  { %v2528_v23 = vpack.c.bf16 %v2520_v20, %v2516_v18  ;;  %2983 = vmatpush1.bf16.msra.mxu0 %v4173_v12 }
 0x2cd   :  { %2984 = vmatprep.subr.bf16.mxu0 %v4178_v16 }
 0x2ce   :  { %2969 = vmatprep.mubr.bf16.mxu0 %v2528_v23  ;;  %v4230_v23 = vld [vmem:[#allocation11 + $0x70] sm:$0xff]  }
 0x2cf   :  { %2970 = vmatmul.mubr.bf16.gmra.mrb[36].mxu0 %v2527_v5  ;;  %3626 = vmatprep.subr.bf16.mxu1 %v4230_v23 }
 0x2d0   :  { %2985 = vmatpush1.bf16.msra.mxu0 %v4176_v25  ;;  %v4231_v25 = vld [vmem:[#allocation11 + $0x30] sm:$0xff]  }
 0x2d1   :  { %2986 = vmatprep.subr.bf16.mxu0 %v4181_v21  ;;  %3627 = vmatpush3.bf16.msra.mxu1 %v4231_v25  ;;  %v4233_v21 = vld [vmem:[#allocation11 + $0x38] sm:$0xff]  }
 0x2d2   :  { %3628 = vmatprep.subr.bf16.mxu1 %v4232_v60 }
 0x2d4   :  { %2987 = vmatpush1.bf16.msra.mxu0 %v4179_v27  ;;  %v2600_v27 = vrot.slane %v2595_v26, %v4573_v43 }
 0x2d5   :  { %2988 = vmatprep.subr.bf16.mxu0 %v4184_v29  ;;  %3629 = vmatpush3.bf16.msra.mxu1 %v4233_v21 }
 0x2d8   :  { %2989 = vmatpush1.bf16.msra.mxu0 %v4182_v30 }
 0x2d9   :  { %2990 = vmatprep.subr.bf16.mxu0 %v4187_v19 }
 0x2dc   :  { %2991 = vmatpush1.bf16.msra.mxu0 %v4185_v62 }
 0x2dd   :  { %2992 = vmatprep.subr.bf16.mxu0 %v4190_v32 }
 0x2e0   :  { %2993 = vmatpush1.bf16.msra.mxu0 %v4188_v33 }
 0x2e1   :  { %2994 = vmatprep.subr.bf16.mxu0 %v4193_v58 }
 0x2e4   :  { %2995 = vmatpush1.bf16.msra.mxu0 %v4191_v47 }
 0x2e5   :  { %2996 = vmatprep.subr.bf16.mxu0 %v4196_v35 }
 0x2e8   :  { %2997 = vmatpush1.bf16.msra.mxu0 %v4194_v40 }
 0x2e9   :  { %2998 = vmatprep.subr.bf16.mxu0 %v4199_v36 }
 0x2ec   :  { %2999 = vmatpush1.bf16.msra.mxu0 %v4197_v38 }
 0x2ed   :  { %3000 = vmatprep.subr.bf16.mxu0 %v4202_v17 }
 0x2f0   :  { %3001 = vmatpush1.bf16.msra.mxu0 %v4200_v55 }
 0x2f1   :  { %3002 = vmatprep.subr.bf16.mxu0 %v4205_v41 }
 0x2f4   :  { %3003 = vmatpush1.bf16.msra.mxu0 %v4203_v24 }
 0x2f5   :  { %3004 = vmatprep.subr.bf16.mxu0 %v4208_v37 }
 0x2f8   :  { %3005 = vmatpush1.bf16.msra.mxu0 %v4206_v46 }
 0x2f9   :  { %3006 = vmatprep.subr.bf16.mxu0 %v4211_v48 }
 0x2fc   :  { %3007 = vmatpush1.bf16.msra.mxu0 %v4209_v49 }
 0x2fd   :  { %3008 = vmatprep.subr.bf16.mxu0 %v4214_v50 }
 0x300   :  { %3009 = vmatpush1.bf16.msra.mxu0 %v4212_v39 }
 0x301   :  { %3010 = vmatprep.subr.bf16.mxu0 %v4217_v0 }
 0x304   :  { %3011 = vmatpush1.bf16.msra.mxu0 %v4215_v10 }
 0x32d   :  { %v2488_v51 = vpop.f32.mrb[16].mxu1 }
 0x32e   :  { %v3658_v52 = vadd.f32 %v2488_v51, %v794_v14  ;;  %v2490_v53 = vpop.f32.mrb[17].mxu1 }
 0x32f   :  { %v3659_v54 = vadd.f32 %v2490_v53, %v798_v44  ;;  %v2492_v56 = vpop.f32.mrb[18].mxu1 }
 0x330   :  { %v3660_v34 = vadd.f32 %v2492_v56, %v794_v14  ;;  %v2494_v8 = vpop.f32.mrb[19].mxu1  ;;  %v2509_v59 = vmax.f32 %v3658_v52, 0.0  ;;  %v3597_v52 = vld [vmem:[%s4742_s8] ss:$0 sm:$0xff]  ;;  %s4366_s8 = scalar_lea.vmem %s3239_s23, 512 }
 0x331   :  { %v3661_v57 = vadd.f32 %v2494_v8, %v798_v44  ;;  %v2510_v3 = vmax.f32 %v3659_v54, 0.0  ;;  %p4367_p6 = scmp.ne.s32.totalorder %s3239_s23, %s4366_s8  ;;  %p4372_p8 = scmp.lt.s32.totalorder %s4366_s8, %s4366_s8 }
 0x332   :  { %v2513_v61 = vmax.f32 %v3660_v34, 0.0 }
 0x333   :  { %v2514_v7 = vmax.f32 %v3661_v57, 0.0  ;;  %p4373_p9 = por %p4372_p8, %p4371_p7 }
 0x334   :  { %v2525_v63 = vpack.c.bf16 %v2513_v61, %v2509_v59 }
 0x335   :  { %v2526_v9 = vpack.c.bf16 %v2514_v7, %v2510_v3  ;;  %v2498_v1 = vpop.f32.mrb[20].mxu1  ;;  %p4374_p10 = pnand %p4373_p9, %p4367_p6 }
 0x336   :  { %v3662_v4 = vadd.f32 %v2498_v1, %v794_v14  ;;  %v2500_v11 = vpop.f32.mrb[21].mxu1 }
 0x337   :  { %v3663_v42 = vadd.f32 %v2500_v11, %v798_v44  ;;  %v2502_v12 = vpop.f32.mrb[22].mxu1  ;;  %3012 = vmatprep.mubr.bf16.mxu0 %v2526_v9 }
 0x338   :  { %v3664_v6 = vadd.f32 %v2502_v12, %v794_v14  ;;  %v2504_v31 = vpop.f32.mrb[23].mxu1  ;;  %3013 = vmatmul.mubr.bf16.vlgmr.msra.gmra.mrb[32].mxu0 %v2525_v63  ;;  %v2517_v15 = vmax.f32 %v3662_v4, 0.0 }
 0x339   :  { %v3665_v13 = vadd.f32 %v2504_v31, %v798_v44  ;;  %v2518_v16 = vmax.f32 %v3663_v42, 0.0 }
 0x33a   :  { %v2521_v2 = vmax.f32 %v3664_v6, 0.0 }
 0x33b   :  { %v2522_v18 = vmax.f32 %v3665_v13, 0.0 }
 0x33c   :  { %v2529_v20 = vpack.c.bf16 %v2521_v2, %v2517_v15 }
 0x33d   :  { %v2530_v5 = vpack.c.bf16 %v2522_v18, %v2518_v16 }
 0x33f   :  { %3022 = vmatprep.mubr.bf16.mxu0 %v2530_v5 }
 0x340   :  { %3023 = vmatmul.mubr.bf16.gmra.mrb[36].mxu0 %v2529_v20 }
 0x40b   :  { %v3014_v29 = vpop.f32.mrb[32].mxu0 }
 0x40c   :  { %v3666_v30 = vadd.f32 %v3014_v29, %v2600_v27  ;;  %v3016_v19 = vpop.f32.mrb[33].mxu0 }
 0x40d   :  { %v3667_v62 = vadd.f32 %v3016_v19, %v2604_v28  ;;  %v3018_v32 = vpop.f32.mrb[34].mxu0 }
 0x40e   :  { %v3668_v33 = vadd.f32 %v3018_v32, %v2600_v27  ;;  %v3020_v58 = vpop.f32.mrb[35].mxu0  ;;  %v3033_v35 = vmax.f32 %v3666_v30, 0.0 }
 0x40f   :  { %v3669_v47 = vadd.f32 %v3020_v58, %v2604_v28  ;;  %v3034_v36 = vmax.f32 %v3667_v62, 0.0 }
 0x410   :  { %v3035_v40 = vmax.f32 %v3668_v33, 0.0 }
 0x411   :  { %v3036_v38 = vmax.f32 %v3669_v47, 0.0 }
 0x412   :  { %v3041_v17 = vpack.c.bf16 %v3035_v40, %v3033_v35 }
 0x413   :  { %v3042_v55 = vpack.c.bf16 %v3036_v38, %v3034_v36  ;;  %v3024_v41 = vpop.f32.mrb[36].mxu0 }
 0x414   :  { %v3670_v24 = vadd.f32 %v3024_v41, %v2600_v27  ;;  %v3026_v37 = vpop.f32.mrb[37].mxu0 }
 0x415   :  { %v3671_v43 = vadd.f32 %v3026_v37, %v2604_v28  ;;  %v3028_v46 = vpop.f32.mrb[38].mxu0  ;;  %3212 = vmatprep.mubr.bf16.mxu1 %v3042_v55 }
 0x416   :  { %v3672_v45 = vadd.f32 %v3028_v46, %v2600_v27  ;;  %v3030_v48 = vpop.f32.mrb[39].mxu0  ;;  %3213 = vmatmul.mubr.bf16.vlgmr.msra.gmra.mrb[24].mxu1 %v3041_v17  ;;  %v3037_v50 = vmax.f32 %v3670_v24, 0.0 }
 0x417   :  { %v3673_v49 = vadd.f32 %v3030_v48, %v2604_v28  ;;  %v3038_v0 = vmax.f32 %v3671_v43, 0.0 }
 0x418   :  { %v3039_v39 = vmax.f32 %v3672_v45, 0.0 }
 0x419   :  { %v3040_v10 = vmax.f32 %v3673_v49, 0.0 }
 0x41a   :  { %v3043_v14 = vpack.c.bf16 %v3039_v39, %v3037_v50 }
 0x41b   :  { %v3044_v44 = vpack.c.bf16 %v3040_v10, %v3038_v0 }
 0x41d   :  { %3220 = vmatprep.mubr.bf16.mxu1 %v3044_v44 }
 0x41e   :  { %3221 = vmatmul.mubr.bf16.gmra.mrb[28].mxu1 %v3043_v14 }
 0x4e9   :  { %v3630_v51 = vpop.f32.mrb[24].mxu1 }
 0x4ea   :  { %v3631_v53 = vpop.f32.mrb[25].mxu1 }
 0x4eb   :  { %v3632_v54 = vadd.f32 %v3631_v53, %v3630_v51  ;;  %v3633_v56 = vpop.f32.mrb[26].mxu1 }
 0x4ec   :  { %v3634_v34 = vpop.f32.mrb[27].mxu1 }
 0x4ed   :  { %v3215_v8 = vadd.f32 %v3632_v54, %v3597_v52  ;;  %v3635_v57 = vadd.f32 %v3634_v34, %v3633_v56 }
 0x4ef   :  { %3229 = vst [vmem:[#allocation13] sm:$0xff] %v3215_v8  ;;  %v3218_v59 = vadd.f32 %v3635_v57, %v3597_v52 }
 0x4f1   :  { %3230 = vst [vmem:[#allocation13 + $0x8] sm:$0xff] %v3218_v59  ;;  %v3636_v61 = vpop.f32.mrb[28].mxu1 }
 0x4f2   :  { %v3637_v3 = vpop.f32.mrb[29].mxu1 }
 0x4f3   :  { %v3638_v7 = vadd.f32 %v3637_v3, %v3636_v61  ;;  %v3639_v63 = vpop.f32.mrb[30].mxu1 }
 0x4f4   :  { %v3640_v9 = vpop.f32.mrb[31].mxu1 }
 0x4f5   :  { %v3223_v1 = vadd.f32 %v3638_v7, %v3597_v52  ;;  %v3641_v4 = vadd.f32 %v3640_v9, %v3639_v63 }
 0x4f7   :  { %3231 = vst [vmem:[#allocation13 + $0x10] sm:$0xff] %v3223_v1  ;;  %v3226_v11 = vadd.f32 %v3641_v4, %v3597_v52 }
 0x4f9   :  { %3232 = vst [vmem:[#allocation13 + $0x18] sm:$0xff] %v3226_v11 }
 0x4fa   :  { %4377 = shalt.err (!%p4374_p10)
}
 0x4fb   :  { %s4378_s27 = scalar_lea.hbm %s4743_s9, 512 }
 0x4fc   :  { %p4379_p11 = scmp.ne.s32.totalorder %s4743_s9, %s4378_s27  ;;  %p4382_p12 = scmp.lt.u32.totalorder %s4378_s27, %s4743_s9 }
 0x4fe   :  { %p4384_p13 = pnand %p4382_p12, %p4379_p11 }
 0x500   :  { %4387 = shalt.err (!%p4384_p13)
}
 0x501   :  { %3244 = dma.vmem_to_hbm [thread:$0]  %s3239_s23, 512, %s4743_s9, [#allocation4], %s4405_s3, %s4405_s3, %s4406_s24  }
 0x502   :  { %4396 = dma.done.wait [#allocation4], 512  }
 0x503   :  { %4397 = vsyncadd [#allocation4], 4294966784 }
 0x504   :  { %3248 = vsyncpa [#allocation3], 1 }
 0x505   :  { %3249 = vsyncpa [#allocation6], 1 }
 0x506   :  { %3250 = vsyncpa [#allocation9], 1 }
 0x507   :  { %3251 = vsyncpa [#allocation12], 1 }
 0x508   :  { %3252 = vsyncpa [#allocation4], 1 }

// kernel: tpu_custom_call.1
= control target key start
LH: loop header
LB: loop body
LE: loop exit
PB: predicated region body
PF: predicated region fallthrough
CT: control target
= control target key end

     0   :  { %14 = vsyncpa [#allocation3], 0  ;;  %s4734_s0 = inlined_call_operand.hbm [shape: f32[32,32], index: 0, kind: input, shape index: {}]   ;;  %s4735_s1 = inlined_call_operand.hbm [shape: bf16[32,1024], index: 1, kind: input, shape index: {}]   ;;  %s4736_s2 = inlined_call_operand.hbm [shape: f32[1,1024], index: 2, kind: input, shape index: {}]   ;;  %s4737_s3 = inlined_call_operand.hbm [shape: bf16[1024,512], index: 3, kind: input, shape index: {}]   ;;  %s4738_s4 = inlined_call_operand.vmem [shape: f32[1,512], index: 4, kind: input, shape index: {}]   ;;  %s4739_s5 = inlined_call_operand.hbm [shape: bf16[512,256], index: 5, kind: input, shape index: {}]   ;;  %s4740_s6 = inlined_call_operand.vmem [shape: f32[1,256], index: 6, kind: input, shape index: {}]   ;;  %s4741_s7 = inlined_call_operand.hbm [shape: bf16[256,128], index: 7, kind: input, shape index: {}]   ;;  %s4742_s8 = inlined_call_operand.vmem [shape: f32[1,128], index: 8, kind: input, shape index: {}]   ;;  %s4743_s9 = inlined_call_operand.hbm [shape: f32[32,128], index: 9, kind: output, shape index: {}]  }
   0x1   :  { %15 = vsyncpa [#allocation6], 0 }
   0x2   :  { %16 = vsyncpa [#allocation9], 0 }
   0x3   :  { %17 = vsyncpa [#allocation12], 0 }
   0x4   :  { %18 = vsyncpa [#allocation4], 0  ;;  %s4398_s30 = smov [#allocation5]   ;;  %s4234_s13 = scalar_lea.hbm %s4735_s1, 2048 }
   0x5   :  { %s36_s10 = sshll.u32 %s4398_s30, 4  ;;  %p4235_p0 = scmp.ne.s32.totalorder %s4735_s1, %s4234_s13  ;;  %s37_s10 = int_to_ptr.vmem [resolvable:$true] %s36_s10 }
   0x6   :  { %p4238_p1 = scmp.lt.u32.totalorder %s4234_s13, %s4735_s1 }
   0x8   :  { %p4240_p2 = pnand %p4238_p1, %p4235_p0 }
   0xa   :  { %4243 = shalt.err (!%p4240_p2)
}
   0xb   :  { %s4244_s18 = scalar_lea.vmem %s37_s10, 2048  ;;  %p4249_p4 = scmp.lt.s32.totalorder %s37_s10, %s37_s10 }
   0xc   :  { %p4245_p3 = scmp.ne.s32.totalorder %s37_s10, %s4244_s18  ;;  %p4250_p5 = scmp.lt.s32.totalorder %s4244_s18, %s4244_s18 }
   0xe   :  { %p4251_p6 = por %p4250_p5, %p4249_p4 }
  0x10   :  { %p4252_p7 = pnand %p4251_p6, %p4245_p3 }
  0x12   :  { %4255 = shalt.err (!%p4252_p7)
}
  0x13   :  { %s4399_s19 = smov 512   ;;  %s4400_s20 = smov 32  }
  0x14   :  { %42 = dma.hbm_to_vmem [thread:$0]  %s4735_s1, 2048, %s37_s10, [#allocation6], %s4399_s19, %s4399_s19, %s4400_s20  }
  0x15   :  { %s4401_s23 = smov [#allocation8]   ;;  %s4256_s27 = scalar_lea.hbm %s4737_s3, 32768 }
  0x16   :  { %s58_s24 = sshll.u32 %s4401_s23, 4  ;;  %p4257_p8 = scmp.ne.s32.totalorder %s4737_s3, %s4256_s27  ;;  %s59_s24 = int_to_ptr.vmem [resolvable:$true] %s58_s24 }
  0x17   :  { %p4260_p9 = scmp.lt.u32.totalorder %s4256_s27, %s4737_s3 }
  0x19   :  { %p4262_p10 = pnand %p4260_p9, %p4257_p8 }
  0x1b   :  { %4265 = shalt.err (!%p4262_p10)
}
  0x1c   :  { %s4266_s12 = scalar_lea.vmem %s59_s24, 32768  ;;  %p4271_p12 = scmp.lt.s32.totalorder %s59_s24, %s59_s24 }
  0x1d   :  { %p4267_p11 = scmp.ne.s32.totalorder %s59_s24, %s4266_s12  ;;  %p4272_p13 = scmp.lt.s32.totalorder %s4266_s12, %s4266_s12 }
  0x1f   :  { %p4273_p0 = por %p4272_p13, %p4271_p12 }
  0x21   :  { %p4274_p1 = pnand %p4273_p0, %p4267_p11 }
  0x23   :  { %4277 = shalt.err (!%p4274_p1)
}
  0x24   :  { %s4402_s1 = smov 256   ;;  %s4403_s10 = smov 16  }
  0x25   :  { %64 = dma.hbm_to_vmem [thread:$0]  %s4737_s3, 32768, %s59_s24, [#allocation9], %s4402_s1, %s4402_s1, %s4403_s10  }
  0x26   :  { %s4404_s15 = smov [#allocation2]   ;;  %s4278_s19 = scalar_lea.hbm %s4734_s0, 512 }
  0x27   :  { %s24_s16 = sshll.u32 %s4404_s15, 4  ;;  %p4279_p2 = scmp.ne.s32.totalorder %s4734_s0, %s4278_s19  ;;  %s25_s16 = int_to_ptr.vmem [resolvable:$true] %s24_s16 }
  0x28   :  { %p4282_p3 = scmp.lt.u32.totalorder %s4278_s19, %s4734_s0 }
  0x2a   :  { %p4284_p4 = pnand %p4282_p3, %p4279_p2 }
  0x2c   :  { %4287 = shalt.err (!%p4284_p4)
}
  0x2d   :  { %s4288_s25 = scalar_lea.vmem %s25_s16, 512  ;;  %p4293_p6 = scmp.lt.s32.totalorder %s25_s16, %s25_s16 }
  0x2e   :  { %p4289_p5 = scmp.ne.s32.totalorder %s25_s16, %s4288_s25  ;;  %p4294_p7 = scmp.lt.s32.totalorder %s4288_s25, %s4288_s25 }
  0x30   :  { %p4295_p8 = por %p4294_p7, %p4293_p6 }
  0x32   :  { %p4296_p9 = pnand %p4295_p8, %p4289_p5 }
  0x34   :  { %4299 = shalt.err (!%p4296_p9)
}
  0x35   :  { %s4405_s3 = smov 128   ;;  %s4406_s24 = smov 8  }
  0x36   :  { %30 = dma.hbm_to_vmem [thread:$0]  %s4734_s0, 512, %s25_s16, [#allocation3], %s4405_s3, %s4405_s3, %s4406_s24  }
  0x37   :  { %s4407_s28 = smov [#allocation7]   ;;  %s4408_s30 = smov [#allocation10]  }
  0x38   :  { %s49_s29 = sshll.u32 %s4407_s28, 4  ;;  %s72_s11 = sshll.u32 %s4408_s30, 4  ;;  %s50_s29 = int_to_ptr.vmem [resolvable:$true] %s49_s29  ;;  %s73_s11 = int_to_ptr.vmem [resolvable:$true] %s72_s11 }
  0x39   :  { %s4300_s10 = scalar_lea.hbm %s4736_s2, 128 }
  0x3a   :  { %p4301_p10 = scmp.ne.s32.totalorder %s4736_s2, %s4300_s10  ;;  %p4304_p11 = scmp.lt.u32.totalorder %s4300_s10, %s4736_s2 }
  0x3c   :  { %p4306_p12 = pnand %p4304_p11, %p4301_p10 }
  0x3e   :  { %4309 = shalt.err (!%p4306_p12)
}
  0x3f   :  { %s4310_s0 = scalar_lea.vmem %s50_s29, 128  ;;  %p4315_p0 = scmp.lt.s32.totalorder %s50_s29, %s50_s29 }
  0x40   :  { %p4311_p13 = scmp.ne.s32.totalorder %s50_s29, %s4310_s0  ;;  %p4316_p1 = scmp.lt.s32.totalorder %s4310_s0, %s4310_s0 }
  0x42   :  { %p4317_p2 = por %p4316_p1, %p4315_p0 }
  0x44   :  { %p4318_p3 = pnand %p4317_p2, %p4311_p13 }
  0x46   :  { %4321 = shalt.err (!%p4318_p3)
}
  0x47   :  { %52 = dma.hbm_to_vmem [thread:$0]  %s4736_s2, 128, %s50_s29, [#allocation6]  }
  0x48   :  { %s4322_s21 = scalar_lea.hbm %s4739_s5, 8192 }
  0x49   :  { %p4323_p4 = scmp.ne.s32.totalorder %s4739_s5, %s4322_s21  ;;  %p4326_p5 = scmp.lt.u32.totalorder %s4322_s21, %s4739_s5 }
  0x4b   :  { %p4328_p6 = pnand %p4326_p5, %p4323_p4 }
  0x4d   :  { %4331 = shalt.err (!%p4328_p6)
}
  0x4e   :  { %s4332_s27 = scalar_lea.vmem %s73_s11, 8192  ;;  %p4337_p8 = scmp.lt.s32.totalorder %s73_s11, %s73_s11 }
  0x4f   :  { %p4333_p7 = scmp.ne.s32.totalorder %s73_s11, %s4332_s27  ;;  %p4338_p9 = scmp.lt.s32.totalorder %s4332_s27, %s4332_s27 }
  0x51   :  { %p4339_p10 = por %p4338_p9, %p4337_p8 }
  0x53   :  { %p4340_p11 = pnand %p4339_p10, %p4333_p7 }
  0x55   :  { %4343 = shalt.err (!%p4340_p11)
}
  0x56   :  { %78 = dma.hbm_to_vmem [thread:$0]  %s4739_s5, 8192, %s73_s11, [#allocation9], %s4405_s3, %s4405_s3, %s4406_s24  }
  0x57   :  { %s4409_s29 = smov [#allocation11]   ;;  %s4344_s10 = scalar_lea.hbm %s4741_s7, 2048 }
  0x58   :  { %s86_s30 = sshll.u32 %s4409_s29, 4  ;;  %p4345_p12 = scmp.ne.s32.totalorder %s4741_s7, %s4344_s10  ;;  %s87_s30 = int_to_ptr.vmem [resolvable:$true] %s86_s30 }
  0x59   :  { %p4348_p13 = scmp.lt.u32.totalorder %s4344_s10, %s4741_s7 }
  0x5b   :  { %p4350_p0 = pnand %p4348_p13, %p4345_p12 }
  0x5d   :  { %4353 = shalt.err (!%p4350_p0)
}
  0x5e   :  { %s4354_s0 = scalar_lea.vmem %s87_s30, 2048  ;;  %p4359_p2 = scmp.lt.s32.totalorder %s87_s30, %s87_s30 }
  0x5f   :  { %p4355_p1 = scmp.ne.s32.totalorder %s87_s30, %s4354_s0  ;;  %p4360_p3 = scmp.lt.s32.totalorder %s4354_s0, %s4354_s0 }
  0x61   :  { %p4361_p4 = por %p4360_p3, %p4359_p2 }
  0x63   :  { %p4362_p5 = pnand %p4361_p4, %p4355_p1 }
  0x65   :  { %4365 = shalt.err (!%p4362_p5)
}
  0x66   :  { %s4410_s5 = smov 64   ;;  %s4411_s11 = smov 4  }
  0x67   :  { %92 = dma.hbm_to_vmem [thread:$0]  %s4741_s7, 2048, %s87_s30, [#allocation12], %s4410_s5, %s4410_s5, %s4411_s11  }
  0x68   :  { %4388 = dma.done.wait [#allocation3], 512  }
  0x69   :  { %4389 = vsyncadd [#allocation3], 4294966784 }
  0x6a   :  { %4390 = dma.done.wait [#allocation6], 2176  }
  0x6b   :  { %4391 = vsyncadd [#allocation6], 4294965120 }
  0x6c   :  { %4392 = dma.done.wait [#allocation9], 40960  }
  0x6d   :  { %4393 = vsyncadd [#allocation9], 4294926336 }
  0x6e   :  { %4394 = dma.done.wait [#allocation12], 2048  }
  0x6f   :  { %4395 = vsyncadd [#allocation12], 4294965248  ;;  %v4412_v0 = vmov 0   ;;  %v120_v1 = vld [vmem:[#allocation5] sm:$0xff]  ;;  %v121_v8 = vld [vmem:[#allocation5 + $0x8] sm:$0xff]  ;;  %vm258_vm0 = vcmask 261120  }
  0x70   :  { %297 = vmatprep.mubr.bf16.mxu0 %v4412_v0  ;;  %456 = vmatprep.mubr.bf16.mxu1 %v4412_v0  ;;  %v124_v2 = vld [vmem:[#allocation5 + $0x20] sm:$0xff]  ;;  %v125_v9 = vld [vmem:[#allocation5 + $0x28] sm:$0xff]  ;;  %v123_v16 = vld [vmem:[#allocation5 + $0x18] sm:$0xff]  ;;  %s4413_s22 = smov [#allocation13]  }
  0x71   :  { %v128_v3 = vld [vmem:[#allocation5 + $0x40] sm:$0xff]  ;;  %v3254_v4 = vcombine.high %v120_v1, %v124_v2  ;;  %v3253_v5 = vcombine.low %v120_v1, %v124_v2  ;;  %v115_v12 = vld [vmem:[#allocation2 + $0x8] sm:$0xff]  ;;  %v3256_v14 = vcombine.high %v121_v8, %v125_v9  ;;  %v127_v17 = vld [vmem:[#allocation5 + $0x38] sm:$0xff]  ;;  %v3255_v24 = vcombine.low %v121_v8, %v125_v9  ;;  %s3238_s23 = sshll.u32 %s4413_s22, 4  ;;  %s3239_s23 = int_to_ptr.vmem [resolvable:$true] %s3238_s23 }
  0x72   :  { %v132_v6 = vld [vmem:[#allocation5 + $0x60] sm:$0xff]  ;;  %v129_v13 = vld [vmem:[#allocation5 + $0x48] sm:$0xff]  ;;  %v3260_v18 = vcombine.high %v123_v16, %v127_v17  ;;  %v3259_v19 = vcombine.low %v123_v16, %v127_v17  ;;  %v131_v20 = vld [vmem:[#allocation5 + $0x58] sm:$0xff]  ;;  %p4371_p7 = scmp.lt.s32.totalorder %s3239_s23, %s3239_s23 }
  0x73   :  { %v3262_v7 = vcombine.high %v128_v3, %v132_v6  ;;  %265 = vmatprep.subr.bf16.mxu0 %v3254_v4  ;;  %v3261_v10 = vcombine.low %v128_v3, %v132_v6  ;;  %v114_v11 = vld [vmem:[#allocation2] sm:$0xff]  ;;  %v133_v15 = vld [vmem:[#allocation5 + $0x68] sm:$0xff]  ;;  %v135_v21 = vld [vmem:[#allocation5 + $0x78] sm:$0xff] }
  0x74   :  { %266 = vmatpush1.bf16.msra.mxu0 %v3253_v5  ;;  %v4544_v22 = vpack.c.bf16 %v115_v12, %v114_v11  ;;  %v3268_v23 = vcombine.high %v131_v20, %v135_v21  ;;  %424 = vmatprep.subr.bf16.mxu1 %v3260_v18  ;;  %v3264_v25 = vcombine.high %v129_v13, %v133_v15  ;;  %v122_v26 = vld [vmem:[#allocation5 + $0x10] sm:$0xff]  ;;  %v3740_v29 = vld [vmem:[#allocation8 + $0x4] ss:$16 sps:$4 sm:$0xff]   ;;  %v3738_v34 = vld [vmem:[#allocation8] ss:$16 sps:$4 sm:$0xff]  }
  0x75   :  { %267 = vmatprep.subr.bf16.mxu0 %v3262_v7  ;;  %425 = vmatpush1.bf16.msra.mxu1 %v3259_v19  ;;  %v3267_v27 = vcombine.low %v131_v20, %v135_v21  ;;  %v126_v28 = vld [vmem:[#allocation5 + $0x30] sm:$0xff]  ;;  %v117_v31 = vld [vmem:[#allocation2 + $0x18] sm:$0xff]  ;;  %v3263_v32 = vcombine.low %v129_v13, %v133_v15 }
  0x76   :  { %426 = vmatprep.subr.bf16.mxu1 %v3268_v23  ;;  %v116_v30 = vld [vmem:[#allocation2 + $0x10] sm:$0xff]  ;;  %v3258_v33 = vcombine.high %v122_v26, %v126_v28  ;;  %v3743_v36 = vld [vmem:[#allocation8 + $0x24] ss:$16 sps:$4 sm:$0xff]   ;;  %v3741_v37 = vld [vmem:[#allocation8 + $0x20] ss:$16 sps:$4 sm:$0xff]   ;;  %v3257_v43 = vcombine.low %v122_v26, %v126_v28 }
  0x77   :  { %v4549_v35 = vpack.c.bf16 %v117_v31, %v116_v30  ;;  %v3746_v38 = vld [vmem:[#allocation8 + $0x44] ss:$16 sps:$4 sm:$0xff]   ;;  %v130_v39 = vld [vmem:[#allocation5 + $0x50] sm:$0xff]  ;;  %v3744_v41 = vld [vmem:[#allocation8 + $0x40] ss:$16 sps:$4 sm:$0xff]  }
  0x78   :  { %268 = vmatpush1.bf16.msra.mxu0 %v3261_v10  ;;  %v134_v40 = vld [vmem:[#allocation5 + $0x70] sm:$0xff]  ;;  %v3749_v42 = vld [vmem:[#allocation8 + $0x64] ss:$16 sps:$4 sm:$0xff]   ;;  %v3747_v45 = vld [vmem:[#allocation8 + $0x60] ss:$16 sps:$4 sm:$0xff]  }
  0x79   :  { %318 = vmatprep.subr.bf16.mxu0 %v3256_v14  ;;  %427 = vmatpush1.bf16.msra.mxu1 %v3267_v27  ;;  %v3266_v44 = vcombine.high %v130_v39, %v134_v40  ;;  %v3752_v46 = vld [vmem:[#allocation8 + $0x84] ss:$16 sps:$4 sm:$0xff]   ;;  %v3265_v47 = vcombine.low %v130_v39, %v134_v40  ;;  %v3750_v49 = vld [vmem:[#allocation8 + $0x80] ss:$16 sps:$4 sm:$0xff]  }
  0x7a   :  { %2083 = vmatprep.subr.bf16.mxu1 %v3740_v29  ;;  %v3755_v48 = vld [vmem:[#allocation8 + $0x204] ss:$16 sps:$4 sm:$0xff]   ;;  %v3756_v51 = vld [vmem:[#allocation8 + $0xa0] ss:$16 sps:$4 sm:$0xff]  }
  0x7b   :  { %3269 = vmatmul.mubr.msk.bf16.vlgmr.msra.gmra.mrb[0].mxu0 %vm258_vm0, %v4544_v22  ;;  %v3758_v50 = vld [vmem:[#allocation8 + $0xa4] ss:$16 sps:$4 sm:$0xff]   ;;  %v3753_v53 = vld [vmem:[#allocation8 + $0x200] ss:$16 sps:$4 sm:$0xff]  }
  0x7c   :  { %307 = vmatprep.mubr.bf16.mxu0 %v4412_v0  ;;  %319 = vmatpush1.bf16.msra.mxu0 %v3255_v24  ;;  %v3764_v52 = vld [vmem:[#allocation8 + $0xc4] ss:$16 sps:$4 sm:$0xff]   ;;  %v3762_v54 = vld [vmem:[#allocation8 + $0xc0] ss:$16 sps:$4 sm:$0xff]  }
  0x7d   :  { %320 = vmatprep.subr.bf16.mxu0 %v3264_v25  ;;  %3275 = vmatmul.mubr.msk.bf16.vlgmr.msra.gmra.mrb[0].mxu1 %vm258_vm0, %v4544_v22  ;;  %v3770_v55 = vld [vmem:[#allocation8 + $0xe4] ss:$16 sps:$4 sm:$0xff]   ;;  %v3768_v57 = vld [vmem:[#allocation8 + $0xe0] ss:$16 sps:$4 sm:$0xff]  }
  0x7e   :  { %466 = vmatprep.mubr.bf16.mxu1 %v4412_v0  ;;  %2084 = vmatpush1.bf16.msra.mxu1 %v3738_v34  ;;  %v3761_v56 = vld [vmem:[#allocation8 + $0x224] ss:$16 sps:$4 sm:$0xff]   ;;  %v3759_v59 = vld [vmem:[#allocation8 + $0x220] ss:$16 sps:$4 sm:$0xff]  }
  0x7f   :  { %2085 = vmatprep.subr.bf16.mxu1 %v3743_v36  ;;  %v3776_v58 = vld [vmem:[#allocation8 + $0x104] ss:$16 sps:$4 sm:$0xff]   ;;  %v3774_v61 = vld [vmem:[#allocation8 + $0x100] ss:$16 sps:$4 sm:$0xff]  }
  0x80   :  { %321 = vmatpush1.bf16.msra.mxu0 %v3263_v32  ;;  %v3767_v60 = vld [vmem:[#allocation8 + $0x244] ss:$16 sps:$4 sm:$0xff]   ;;  %v3765_v63 = vld [vmem:[#allocation8 + $0x240] ss:$16 sps:$4 sm:$0xff]   ;;  %v3827_v32 = vld [vmem:[#allocation8 + $0xc] ss:$16 sps:$4 sm:$0xff]  }
  0x81   :  { %371 = vmatprep.subr.bf16.mxu0 %v3258_v33  ;;  %v3782_v62 = vld [vmem:[#allocation8 + $0x124] ss:$16 sps:$4 sm:$0xff]   ;;  %v3780_v2 = vld [vmem:[#allocation8 + $0x120] ss:$16 sps:$4 sm:$0xff]  }
  0x82   :  { %2086 = vmatpush1.bf16.msra.mxu1 %v3741_v37  ;;  %v3773_v1 = vld [vmem:[#allocation8 + $0x264] ss:$16 sps:$4 sm:$0xff]   ;;  %v3771_v4 = vld [vmem:[#allocation8 + $0x260] ss:$16 sps:$4 sm:$0xff]  }
  0x83   :  { %3270 = vmatmul.mubr.msk.bf16.gmra.mrb[4].mxu0 %vm258_vm0, %v4549_v35  ;;  %2087 = vmatprep.subr.bf16.mxu1 %v3746_v38  ;;  %v3788_v3 = vld [vmem:[#allocation8 + $0x144] ss:$16 sps:$4 sm:$0xff]   ;;  %v3777_v7 = vld [vmem:[#allocation8 + $0x280] ss:$16 sps:$4 sm:$0xff]  }
  0x84   :  { %350 = vmatprep.mubr.bf16.mxu0 %v4412_v0  ;;  %v3779_v5 = vld [vmem:[#allocation8 + $0x284] ss:$16 sps:$4 sm:$0xff]   ;;  %v3792_v9 = vld [vmem:[#allocation8 + $0x160] ss:$16 sps:$4 sm:$0xff]  }
  0x85   :  { %3276 = vmatmul.mubr.msk.bf16.gmra.mrb[4].mxu1 %vm258_vm0, %v4549_v35  ;;  %v3794_v6 = vld [vmem:[#allocation8 + $0x164] ss:$16 sps:$4 sm:$0xff]   ;;  %v3783_v11 = vld [vmem:[#allocation8 + $0x2a0] ss:$16 sps:$4 sm:$0xff]  }
  0x86   :  { %2088 = vmatpush1.bf16.msra.mxu1 %v3744_v41  ;;  %v3785_v8 = vld [vmem:[#allocation8 + $0x2a4] ss:$16 sps:$4 sm:$0xff]   ;;  %v3798_v13 = vld [vmem:[#allocation8 + $0x180] ss:$16 sps:$4 sm:$0xff]   ;;  %v138_v41 = vlaneseq }
  0x87   :  { %2089 = vmatprep.subr.bf16.mxu1 %v3749_v42  ;;  %v3800_v10 = vld [vmem:[#allocation8 + $0x184] ss:$16 sps:$4 sm:$0xff]   ;;  %v3789_v15 = vld [vmem:[#allocation8 + $0x2c0] ss:$16 sps:$4 sm:$0xff]  }
  0x88   :  { %v3791_v12 = vld [vmem:[#allocation8 + $0x2c4] ss:$16 sps:$4 sm:$0xff]   ;;  %v3804_v17 = vld [vmem:[#allocation8 + $0x1a0] ss:$16 sps:$4 sm:$0xff]   ;;  %v4570_v42 = vshrl.u32 %v138_v41, 7 }
  0x89   :  { %v3806_v14 = vld [vmem:[#allocation8 + $0x1a4] ss:$16 sps:$4 sm:$0xff]   ;;  %v3795_v18 = vld [vmem:[#allocation8 + $0x2e0] ss:$16 sps:$4 sm:$0xff]  }
  0x8a   :  { %2090 = vmatpush1.bf16.msra.mxu1 %v3747_v45  ;;  %v3797_v16 = vld [vmem:[#allocation8 + $0x2e4] ss:$16 sps:$4 sm:$0xff]   ;;  %v3801_v20 = vld [vmem:[#allocation8 + $0x300] ss:$16 sps:$4 sm:$0xff]   ;;  %v4578_v45 = vsub.s32 1, %v4570_v42 }
  0x8b   :  { %3271 = vmatmul.mubr.msk.bf16.vlgmr.msra.gmra.mrb[8].mxu0 %vm258_vm0, %v4544_v22  ;;  %2091 = vmatprep.subr.bf16.mxu1 %v3752_v46  ;;  %v3803_v19 = vld [vmem:[#allocation8 + $0x304] ss:$16 sps:$4 sm:$0xff]   ;;  %v3810_v25 = vld [vmem:[#allocation8 + $0x1c0] ss:$16 sps:$4 sm:$0xff]  }
  0x8c   :  { %360 = vmatprep.mubr.bf16.mxu0 %v4412_v0  ;;  %372 = vmatpush1.bf16.msra.mxu0 %v3257_v43  ;;  %v3809_v21 = vld [vmem:[#allocation8 + $0x324] ss:$16 sps:$4 sm:$0xff]   ;;  %v3813_v26 = vld [vmem:[#allocation8 + $0x340] ss:$16 sps:$4 sm:$0xff]   ;;  %v4573_v43 = vsub.s32 0, %v4570_v42 }
  0x8d   :  { %373 = vmatprep.subr.bf16.mxu0 %v3266_v44  ;;  %v3812_v23 = vld [vmem:[#allocation8 + $0x1c4] ss:$16 sps:$4 sm:$0xff]   ;;  %v3816_v29 = vld [vmem:[#allocation8 + $0x1e0] ss:$16 sps:$4 sm:$0xff]   ;;  %v4575_v44 = vld [vmem:[#allocation7] sm:$0xff] }
  0x8e   :  { %2092 = vmatpush1.bf16.msra.mxu1 %v3750_v49  ;;  %v3815_v24 = vld [vmem:[#allocation8 + $0x344] ss:$16 sps:$4 sm:$0xff]   ;;  %v3819_v30 = vld [vmem:[#allocation8 + $0x360] ss:$16 sps:$4 sm:$0xff]   ;;  %v141_v46 = vrot.slane %v4575_v44, %v4573_v43 }
  0x8f   :  { %2093 = vmatprep.subr.bf16.mxu1 %v3758_v50  ;;  %v3818_v27 = vld [vmem:[#allocation8 + $0x1e4] ss:$16 sps:$4 sm:$0xff]   ;;  %v3822_v33 = vld [vmem:[#allocation8 + $0x380] ss:$16 sps:$4 sm:$0xff]  }
  0x90   :  { %374 = vmatpush1.bf16.msra.mxu0 %v3265_v47  ;;  %v3821_v28 = vld [vmem:[#allocation8 + $0x364] ss:$16 sps:$4 sm:$0xff]   ;;  %v3834_v37 = vld [vmem:[#allocation8 + $0x3c0] ss:$16 sps:$4 sm:$0xff]   ;;  %v145_v47 = vrot.slane %v4575_v44, %v4578_v45 }
  0x91   :  { %2136 = vmatprep.subr.bf16.mxu0 %v3755_v48  ;;  %v3824_v31 = vld [vmem:[#allocation8 + $0x384] ss:$16 sps:$4 sm:$0xff]   ;;  %v3840_v39 = vld [vmem:[#allocation8 + $0x3e0] ss:$16 sps:$4 sm:$0xff]  }
  0x92   :  { %2094 = vmatpush1.bf16.msra.mxu1 %v3756_v51  ;;  %v3830_v34 = vld [vmem:[#allocation8 + $0x3a4] ss:$16 sps:$4 sm:$0xff]  }
  0x93   :  { %3272 = vmatmul.mubr.msk.bf16.gmra.mrb[12].mxu0 %vm258_vm0, %v4549_v35  ;;  %2095 = vmatprep.subr.bf16.mxu1 %v3764_v52  ;;  %v3836_v36 = vld [vmem:[#allocation8 + $0x3c4] ss:$16 sps:$4 sm:$0xff]  }
  0x94   :  { %403 = vmatprep.mubr.bf16.mxu0 %v4412_v0  ;;  %v3842_v38 = vld [vmem:[#allocation8 + $0x3e4] ss:$16 sps:$4 sm:$0xff]  }
  0x95   :  { %v3848_v40 = vld [vmem:[#allocation8 + $0x404] ss:$16 sps:$4 sm:$0xff]  }
  0x96   :  { %2096 = vmatpush1.bf16.msra.mxu1 %v3762_v54 }
  0x97   :  { %2097 = vmatprep.subr.bf16.mxu1 %v3770_v55 }
  0x9a   :  { %2098 = vmatpush1.bf16.msra.mxu1 %v3768_v57 }
  0x9b   :  { %3273 = vmatmul.mubr.msk.bf16.vlgmr.msra.gmra.mrb[16].mxu0 %vm258_vm0, %v4544_v22  ;;  %2099 = vmatprep.subr.bf16.mxu1 %v3776_v58  ;;  %v3807_v22 = vld [vmem:[#allocation8 + $0x320] ss:$16 sps:$4 sm:$0xff]  }
  0x9c   :  { %413 = vmatprep.mubr.bf16.mxu0 %v4412_v0  ;;  %2137 = vmatpush1.bf16.msra.mxu0 %v3753_v53  ;;  %v3786_v0 = vld [vmem:[#allocation8 + $0x140] ss:$16 sps:$4 sm:$0xff]  }
  0x9d   :  { %2138 = vmatprep.subr.bf16.mxu0 %v3761_v56 }
  0x9e   :  { %2100 = vmatpush1.bf16.msra.mxu1 %v3774_v61 }
  0x9f   :  { %2101 = vmatprep.subr.bf16.mxu1 %v3782_v62 }
  0xa0   :  { %2139 = vmatpush1.bf16.msra.mxu0 %v3759_v59 }
  0xa1   :  { %2140 = vmatprep.subr.bf16.mxu0 %v3767_v60 }
  0xa2   :  { %2102 = vmatpush1.bf16.msra.mxu1 %v3780_v2 }
  0xa3   :  { %3274 = vmatmul.mubr.msk.bf16.gmra.mrb[20].mxu0 %vm258_vm0, %v4549_v35  ;;  %2103 = vmatprep.subr.bf16.mxu1 %v3788_v3  ;;  %v3828_v35 = vld [vmem:[#allocation8 + $0x3a0] ss:$16 sps:$4 sm:$0xff]   ;;  %v3833_v3 = vld [vmem:[#allocation8 + $0x2c] ss:$16 sps:$4 sm:$0xff]  }
  0xa4   :  { %2141 = vmatpush1.bf16.msra.mxu0 %v3765_v63  ;;  %v3825_v63 = vld [vmem:[#allocation8 + $0x8] ss:$16 sps:$4 sm:$0xff]  }
  0xa5   :  { %2142 = vmatprep.subr.bf16.mxu0 %v3773_v1 }
  0xa6   :  { %2104 = vmatpush1.bf16.msra.mxu1 %v3786_v0 }
  0xa7   :  { %2105 = vmatprep.subr.bf16.mxu1 %v3794_v6  ;;  %v152_v6 = vsub.s32 3, %v4570_v42 }
  0xa8   :  { %2143 = vmatpush1.bf16.msra.mxu0 %v3771_v4  ;;  %v148_v4 = vsub.s32 2, %v4570_v42 }
  0xa9   :  { %2144 = vmatprep.subr.bf16.mxu0 %v3779_v5 }
  0xaa   :  { %2106 = vmatpush1.bf16.msra.mxu1 %v3792_v9 }
  0xab   :  { %2107 = vmatprep.subr.bf16.mxu1 %v3800_v10 }
  0xac   :  { %2145 = vmatpush1.bf16.msra.mxu0 %v3777_v7 }
  0xad   :  { %2146 = vmatprep.subr.bf16.mxu0 %v3785_v8 }
  0xae   :  { %2108 = vmatpush1.bf16.msra.mxu1 %v3798_v13 }
  0xaf   :  { %2109 = vmatprep.subr.bf16.mxu1 %v3806_v14  ;;  %v4592_v14 = vrot.slane %v4575_v44, %v148_v4 }
  0xb0   :  { %2147 = vmatpush1.bf16.msra.mxu0 %v3783_v11 }
  0xb1   :  { %2148 = vmatprep.subr.bf16.mxu0 %v3791_v12  ;;  %v3831_v12 = vld [vmem:[#allocation8 + $0x28] ss:$16 sps:$4 sm:$0xff]  }
  0xb2   :  { %2110 = vmatpush1.bf16.msra.mxu1 %v3804_v17  ;;  %v4597_v17 = vrot.slane %v4575_v44, %v152_v6 }
  0xb3   :  { %2111 = vmatprep.subr.bf16.mxu1 %v3812_v23  ;;  %v3837_v23 = vld [vmem:[#allocation8 + $0x48] ss:$16 sps:$4 sm:$0xff]  }
  0xb4   :  { %2149 = vmatpush1.bf16.msra.mxu0 %v3789_v15  ;;  %v3839_v15 = vld [vmem:[#allocation8 + $0x4c] ss:$16 sps:$4 sm:$0xff]  }
  0xb5   :  { %2150 = vmatprep.subr.bf16.mxu0 %v3797_v16 }
  0xb6   :  { %2112 = vmatpush1.bf16.msra.mxu1 %v3810_v25 }
  0xb7   :  { %2113 = vmatprep.subr.bf16.mxu1 %v3818_v27  ;;  %v3845_v27 = vld [vmem:[#allocation8 + $0x6c] ss:$16 sps:$4 sm:$0xff]  }
  0xb8   :  { %2151 = vmatpush1.bf16.msra.mxu0 %v3795_v18  ;;  %v164_v18 = vsub.s32 6, %v4570_v42 }
  0xb9   :  { %2152 = vmatprep.subr.bf16.mxu0 %v3803_v19 }
  0xba   :  { %2114 = vmatpush1.bf16.msra.mxu1 %v3816_v29 }
  0xbb   :  { %2295 = vmatprep.subr.bf16.mxu1 %v3827_v32 }
  0xbc   :  { %2153 = vmatpush1.bf16.msra.mxu0 %v3801_v20 }
  0xbd   :  { %2154 = vmatprep.subr.bf16.mxu0 %v3809_v21 }
  0xc0   :  { %2155 = vmatpush1.bf16.msra.mxu0 %v3807_v22 }
  0xc1   :  { %2156 = vmatprep.subr.bf16.mxu0 %v3815_v24  ;;  %v165_v24 = vrot.slane %v4575_v44, %v164_v18 }
  0xc4   :  { %2157 = vmatpush1.bf16.msra.mxu0 %v3813_v26 }
  0xc5   :  { %2158 = vmatprep.subr.bf16.mxu0 %v3821_v28  ;;  %v168_v28 = vsub.s32 7, %v4570_v42 }
  0xc8   :  { %2159 = vmatpush1.bf16.msra.mxu0 %v3819_v30 }
  0xc9   :  { %2160 = vmatprep.subr.bf16.mxu0 %v3824_v31 }
  0xcc   :  { %2161 = vmatpush1.bf16.msra.mxu0 %v3822_v33 }
  0xcd   :  { %2162 = vmatprep.subr.bf16.mxu0 %v3830_v34 }
  0xd0   :  { %2163 = vmatpush1.bf16.msra.mxu0 %v3828_v35 }
  0xd1   :  { %2164 = vmatprep.subr.bf16.mxu0 %v3836_v36 }
  0xd4   :  { %2165 = vmatpush1.bf16.msra.mxu0 %v3834_v37  ;;  %v169_v37 = vrot.slane %v4575_v44, %v168_v28 }
  0xd5   :  { %2166 = vmatprep.subr.bf16.mxu0 %v3842_v38 }
  0xd8   :  { %2167 = vmatpush1.bf16.msra.mxu0 %v3840_v39 }
  0xd9   :  { %2189 = vmatprep.subr.bf16.mxu0 %v3848_v40 }
 0x14e   :  { %v299_v48 = vpop.f32.mrb[0].mxu0 }
 0x14f   :  { %v300_v49 = vadd.f32 %v299_v48, %v141_v46  ;;  %v301_v50 = vpop.f32.mrb[1].mxu0 }
 0x150   :  { %v302_v51 = vadd.f32 %v301_v50, %v145_v47  ;;  %v303_v52 = vpop.f32.mrb[2].mxu0  ;;  %v458_v20 = vpop.f32.mrb[0].mxu1 }
 0x151   :  { %v304_v53 = vadd.f32 %v303_v52, %v141_v46  ;;  %v305_v54 = vpop.f32.mrb[3].mxu0  ;;  %v477_v56 = vmax.f32 %v300_v49, 0.0  ;;  %v460_v29 = vpop.f32.mrb[1].mxu1  ;;  %v459_v32 = vadd.f32 %v458_v20, %v165_v24  ;;  %v3851_v49 = vld [vmem:[#allocation8 + $0x8c] ss:$16 sps:$4 sm:$0xff]  }
 0x152   :  { %v306_v55 = vadd.f32 %v305_v54, %v145_v47  ;;  %v478_v58 = vmax.f32 %v302_v51, 0.0  ;;  %v462_v33 = vpop.f32.mrb[2].mxu1  ;;  %v461_v50 = vadd.f32 %v460_v29, %v169_v37 }
 0x153   :  { %v485_v57 = vmax.f32 %v304_v53, 0.0  ;;  %v463_v38 = vadd.f32 %v462_v33, %v165_v24  ;;  %v464_v39 = vpop.f32.mrb[3].mxu1  ;;  %v3863_v33 = vld [vmem:[#allocation8 + $0xcc] ss:$16 sps:$4 sm:$0xff]  }
 0x154   :  { %v486_v59 = vmax.f32 %v306_v55, 0.0  ;;  %v465_v52 = vadd.f32 %v464_v39, %v169_v37 }
 0x155   :  { %v4584_v60 = vpack.c.bf16 %v485_v57, %v477_v56  ;;  %v491_v51 = vmax.f32 %v463_v38, 0.0  ;;  %v3846_v56 = vld [vmem:[#allocation8 + $0x400] ss:$16 sps:$4 sm:$0xff]   ;;  %v484_v57 = vmax.f32 %v461_v50, 0.0 }
 0x156   :  { %v510_v61 = vpack.c.bf16 %v486_v59, %v478_v58  ;;  %v309_v62 = vpop.f32.mrb[4].mxu0  ;;  %v492_v59 = vmax.f32 %v465_v52, 0.0 }
 0x157   :  { %v310_v1 = vadd.f32 %v309_v62, %v141_v46  ;;  %v311_v2 = vpop.f32.mrb[5].mxu0 }
 0x158   :  { %v312_v5 = vadd.f32 %v311_v2, %v145_v47  ;;  %v313_v0 = vpop.f32.mrb[6].mxu0  ;;  %2115 = vmatprep.mubr.bf16.mxu1 %v510_v61  ;;  %v468_v54 = vpop.f32.mrb[4].mxu1 }
 0x159   :  { %v493_v7 = vmax.f32 %v310_v1, 0.0  ;;  %v314_v8 = vadd.f32 %v313_v0, %v141_v46  ;;  %v315_v9 = vpop.f32.mrb[7].mxu0  ;;  %2116 = vmatmul.mubr.bf16.vlgmr.msra.gmra.mrb[8].mxu1 %v4584_v60  ;;  %v3843_v46 = vld [vmem:[#allocation8 + $0x68] ss:$16 sps:$4 sm:$0xff]   ;;  %v469_v2 = vadd.f32 %v468_v54, %v165_v24 }
 0x15a   :  { %v494_v10 = vmax.f32 %v312_v5, 0.0  ;;  %v316_v11 = vadd.f32 %v315_v9, %v145_v47  ;;  %2296 = vmatpush1.bf16.msra.mxu1 %v3825_v63  ;;  %v483_v47 = vmax.f32 %v459_v32, 0.0  ;;  %v3854_v63 = vld [vmem:[#allocation8 + $0x424] ss:$16 sps:$4 sm:$0xff]   ;;  %v470_v9 = vpop.f32.mrb[5].mxu1 }
 0x15b   :  { %v501_v13 = vmax.f32 %v314_v8, 0.0  ;;  %2297 = vmatprep.subr.bf16.mxu1 %v3833_v3  ;;  %v3857_v3 = vld [vmem:[#allocation8 + $0xac] ss:$16 sps:$4 sm:$0xff]   ;;  %v4621_v8 = vpack.c.bf16 %v492_v59, %v484_v57  ;;  %v3860_v32 = vld [vmem:[#allocation8 + $0x444] ss:$16 sps:$4 sm:$0xff]  }
 0x15c   :  { %v502_v16 = vmax.f32 %v316_v11, 0.0  ;;  %v4615_v58 = vpack.c.bf16 %v491_v51, %v483_v47  ;;  %v3864_v57 = vld [vmem:[#allocation8 + $0x460] ss:$16 sps:$4 sm:$0xff]   ;;  %v3867_v59 = vld [vmem:[#allocation8 + $0xe8] ss:$16 sps:$4 sm:$0xff]  }
 0x15d   :  { %v4600_v19 = vpack.c.bf16 %v501_v13, %v493_v7  ;;  %v156_v7 = vsub.s32 4, %v4570_v42  ;;  %v471_v13 = vadd.f32 %v470_v9, %v169_v37  ;;  %v3873_v9 = vld [vmem:[#allocation8 + $0x108] ss:$16 sps:$4 sm:$0xff]  }
 0x15e   :  { %v4602_v21 = vpack.c.bf16 %v502_v16, %v494_v10  ;;  %2298 = vmatpush1.bf16.msra.mxu1 %v3831_v12  ;;  %v352_v22 = vpop.f32.mrb[8].mxu0  ;;  %v160_v12 = vsub.s32 5, %v4570_v42 }
 0x15f   :  { %v353_v25 = vadd.f32 %v352_v22, %v4592_v14  ;;  %v354_v26 = vpop.f32.mrb[9].mxu0  ;;  %2299 = vmatprep.subr.bf16.mxu1 %v3839_v15  ;;  %v472_v15 = vpop.f32.mrb[6].mxu1  ;;  %v499_v22 = vmax.f32 %v469_v2, 0.0  ;;  %v3875_v2 = vld [vmem:[#allocation8 + $0x10c] ss:$16 sps:$4 sm:$0xff]  }
 0x160   :  { %v355_v30 = vadd.f32 %v354_v26, %v4597_v17  ;;  %v356_v31 = vpop.f32.mrb[10].mxu0  ;;  %2125 = vmatprep.mubr.bf16.mxu1 %v4602_v21  ;;  %v3852_v26 = vld [vmem:[#allocation8 + $0x420] ss:$16 sps:$4 sm:$0xff]  }
 0x161   :  { %v479_v34 = vmax.f32 %v353_v25, 0.0  ;;  %v357_v35 = vadd.f32 %v356_v31, %v4592_v14  ;;  %v358_v36 = vpop.f32.mrb[11].mxu0  ;;  %2126 = vmatmul.mubr.bf16.gmra.mrb[12].mxu1 %v4600_v19  ;;  %v474_v25 = vpop.f32.mrb[7].mxu1 }
 0x162   :  { %v480_v40 = vmax.f32 %v355_v30, 0.0  ;;  %v359_v41 = vadd.f32 %v358_v36, %v4597_v17  ;;  %2300 = vmatpush1.bf16.msra.mxu1 %v3837_v23  ;;  %2327 = vmatprep.mubr.bf16.mxu1 %v510_v61  ;;  %v3849_v61 = vld [vmem:[#allocation8 + $0x88] ss:$16 sps:$4 sm:$0xff]   ;;  %v473_v23 = vadd.f32 %v472_v15, %v165_v24  ;;  %v500_v30 = vmax.f32 %v471_v13, 0.0  ;;  %v3881_v13 = vld [vmem:[#allocation8 + $0x12c] ss:$16 sps:$4 sm:$0xff]  }
 0x163   :  { %v487_v48 = vmax.f32 %v357_v35, 0.0  ;;  %2301 = vmatprep.subr.bf16.mxu1 %v3845_v27  ;;  %v3855_v27 = vld [vmem:[#allocation8 + $0xa8] ss:$16 sps:$4 sm:$0xff]   ;;  %v475_v31 = vadd.f32 %v474_v25, %v169_v37  ;;  %v161_v24 = vrot.slane %v4575_v44, %v160_v12  ;;  %v3878_v12 = vld [vmem:[#allocation8 + $0x4a4] ss:$16 sps:$4 sm:$0xff]  }
 0x164   :  { %v488_v53 = vmax.f32 %v359_v41, 0.0  ;;  %v507_v35 = vmax.f32 %v473_v23, 0.0  ;;  %v3861_v37 = vld [vmem:[#allocation8 + $0xc8] ss:$16 sps:$4 sm:$0xff]  }
 0x165   :  { %v4613_v55 = vpack.c.bf16 %v487_v48, %v479_v34  ;;  %v508_v38 = vmax.f32 %v475_v31, 0.0  ;;  %v3866_v48 = vld [vmem:[#allocation8 + $0x464] ss:$16 sps:$4 sm:$0xff]   ;;  %v3887_v31 = vld [vmem:[#allocation8 + $0x14c] ss:$16 sps:$4 sm:$0xff]  }
 0x166   :  { %v4617_v62 = vpack.c.bf16 %v488_v53, %v480_v40  ;;  %2302 = vmatpush1.bf16.msra.mxu1 %v3843_v46  ;;  %v362_v1 = vpop.f32.mrb[12].mxu0  ;;  %v4633_v40 = vpack.c.bf16 %v507_v35, %v499_v22  ;;  %v3882_v35 = vld [vmem:[#allocation8 + $0x4c0] ss:$16 sps:$4 sm:$0xff]  }
 0x167   :  { %2303 = vmatprep.subr.bf16.mxu1 %v3851_v49  ;;  %v363_v5 = vadd.f32 %v362_v1, %v4592_v14  ;;  %v364_v0 = vpop.f32.mrb[13].mxu0  ;;  %v4637_v47 = vpack.c.bf16 %v508_v38, %v500_v30  ;;  %v3869_v49 = vld [vmem:[#allocation8 + $0xec] ss:$16 sps:$4 sm:$0xff]   ;;  %v3872_v1 = vld [vmem:[#allocation8 + $0x484] ss:$16 sps:$4 sm:$0xff]  }
 0x168   :  { %2168 = vmatprep.mubr.bf16.mxu0 %v4617_v62  ;;  %v365_v10 = vadd.f32 %v364_v0, %v4597_v17  ;;  %v366_v11 = vpop.f32.mrb[14].mxu0  ;;  %v3884_v30 = vld [vmem:[#allocation8 + $0x4c4] ss:$16 sps:$4 sm:$0xff]  }
 0x169   :  { %2169 = vmatmul.mubr.bf16.vlgmr.msra.gmra.mrb[24].mxu0 %v4613_v55  ;;  %v495_v16 = vmax.f32 %v363_v5, 0.0  ;;  %v367_v18 = vadd.f32 %v366_v11, %v4592_v14  ;;  %v368_v20 = vpop.f32.mrb[15].mxu0  ;;  %v157_v14 = vrot.slane %v4575_v44, %v156_v7  ;;  %v3870_v7 = vld [vmem:[#allocation8 + $0x480] ss:$16 sps:$4 sm:$0xff]   ;;  %v3890_v38 = vld [vmem:[#allocation8 + $0x4e4] ss:$16 sps:$4 sm:$0xff]  }
 0x16a   :  { %2190 = vmatpush1.bf16.msra.mxu0 %v3846_v56  ;;  %2304 = vmatpush1.bf16.msra.mxu1 %v3849_v61  ;;  %v496_v28 = vmax.f32 %v365_v10, 0.0  ;;  %v369_v29 = vadd.f32 %v368_v20, %v4597_v17  ;;  %v3858_v17 = vld [vmem:[#allocation8 + $0x440] ss:$16 sps:$4 sm:$0xff]  }
 0x16b   :  { %2191 = vmatprep.subr.bf16.mxu0 %v3854_v63  ;;  %2305 = vmatprep.subr.bf16.mxu1 %v3857_v3  ;;  %v503_v34 = vmax.f32 %v367_v18, 0.0 }
 0x16c   :  { %v504_v36 = vmax.f32 %v369_v29, 0.0 }
 0x16d   :  { %v4631_v39 = vpack.c.bf16 %v503_v34, %v495_v16 }
 0x16e   :  { %2192 = vmatpush1.bf16.msra.mxu0 %v3852_v26  ;;  %2306 = vmatpush1.bf16.msra.mxu1 %v3855_v27  ;;  %v4635_v41 = vpack.c.bf16 %v504_v36, %v496_v28  ;;  %v405_v46 = vpop.f32.mrb[16].mxu0  ;;  %v3876_v26 = vld [vmem:[#allocation8 + $0x4a0] ss:$16 sps:$4 sm:$0xff]   ;;  %v3879_v27 = vld [vmem:[#allocation8 + $0x128] ss:$16 sps:$4 sm:$0xff]  }
 0x16f   :  { %2193 = vmatprep.subr.bf16.mxu0 %v3860_v32  ;;  %2307 = vmatprep.subr.bf16.mxu1 %v3863_v33  ;;  %v406_v50 = vadd.f32 %v405_v46, %v157_v14  ;;  %v407_v44 = vpop.f32.mrb[17].mxu0  ;;  %v3885_v36 = vld [vmem:[#allocation8 + $0x148] ss:$16 sps:$4 sm:$0xff]   ;;  %v3896_v46 = vld [vmem:[#allocation8 + $0x504] ss:$16 sps:$4 sm:$0xff]  }
 0x170   :  { %v408_v51 = vadd.f32 %v407_v44, %v161_v24  ;;  %v409_v52 = vpop.f32.mrb[18].mxu0  ;;  %2178 = vmatprep.mubr.bf16.mxu0 %v4635_v41  ;;  %v3902_v44 = vld [vmem:[#allocation8 + $0x524] ss:$16 sps:$4 sm:$0xff]  }
 0x171   :  { %v481_v53 = vmax.f32 %v406_v50, 0.0  ;;  %v410_v54 = vadd.f32 %v409_v52, %v157_v14  ;;  %v411_v56 = vpop.f32.mrb[19].mxu0  ;;  %2179 = vmatmul.mubr.bf16.gmra.mrb[28].mxu0 %v4631_v39  ;;  %v3897_v50 = vld [vmem:[#allocation8 + $0x188] ss:$16 sps:$4 sm:$0xff]   ;;  %v3900_v52 = vld [vmem:[#allocation8 + $0x520] ss:$16 sps:$4 sm:$0xff]  }
 0x172   :  { %2194 = vmatpush1.bf16.msra.mxu0 %v3858_v17  ;;  %2308 = vmatpush1.bf16.msra.mxu1 %v3861_v37  ;;  %v482_v61 = vmax.f32 %v408_v51, 0.0  ;;  %v412_v63 = vadd.f32 %v411_v56, %v161_v24  ;;  %v3893_v17 = vld [vmem:[#allocation8 + $0x16c] ss:$16 sps:$4 sm:$0xff]   ;;  %v3891_v37 = vld [vmem:[#allocation8 + $0x168] ss:$16 sps:$4 sm:$0xff]  }
 0x173   :  { %2195 = vmatprep.subr.bf16.mxu0 %v3866_v48  ;;  %2309 = vmatprep.subr.bf16.mxu1 %v3869_v49  ;;  %v489_v3 = vmax.f32 %v410_v54, 0.0  ;;  %v3899_v48 = vld [vmem:[#allocation8 + $0x18c] ss:$16 sps:$4 sm:$0xff]   ;;  %v3894_v49 = vld [vmem:[#allocation8 + $0x500] ss:$16 sps:$4 sm:$0xff]  }
 0x174   :  { %v490_v5 = vmax.f32 %v412_v63, 0.0  ;;  %v3905_v51 = vld [vmem:[#allocation8 + $0x1ac] ss:$16 sps:$4 sm:$0xff]   ;;  %v3908_v54 = vld [vmem:[#allocation8 + $0x544] ss:$16 sps:$4 sm:$0xff]  }
 0x175   :  { %v4641_v0 = vpack.c.bf16 %v489_v3, %v481_v53  ;;  %v3903_v53 = vld [vmem:[#allocation8 + $0x1a8] ss:$16 sps:$4 sm:$0xff]   ;;  %v3911_v56 = vld [vmem:[#allocation8 + $0x1cc] ss:$16 sps:$4 sm:$0xff]   ;;  %v3920_v3 = vld [vmem:[#allocation8 + $0x584] ss:$16 sps:$4 sm:$0xff]  }
 0x176   :  { %2196 = vmatpush1.bf16.msra.mxu0 %v3864_v57  ;;  %2310 = vmatpush1.bf16.msra.mxu1 %v3867_v59  ;;  %v4643_v10 = vpack.c.bf16 %v490_v5, %v482_v61  ;;  %v415_v11 = vpop.f32.mrb[20].mxu0  ;;  %v3906_v57 = vld [vmem:[#allocation8 + $0x540] ss:$16 sps:$4 sm:$0xff]   ;;  %v3909_v59 = vld [vmem:[#allocation8 + $0x1c8] ss:$16 sps:$4 sm:$0xff]  }
 0x177   :  { %2197 = vmatprep.subr.bf16.mxu0 %v3872_v1  ;;  %2311 = vmatprep.subr.bf16.mxu1 %v3875_v2  ;;  %v416_v15 = vadd.f32 %v415_v11, %v157_v14  ;;  %v417_v16 = vpop.f32.mrb[21].mxu0  ;;  %v3914_v61 = vld [vmem:[#allocation8 + $0x564] ss:$16 sps:$4 sm:$0xff]   ;;  %v3917_v63 = vld [vmem:[#allocation8 + $0x1ec] ss:$16 sps:$4 sm:$0xff]  }
 0x178   :  { %2221 = vmatprep.mubr.bf16.mxu0 %v4643_v10  ;;  %v418_v18 = vadd.f32 %v417_v16, %v161_v24  ;;  %v419_v20 = vpop.f32.mrb[22].mxu0  ;;  %v3912_v1 = vld [vmem:[#allocation8 + $0x560] ss:$16 sps:$4 sm:$0xff]   ;;  %v3915_v2 = vld [vmem:[#allocation8 + $0x1e8] ss:$16 sps:$4 sm:$0xff]  }
 0x179   :  { %v497_v22 = vmax.f32 %v416_v15, 0.0  ;;  %v420_v23 = vadd.f32 %v419_v20, %v157_v14  ;;  %v421_v25 = vpop.f32.mrb[23].mxu0  ;;  %v3923_v5 = vld [vmem:[#allocation8 + $0x20c] ss:$16 sps:$4 sm:$0xff]   ;;  %v3926_v11 = vld [vmem:[#allocation8 + $0x5a4] ss:$16 sps:$4 sm:$0xff]  }
 0x17a   :  { %2198 = vmatpush1.bf16.msra.mxu0 %v3870_v7  ;;  %2312 = vmatpush1.bf16.msra.mxu1 %v3873_v9  ;;  %v498_v28 = vmax.f32 %v418_v18, 0.0  ;;  %v422_v29 = vadd.f32 %v421_v25, %v161_v24  ;;  %v3888_v24 = vld [vmem:[#allocation8 + $0x4e0] ss:$16 sps:$4 sm:$0xff]   ;;  %v3921_v9 = vld [vmem:[#allocation8 + $0x208] ss:$16 sps:$4 sm:$0xff]  }
 0x17b   :  { %2199 = vmatprep.subr.bf16.mxu0 %v3878_v12  ;;  %2313 = vmatprep.subr.bf16.mxu1 %v3881_v13  ;;  %v505_v32 = vmax.f32 %v420_v23, 0.0  ;;  %v3918_v7 = vld [vmem:[#allocation8 + $0x580] ss:$16 sps:$4 sm:$0xff]   ;;  %v3929_v12 = vld [vmem:[#allocation8 + $0x22c] ss:$16 sps:$4 sm:$0xff]  }
 0x17c   :  { %v506_v33 = vmax.f32 %v422_v29, 0.0  ;;  %v3924_v13 = vld [vmem:[#allocation8 + $0x5a0] ss:$16 sps:$4 sm:$0xff]   ;;  %v3927_v15 = vld [vmem:[#allocation8 + $0x228] ss:$16 sps:$4 sm:$0xff]  }
 0x17d   :  { %v4646_v34 = vpack.c.bf16 %v505_v32, %v497_v22  ;;  %v3932_v16 = vld [vmem:[#allocation8 + $0x5c4] ss:$16 sps:$4 sm:$0xff]   ;;  %v3935_v18 = vld [vmem:[#allocation8 + $0x24c] ss:$16 sps:$4 sm:$0xff]   ;;  %v3930_v20 = vld [vmem:[#allocation8 + $0x5c0] ss:$16 sps:$4 sm:$0xff]  }
 0x17e   :  { %2200 = vmatpush1.bf16.msra.mxu0 %v3876_v26  ;;  %2314 = vmatpush1.bf16.msra.mxu1 %v3879_v27  ;;  %v4648_v14 = vpack.c.bf16 %v506_v33, %v498_v28  ;;  %v3933_v22 = vld [vmem:[#allocation8 + $0x248] ss:$16 sps:$4 sm:$0xff]   ;;  %v3938_v23 = vld [vmem:[#allocation8 + $0x5e4] ss:$16 sps:$4 sm:$0xff]   ;;  %v3941_v25 = vld [vmem:[#allocation8 + $0x26c] ss:$16 sps:$4 sm:$0xff]  }
 0x17f   :  { %2201 = vmatprep.subr.bf16.mxu0 %v3884_v30  ;;  %2315 = vmatprep.subr.bf16.mxu1 %v3887_v31  ;;  %v3944_v26 = vld [vmem:[#allocation8 + $0x604] ss:$16 sps:$4 sm:$0xff]   ;;  %v3947_v27 = vld [vmem:[#allocation8 + $0x28c] ss:$16 sps:$4 sm:$0xff]   ;;  %v3942_v28 = vld [vmem:[#allocation8 + $0x600] ss:$16 sps:$4 sm:$0xff]  }
 0x180   :  { %v3945_v29 = vld [vmem:[#allocation8 + $0x288] ss:$16 sps:$4 sm:$0xff]   ;;  %v3950_v30 = vld [vmem:[#allocation8 + $0x624] ss:$16 sps:$4 sm:$0xff]   ;;  %v3953_v31 = vld [vmem:[#allocation8 + $0x2ac] ss:$16 sps:$4 sm:$0xff]  }
 0x181   :  { %v3956_v32 = vld [vmem:[#allocation8 + $0x644] ss:$16 sps:$4 sm:$0xff]   ;;  %v3959_v33 = vld [vmem:[#allocation8 + $0x2cc] ss:$16 sps:$4 sm:$0xff]  }
 0x182   :  { %2202 = vmatpush1.bf16.msra.mxu0 %v3882_v35  ;;  %2316 = vmatpush1.bf16.msra.mxu1 %v3885_v36  ;;  %v3954_v35 = vld [vmem:[#allocation8 + $0x640] ss:$16 sps:$4 sm:$0xff]   ;;  %v3957_v36 = vld [vmem:[#allocation8 + $0x2c8] ss:$16 sps:$4 sm:$0xff]  }
 0x183   :  { %2203 = vmatprep.subr.bf16.mxu0 %v3890_v38  ;;  %2317 = vmatprep.subr.bf16.mxu1 %v3893_v17  ;;  %v3962_v38 = vld [vmem:[#allocation8 + $0x664] ss:$16 sps:$4 sm:$0xff]   ;;  %v3965_v17 = vld [vmem:[#allocation8 + $0x2ec] ss:$16 sps:$4 sm:$0xff]  }
 0x186   :  { %2204 = vmatpush1.bf16.msra.mxu0 %v3888_v24  ;;  %2318 = vmatpush1.bf16.msra.mxu1 %v3891_v37  ;;  %v3960_v24 = vld [vmem:[#allocation8 + $0x660] ss:$16 sps:$4 sm:$0xff]   ;;  %v3963_v37 = vld [vmem:[#allocation8 + $0x2e8] ss:$16 sps:$4 sm:$0xff]  }
 0x187   :  { %2205 = vmatprep.subr.bf16.mxu0 %v3896_v46  ;;  %2319 = vmatprep.subr.bf16.mxu1 %v3899_v48  ;;  %v3968_v46 = vld [vmem:[#allocation8 + $0x684] ss:$16 sps:$4 sm:$0xff]   ;;  %v3971_v48 = vld [vmem:[#allocation8 + $0x30c] ss:$16 sps:$4 sm:$0xff]  }
 0x18a   :  { %2206 = vmatpush1.bf16.msra.mxu0 %v3894_v49  ;;  %2320 = vmatpush1.bf16.msra.mxu1 %v3897_v50  ;;  %v3966_v49 = vld [vmem:[#allocation8 + $0x680] ss:$16 sps:$4 sm:$0xff]   ;;  %v3969_v50 = vld [vmem:[#allocation8 + $0x308] ss:$16 sps:$4 sm:$0xff]  }
 0x18b   :  { %2207 = vmatprep.subr.bf16.mxu0 %v3902_v44  ;;  %2321 = vmatprep.subr.bf16.mxu1 %v3905_v51  ;;  %v3974_v44 = vld [vmem:[#allocation8 + $0x6a4] ss:$16 sps:$4 sm:$0xff]   ;;  %v3977_v51 = vld [vmem:[#allocation8 + $0x32c] ss:$16 sps:$4 sm:$0xff]  }
 0x18e   :  { %2208 = vmatpush1.bf16.msra.mxu0 %v3900_v52  ;;  %2322 = vmatpush1.bf16.msra.mxu1 %v3903_v53  ;;  %v3972_v52 = vld [vmem:[#allocation8 + $0x6a0] ss:$16 sps:$4 sm:$0xff]   ;;  %v3975_v53 = vld [vmem:[#allocation8 + $0x328] ss:$16 sps:$4 sm:$0xff]  }
 0x18f   :  { %2209 = vmatprep.subr.bf16.mxu0 %v3908_v54  ;;  %2323 = vmatprep.subr.bf16.mxu1 %v3911_v56  ;;  %v3980_v54 = vld [vmem:[#allocation8 + $0x6c4] ss:$16 sps:$4 sm:$0xff]   ;;  %v3983_v56 = vld [vmem:[#allocation8 + $0x34c] ss:$16 sps:$4 sm:$0xff]  }
 0x192   :  { %2210 = vmatpush1.bf16.msra.mxu0 %v3906_v57  ;;  %2324 = vmatpush1.bf16.msra.mxu1 %v3909_v59  ;;  %v3978_v57 = vld [vmem:[#allocation8 + $0x6c0] ss:$16 sps:$4 sm:$0xff]   ;;  %v3981_v59 = vld [vmem:[#allocation8 + $0x348] ss:$16 sps:$4 sm:$0xff]  }
 0x193   :  { %2211 = vmatprep.subr.bf16.mxu0 %v3914_v61  ;;  %2325 = vmatprep.subr.bf16.mxu1 %v3917_v63  ;;  %v3986_v61 = vld [vmem:[#allocation8 + $0x6e4] ss:$16 sps:$4 sm:$0xff]   ;;  %v3989_v63 = vld [vmem:[#allocation8 + $0x36c] ss:$16 sps:$4 sm:$0xff]  }
 0x196   :  { %2212 = vmatpush1.bf16.msra.mxu0 %v3912_v1  ;;  %2326 = vmatpush1.bf16.msra.mxu1 %v3915_v2  ;;  %v3984_v1 = vld [vmem:[#allocation8 + $0x6e0] ss:$16 sps:$4 sm:$0xff]   ;;  %v3987_v2 = vld [vmem:[#allocation8 + $0x368] ss:$16 sps:$4 sm:$0xff]  }
 0x197   :  { %2213 = vmatprep.subr.bf16.mxu0 %v3920_v3  ;;  %2348 = vmatprep.subr.bf16.mxu1 %v3923_v5  ;;  %v3992_v3 = vld [vmem:[#allocation8 + $0x704] ss:$16 sps:$4 sm:$0xff]   ;;  %v3995_v5 = vld [vmem:[#allocation8 + $0x38c] ss:$16 sps:$4 sm:$0xff]  }
 0x199   :  { %2328 = vmatmul.mubr.bf16.vlgmr.msra.gmra.mrb[16].mxu1 %v4584_v60  ;;  %v3936_v60 = vld [vmem:[#allocation8 + $0x5e0] ss:$16 sps:$4 sm:$0xff]  }
 0x19a   :  { %2214 = vmatpush1.bf16.msra.mxu0 %v3918_v7  ;;  %2337 = vmatprep.mubr.bf16.mxu1 %v4602_v21  ;;  %v3939_v21 = vld [vmem:[#allocation8 + $0x268] ss:$16 sps:$4 sm:$0xff]   ;;  %v3990_v7 = vld [vmem:[#allocation8 + $0x700] ss:$16 sps:$4 sm:$0xff]  }
 0x19b   :  { %2349 = vmatpush1.bf16.msra.mxu1 %v3921_v9  ;;  %2215 = vmatprep.subr.bf16.mxu0 %v3926_v11  ;;  %v3993_v9 = vld [vmem:[#allocation8 + $0x388] ss:$16 sps:$4 sm:$0xff]   ;;  %v3998_v11 = vld [vmem:[#allocation8 + $0x724] ss:$16 sps:$4 sm:$0xff]  }
 0x19c   :  { %2350 = vmatprep.subr.bf16.mxu1 %v3929_v12  ;;  %v4001_v12 = vld [vmem:[#allocation8 + $0x3ac] ss:$16 sps:$4 sm:$0xff]  }
 0x19e   :  { %2216 = vmatpush1.bf16.msra.mxu0 %v3924_v13  ;;  %v3996_v13 = vld [vmem:[#allocation8 + $0x720] ss:$16 sps:$4 sm:$0xff]  }
 0x19f   :  { %2351 = vmatpush1.bf16.msra.mxu1 %v3927_v15  ;;  %2217 = vmatprep.subr.bf16.mxu0 %v3932_v16  ;;  %v3999_v15 = vld [vmem:[#allocation8 + $0x3a8] ss:$16 sps:$4 sm:$0xff]   ;;  %v4004_v16 = vld [vmem:[#allocation8 + $0x744] ss:$16 sps:$4 sm:$0xff]  }
 0x1a0   :  { %2352 = vmatprep.subr.bf16.mxu1 %v3935_v18  ;;  %v4007_v18 = vld [vmem:[#allocation8 + $0x3cc] ss:$16 sps:$4 sm:$0xff]  }
 0x1a1   :  { %2338 = vmatmul.mubr.bf16.gmra.mrb[20].mxu1 %v4600_v19  ;;  %v3948_v19 = vld [vmem:[#allocation8 + $0x620] ss:$16 sps:$4 sm:$0xff]  }
 0x1a2   :  { %2218 = vmatpush1.bf16.msra.mxu0 %v3930_v20  ;;  %2380 = vmatprep.mubr.bf16.mxu1 %v4617_v62  ;;  %v3951_v62 = vld [vmem:[#allocation8 + $0x2a8] ss:$16 sps:$4 sm:$0xff]   ;;  %v4002_v20 = vld [vmem:[#allocation8 + $0x740] ss:$16 sps:$4 sm:$0xff]  }
 0x1a3   :  { %2353 = vmatpush1.bf16.msra.mxu1 %v3933_v22  ;;  %2219 = vmatprep.subr.bf16.mxu0 %v3938_v23  ;;  %v4005_v22 = vld [vmem:[#allocation8 + $0x3c8] ss:$16 sps:$4 sm:$0xff]   ;;  %v4010_v23 = vld [vmem:[#allocation8 + $0x764] ss:$16 sps:$4 sm:$0xff]  }
 0x1a4   :  { %2354 = vmatprep.subr.bf16.mxu1 %v3941_v25  ;;  %v4013_v25 = vld [vmem:[#allocation8 + $0x3ec] ss:$16 sps:$4 sm:$0xff]  }
 0x1a6   :  { %2220 = vmatpush1.bf16.msra.mxu0 %v3936_v60  ;;  %v4008_v60 = vld [vmem:[#allocation8 + $0x760] ss:$16 sps:$4 sm:$0xff]  }
 0x1a7   :  { %2355 = vmatpush1.bf16.msra.mxu1 %v3939_v21  ;;  %2242 = vmatprep.subr.bf16.mxu0 %v3944_v26  ;;  %v4011_v21 = vld [vmem:[#allocation8 + $0x3e8] ss:$16 sps:$4 sm:$0xff]   ;;  %v4016_v26 = vld [vmem:[#allocation8 + $0x784] ss:$16 sps:$4 sm:$0xff]  }
 0x1a8   :  { %2356 = vmatprep.subr.bf16.mxu1 %v3947_v27  ;;  %v4019_v27 = vld [vmem:[#allocation8 + $0x40c] ss:$16 sps:$4 sm:$0xff]  }
 0x1a9   :  { %2222 = vmatmul.mubr.bf16.vlgmr.msra.gmra.mrb[24].mxu0 %v4641_v0 }
 0x1aa   :  { %2243 = vmatpush1.bf16.msra.mxu0 %v3942_v28  ;;  %2231 = vmatprep.mubr.bf16.mxu0 %v4648_v14  ;;  %v4014_v28 = vld [vmem:[#allocation8 + $0x780] ss:$16 sps:$4 sm:$0xff]  }
 0x1ab   :  { %2357 = vmatpush1.bf16.msra.mxu1 %v3945_v29  ;;  %2244 = vmatprep.subr.bf16.mxu0 %v3950_v30  ;;  %v4017_v29 = vld [vmem:[#allocation8 + $0x408] ss:$16 sps:$4 sm:$0xff]   ;;  %v4022_v30 = vld [vmem:[#allocation8 + $0x7a4] ss:$16 sps:$4 sm:$0xff]  }
 0x1ac   :  { %2358 = vmatprep.subr.bf16.mxu1 %v3953_v31  ;;  %v4025_v31 = vld [vmem:[#allocation8 + $0x42c] ss:$16 sps:$4 sm:$0xff]  }
 0x1ae   :  { %2245 = vmatpush1.bf16.msra.mxu0 %v3948_v19  ;;  %v4020_v19 = vld [vmem:[#allocation8 + $0x7a0] ss:$16 sps:$4 sm:$0xff]  }
 0x1af   :  { %2359 = vmatpush1.bf16.msra.mxu1 %v3951_v62  ;;  %2246 = vmatprep.subr.bf16.mxu0 %v3956_v32  ;;  %v4023_v62 = vld [vmem:[#allocation8 + $0x428] ss:$16 sps:$4 sm:$0xff]   ;;  %v4028_v32 = vld [vmem:[#allocation8 + $0x7c4] ss:$16 sps:$4 sm:$0xff]  }
 0x1b0   :  { %2360 = vmatprep.subr.bf16.mxu1 %v3959_v33  ;;  %v4031_v33 = vld [vmem:[#allocation8 + $0x44c] ss:$16 sps:$4 sm:$0xff]  }
 0x1b1   :  { %2232 = vmatmul.mubr.bf16.gmra.mrb[28].mxu0 %v4646_v34 }
 0x1b2   :  { %2247 = vmatpush1.bf16.msra.mxu0 %v3954_v35  ;;  %2274 = vmatprep.mubr.bf16.mxu0 %v4621_v8  ;;  %v4026_v35 = vld [vmem:[#allocation8 + $0x7c0] ss:$16 sps:$4 sm:$0xff]  }
 0x1b3   :  { %2361 = vmatpush1.bf16.msra.mxu1 %v3957_v36  ;;  %2248 = vmatprep.subr.bf16.mxu0 %v3962_v38  ;;  %v4029_v36 = vld [vmem:[#allocation8 + $0x448] ss:$16 sps:$4 sm:$0xff]   ;;  %v4034_v38 = vld [vmem:[#allocation8 + $0x7e4] ss:$16 sps:$4 sm:$0xff]  }
 0x1b4   :  { %2362 = vmatprep.subr.bf16.mxu1 %v3965_v17  ;;  %v4037_v17 = vld [vmem:[#allocation8 + $0x46c] ss:$16 sps:$4 sm:$0xff]  }
 0x1b6   :  { %2249 = vmatpush1.bf16.msra.mxu0 %v3960_v24  ;;  %v4124_v24 = vld [vmem:[#allocation10 + $0x4] ss:$8 sps:$4 sm:$0xff]  }
 0x1b7   :  { %2363 = vmatpush1.bf16.msra.mxu1 %v3963_v37  ;;  %2250 = vmatprep.subr.bf16.mxu0 %v3968_v46  ;;  %v4040_v37 = vld [vmem:[#allocation8 + $0x48c] ss:$16 sps:$4 sm:$0xff]   ;;  %v4122_v46 = vld [vmem:[#allocation10] ss:$8 sps:$4 sm:$0xff]  }
 0x1b8   :  { %2364 = vmatprep.subr.bf16.mxu1 %v3971_v48  ;;  %v4038_v48 = vld [vmem:[#allocation8 + $0x488] ss:$16 sps:$4 sm:$0xff]  }
 0x1ba   :  { %2251 = vmatpush1.bf16.msra.mxu0 %v3966_v49  ;;  %v4127_v49 = vld [vmem:[#allocation10 + $0x14] ss:$8 sps:$4 sm:$0xff]  }
 0x1bb   :  { %2365 = vmatpush1.bf16.msra.mxu1 %v3969_v50  ;;  %2252 = vmatprep.subr.bf16.mxu0 %v3974_v44  ;;  %v4043_v50 = vld [vmem:[#allocation8 + $0x4ac] ss:$16 sps:$4 sm:$0xff]  }
 0x1bc   :  { %2366 = vmatprep.subr.bf16.mxu1 %v3977_v51  ;;  %v4130_v44 = vld [vmem:[#allocation10 + $0x24] ss:$8 sps:$4 sm:$0xff]  }
 0x1bd   :  { %v4046_v51 = vld [vmem:[#allocation8 + $0x4cc] ss:$16 sps:$4 sm:$0xff]  }
 0x1be   :  { %2253 = vmatpush1.bf16.msra.mxu0 %v3972_v52  ;;  %v4128_v52 = vld [vmem:[#allocation10 + $0x20] ss:$8 sps:$4 sm:$0xff]  }
 0x1bf   :  { %2367 = vmatpush1.bf16.msra.mxu1 %v3975_v53  ;;  %2254 = vmatprep.subr.bf16.mxu0 %v3980_v54  ;;  %v4044_v53 = vld [vmem:[#allocation8 + $0x4c8] ss:$16 sps:$4 sm:$0xff]   ;;  %v4133_v54 = vld [vmem:[#allocation10 + $0x34] ss:$8 sps:$4 sm:$0xff]  }
 0x1c0   :  { %2368 = vmatprep.subr.bf16.mxu1 %v3983_v56  ;;  %v4049_v56 = vld [vmem:[#allocation8 + $0x4ec] ss:$16 sps:$4 sm:$0xff]  }
 0x1c2   :  { %2255 = vmatpush1.bf16.msra.mxu0 %v3978_v57  ;;  %v4131_v57 = vld [vmem:[#allocation10 + $0x30] ss:$8 sps:$4 sm:$0xff]  }
 0x1c3   :  { %2369 = vmatpush1.bf16.msra.mxu1 %v3981_v59  ;;  %2256 = vmatprep.subr.bf16.mxu0 %v3986_v61  ;;  %v4047_v59 = vld [vmem:[#allocation8 + $0x4e8] ss:$16 sps:$4 sm:$0xff]   ;;  %v4136_v61 = vld [vmem:[#allocation10 + $0x44] ss:$8 sps:$4 sm:$0xff]  }
 0x1c4   :  { %2370 = vmatprep.subr.bf16.mxu1 %v3989_v63  ;;  %v4052_v63 = vld [vmem:[#allocation8 + $0x50c] ss:$16 sps:$4 sm:$0xff]  }
 0x1c6   :  { %2257 = vmatpush1.bf16.msra.mxu0 %v3984_v1  ;;  %v4134_v1 = vld [vmem:[#allocation10 + $0x40] ss:$8 sps:$4 sm:$0xff]  }
 0x1c7   :  { %2371 = vmatpush1.bf16.msra.mxu1 %v3987_v2  ;;  %2258 = vmatprep.subr.bf16.mxu0 %v3992_v3  ;;  %v4050_v2 = vld [vmem:[#allocation8 + $0x508] ss:$16 sps:$4 sm:$0xff]   ;;  %v4139_v3 = vld [vmem:[#allocation10 + $0x54] ss:$8 sps:$4 sm:$0xff]  }
 0x1c8   :  { %2372 = vmatprep.subr.bf16.mxu1 %v3995_v5  ;;  %v4055_v5 = vld [vmem:[#allocation8 + $0x52c] ss:$16 sps:$4 sm:$0xff]  }
 0x1ca   :  { %2259 = vmatpush1.bf16.msra.mxu0 %v3990_v7  ;;  %v4137_v7 = vld [vmem:[#allocation10 + $0x50] ss:$8 sps:$4 sm:$0xff]  }
 0x1cb   :  { %2373 = vmatpush1.bf16.msra.mxu1 %v3993_v9  ;;  %2260 = vmatprep.subr.bf16.mxu0 %v3998_v11  ;;  %v4053_v9 = vld [vmem:[#allocation8 + $0x528] ss:$16 sps:$4 sm:$0xff]   ;;  %v4142_v11 = vld [vmem:[#allocation10 + $0x64] ss:$8 sps:$4 sm:$0xff]  }
 0x1cc   :  { %2374 = vmatprep.subr.bf16.mxu1 %v4001_v12  ;;  %v4058_v12 = vld [vmem:[#allocation8 + $0x54c] ss:$16 sps:$4 sm:$0xff]  }
 0x1ce   :  { %2261 = vmatpush1.bf16.msra.mxu0 %v3996_v13  ;;  %v4140_v13 = vld [vmem:[#allocation10 + $0x60] ss:$8 sps:$4 sm:$0xff]  }
 0x1cf   :  { %2375 = vmatpush1.bf16.msra.mxu1 %v3999_v15  ;;  %2262 = vmatprep.subr.bf16.mxu0 %v4004_v16  ;;  %v4056_v15 = vld [vmem:[#allocation8 + $0x548] ss:$16 sps:$4 sm:$0xff]   ;;  %v4145_v16 = vld [vmem:[#allocation10 + $0x74] ss:$8 sps:$4 sm:$0xff]  }
 0x1d0   :  { %2376 = vmatprep.subr.bf16.mxu1 %v4007_v18  ;;  %v4061_v18 = vld [vmem:[#allocation8 + $0x56c] ss:$16 sps:$4 sm:$0xff]  }
 0x1d2   :  { %2263 = vmatpush1.bf16.msra.mxu0 %v4002_v20  ;;  %v4143_v20 = vld [vmem:[#allocation10 + $0x70] ss:$8 sps:$4 sm:$0xff]  }
 0x1d3   :  { %2377 = vmatpush1.bf16.msra.mxu1 %v4005_v22  ;;  %2264 = vmatprep.subr.bf16.mxu0 %v4010_v23  ;;  %v4059_v22 = vld [vmem:[#allocation8 + $0x568] ss:$16 sps:$4 sm:$0xff]   ;;  %v4148_v23 = vld [vmem:[#allocation10 + $0x84] ss:$8 sps:$4 sm:$0xff]  }
 0x1d4   :  { %2378 = vmatprep.subr.bf16.mxu1 %v4013_v25  ;;  %v4064_v25 = vld [vmem:[#allocation8 + $0x58c] ss:$16 sps:$4 sm:$0xff]  }
 0x1d6   :  { %2265 = vmatpush1.bf16.msra.mxu0 %v4008_v60  ;;  %v4146_v60 = vld [vmem:[#allocation10 + $0x80] ss:$8 sps:$4 sm:$0xff]  }
 0x1d7   :  { %2379 = vmatpush1.bf16.msra.mxu1 %v4011_v21  ;;  %2266 = vmatprep.subr.bf16.mxu0 %v4016_v26  ;;  %v4062_v21 = vld [vmem:[#allocation8 + $0x588] ss:$16 sps:$4 sm:$0xff]   ;;  %v4151_v26 = vld [vmem:[#allocation10 + $0x94] ss:$8 sps:$4 sm:$0xff]  }
 0x1d8   :  { %2401 = vmatprep.subr.bf16.mxu1 %v4019_v27  ;;  %v4067_v27 = vld [vmem:[#allocation8 + $0x5ac] ss:$16 sps:$4 sm:$0xff]  }
 0x1da   :  { %2381 = vmatmul.mubr.bf16.vlgmr.msra.gmra.mrb[16].mxu1 %v4613_v55  ;;  %2267 = vmatpush1.bf16.msra.mxu0 %v4014_v28  ;;  %v4032_v55 = vld [vmem:[#allocation8 + $0x7e0] ss:$16 sps:$4 sm:$0xff]  }
 0x1db   :  { %2390 = vmatprep.mubr.bf16.mxu1 %v4635_v41  ;;  %2402 = vmatpush1.bf16.msra.mxu1 %v4017_v29  ;;  %v4035_v41 = vld [vmem:[#allocation8 + $0x468] ss:$16 sps:$4 sm:$0xff]  }
 0x1dc   :  { %2268 = vmatprep.subr.bf16.mxu0 %v4022_v30  ;;  %2403 = vmatprep.subr.bf16.mxu1 %v4025_v31  ;;  %v4149_v28 = vld [vmem:[#allocation10 + $0x90] ss:$8 sps:$4 sm:$0xff]   ;;  %v4154_v30 = vld [vmem:[#allocation10 + $0xa4] ss:$8 sps:$4 sm:$0xff]  }
 0x1dd   :  { %v4065_v29 = vld [vmem:[#allocation8 + $0x5a8] ss:$16 sps:$4 sm:$0xff]   ;;  %v4070_v31 = vld [vmem:[#allocation8 + $0x5cc] ss:$16 sps:$4 sm:$0xff]  }
 0x1de   :  { %2269 = vmatpush1.bf16.msra.mxu0 %v4020_v19  ;;  %v4152_v19 = vld [vmem:[#allocation10 + $0xa0] ss:$8 sps:$4 sm:$0xff]  }
 0x1df   :  { %2404 = vmatpush1.bf16.msra.mxu1 %v4023_v62  ;;  %2270 = vmatprep.subr.bf16.mxu0 %v4028_v32  ;;  %v4068_v62 = vld [vmem:[#allocation8 + $0x5c8] ss:$16 sps:$4 sm:$0xff]   ;;  %v4157_v32 = vld [vmem:[#allocation10 + $0xb4] ss:$8 sps:$4 sm:$0xff]  }
 0x1e0   :  { %2405 = vmatprep.subr.bf16.mxu1 %v4031_v33  ;;  %v4073_v33 = vld [vmem:[#allocation8 + $0x5ec] ss:$16 sps:$4 sm:$0xff]  }
 0x1e2   :  { %2391 = vmatmul.mubr.bf16.gmra.mrb[20].mxu1 %v4631_v39  ;;  %2271 = vmatpush1.bf16.msra.mxu0 %v4026_v35  ;;  %v4125_v39 = vld [vmem:[#allocation10 + $0x10] ss:$8 sps:$4 sm:$0xff]  }
 0x1e3   :  { %2406 = vmatpush1.bf16.msra.mxu1 %v4029_v36  ;;  %2433 = vmatprep.mubr.bf16.mxu1 %v4643_v10  ;;  %v4041_v10 = vld [vmem:[#allocation8 + $0x4a8] ss:$16 sps:$4 sm:$0xff]  }
 0x1e4   :  { %2272 = vmatprep.subr.bf16.mxu0 %v4034_v38  ;;  %2407 = vmatprep.subr.bf16.mxu1 %v4037_v17  ;;  %v4155_v35 = vld [vmem:[#allocation10 + $0xb0] ss:$8 sps:$4 sm:$0xff]   ;;  %v4160_v38 = vld [vmem:[#allocation10 + $0xc4] ss:$8 sps:$4 sm:$0xff]  }
 0x1e5   :  { %v4071_v36 = vld [vmem:[#allocation8 + $0x5e8] ss:$16 sps:$4 sm:$0xff]   ;;  %v4076_v17 = vld [vmem:[#allocation8 + $0x60c] ss:$16 sps:$4 sm:$0xff]  }
 0x1e6   :  { %2273 = vmatpush1.bf16.msra.mxu0 %v4032_v55  ;;  %v4158_v55 = vld [vmem:[#allocation10 + $0xc0] ss:$8 sps:$4 sm:$0xff]  }
 0x1e7   :  { %2408 = vmatpush1.bf16.msra.mxu1 %v4035_v41  ;;  %2927 = vmatprep.subr.bf16.mxu0 %v4124_v24  ;;  %v4074_v41 = vld [vmem:[#allocation8 + $0x608] ss:$16 sps:$4 sm:$0xff]   ;;  %v4079_v24 = vld [vmem:[#allocation8 + $0x62c] ss:$16 sps:$4 sm:$0xff]  }
 0x1e8   :  { %2409 = vmatprep.subr.bf16.mxu1 %v4040_v37  ;;  %v4163_v37 = vld [vmem:[#allocation10 + $0xd4] ss:$8 sps:$4 sm:$0xff]  }
 0x1e9   :  { %2275 = vmatmul.mubr.bf16.vlgmr.msra.gmra.mrb[24].mxu0 %v4615_v58 }
 0x1ea   :  { %2284 = vmatprep.mubr.bf16.mxu0 %v4637_v47  ;;  %2928 = vmatpush1.bf16.msra.mxu0 %v4122_v46  ;;  %v4161_v46 = vld [vmem:[#allocation10 + $0xd0] ss:$8 sps:$4 sm:$0xff]  }
 0x1eb   :  { %2410 = vmatpush1.bf16.msra.mxu1 %v4038_v48  ;;  %2929 = vmatprep.subr.bf16.mxu0 %v4127_v49  ;;  %v4077_v48 = vld [vmem:[#allocation8 + $0x628] ss:$16 sps:$4 sm:$0xff]   ;;  %v4082_v49 = vld [vmem:[#allocation8 + $0x64c] ss:$16 sps:$4 sm:$0xff]  }
 0x1ec   :  { %2411 = vmatprep.subr.bf16.mxu1 %v4043_v50  ;;  %v4080_v50 = vld [vmem:[#allocation8 + $0x648] ss:$16 sps:$4 sm:$0xff]  }
 0x1ee   :  { %2930 = vmatpush1.bf16.msra.mxu0 %v4125_v39  ;;  %v4085_v39 = vld [vmem:[#allocation8 + $0x66c] ss:$16 sps:$4 sm:$0xff]  }
 0x1ef   :  { %2412 = vmatpush1.bf16.msra.mxu1 %v4041_v10  ;;  %2931 = vmatprep.subr.bf16.mxu0 %v4130_v44  ;;  %v4088_v10 = vld [vmem:[#allocation8 + $0x68c] ss:$16 sps:$4 sm:$0xff]  }
 0x1f0   :  { %2413 = vmatprep.subr.bf16.mxu1 %v4046_v51  ;;  %v4091_v44 = vld [vmem:[#allocation8 + $0x6ac] ss:$16 sps:$4 sm:$0xff]   ;;  %v4089_v51 = vld [vmem:[#allocation8 + $0x6a8] ss:$16 sps:$4 sm:$0xff]  }
 0x1f1   :  { %2285 = vmatmul.mubr.bf16.gmra.mrb[28].mxu0 %v4633_v40 }
 0x1f2   :  { %2932 = vmatpush1.bf16.msra.mxu0 %v4128_v52 }
 0x1f3   :  { %2414 = vmatpush1.bf16.msra.mxu1 %v4044_v53  ;;  %2933 = vmatprep.subr.bf16.mxu0 %v4133_v54  ;;  %v4094_v53 = vld [vmem:[#allocation8 + $0x6cc] ss:$16 sps:$4 sm:$0xff]  }
 0x1f4   :  { %2415 = vmatprep.subr.bf16.mxu1 %v4049_v56 }
 0x1f6   :  { %2934 = vmatpush1.bf16.msra.mxu0 %v4131_v57  ;;  %v4097_v57 = vld [vmem:[#allocation8 + $0x6ec] ss:$16 sps:$4 sm:$0xff]  }
 0x1f7   :  { %2416 = vmatpush1.bf16.msra.mxu1 %v4047_v59  ;;  %2935 = vmatprep.subr.bf16.mxu0 %v4136_v61  ;;  %v4095_v59 = vld [vmem:[#allocation8 + $0x6e8] ss:$16 sps:$4 sm:$0xff]   ;;  %v4100_v61 = vld [vmem:[#allocation8 + $0x70c] ss:$16 sps:$4 sm:$0xff]  }
 0x1f8   :  { %2417 = vmatprep.subr.bf16.mxu1 %v4052_v63 }
 0x1fa   :  { %2936 = vmatpush1.bf16.msra.mxu0 %v4134_v1 }
 0x1fb   :  { %2418 = vmatpush1.bf16.msra.mxu1 %v4050_v2  ;;  %2937 = vmatprep.subr.bf16.mxu0 %v4139_v3  ;;  %v4098_v3 = vld [vmem:[#allocation8 + $0x708] ss:$16 sps:$4 sm:$0xff]  }
 0x1fc   :  { %2419 = vmatprep.subr.bf16.mxu1 %v4055_v5 }
 0x1fe   :  { %2938 = vmatpush1.bf16.msra.mxu0 %v4137_v7  ;;  %v4103_v7 = vld [vmem:[#allocation8 + $0x72c] ss:$16 sps:$4 sm:$0xff]  }
 0x1ff   :  { %2420 = vmatpush1.bf16.msra.mxu1 %v4053_v9  ;;  %2939 = vmatprep.subr.bf16.mxu0 %v4142_v11  ;;  %v4101_v9 = vld [vmem:[#allocation8 + $0x728] ss:$16 sps:$4 sm:$0xff]   ;;  %v4106_v11 = vld [vmem:[#allocation8 + $0x74c] ss:$16 sps:$4 sm:$0xff]  }
 0x200   :  { %2421 = vmatprep.subr.bf16.mxu1 %v4058_v12  ;;  %v4166_v12 = vld [vmem:[#allocation10 + $0xe4] ss:$8 sps:$4 sm:$0xff]  }
 0x202   :  { %2940 = vmatpush1.bf16.msra.mxu0 %v4140_v13  ;;  %v4104_v13 = vld [vmem:[#allocation8 + $0x748] ss:$16 sps:$4 sm:$0xff]  }
 0x203   :  { %2422 = vmatpush1.bf16.msra.mxu1 %v4056_v15  ;;  %2941 = vmatprep.subr.bf16.mxu0 %v4145_v16  ;;  %v4164_v15 = vld [vmem:[#allocation10 + $0xe0] ss:$8 sps:$4 sm:$0xff]   ;;  %v4109_v16 = vld [vmem:[#allocation8 + $0x76c] ss:$16 sps:$4 sm:$0xff]  }
 0x204   :  { %2423 = vmatprep.subr.bf16.mxu1 %v4061_v18  ;;  %v4169_v18 = vld [vmem:[#allocation10 + $0xf4] ss:$8 sps:$4 sm:$0xff]  }
 0x206   :  { %2942 = vmatpush1.bf16.msra.mxu0 %v4143_v20  ;;  %v4107_v20 = vld [vmem:[#allocation8 + $0x768] ss:$16 sps:$4 sm:$0xff]  }
 0x207   :  { %2424 = vmatpush1.bf16.msra.mxu1 %v4059_v22  ;;  %2943 = vmatprep.subr.bf16.mxu0 %v4148_v23  ;;  %v4167_v22 = vld [vmem:[#allocation10 + $0xf0] ss:$8 sps:$4 sm:$0xff]   ;;  %v4112_v23 = vld [vmem:[#allocation8 + $0x78c] ss:$16 sps:$4 sm:$0xff]  }
 0x208   :  { %2425 = vmatprep.subr.bf16.mxu1 %v4064_v25  ;;  %v4110_v25 = vld [vmem:[#allocation8 + $0x788] ss:$16 sps:$4 sm:$0xff]  }
 0x20a   :  { %2944 = vmatpush1.bf16.msra.mxu0 %v4146_v60  ;;  %v4115_v60 = vld [vmem:[#allocation8 + $0x7ac] ss:$16 sps:$4 sm:$0xff]  }
 0x20b   :  { %2426 = vmatpush1.bf16.msra.mxu1 %v4062_v21  ;;  %2945 = vmatprep.subr.bf16.mxu0 %v4151_v26  ;;  %v4113_v21 = vld [vmem:[#allocation8 + $0x7a8] ss:$16 sps:$4 sm:$0xff]   ;;  %v4118_v26 = vld [vmem:[#allocation8 + $0x7cc] ss:$16 sps:$4 sm:$0xff]  }
 0x20c   :  { %2427 = vmatprep.subr.bf16.mxu1 %v4067_v27  ;;  %v4116_v27 = vld [vmem:[#allocation8 + $0x7c8] ss:$16 sps:$4 sm:$0xff]  }
 0x20e   :  { %2946 = vmatpush1.bf16.msra.mxu0 %v4149_v28  ;;  %v4172_v28 = vld [vmem:[#allocation10 + $0x104] ss:$8 sps:$4 sm:$0xff]  }
 0x20f   :  { %2428 = vmatpush1.bf16.msra.mxu1 %v4065_v29  ;;  %2947 = vmatprep.subr.bf16.mxu0 %v4154_v30  ;;  %v4121_v29 = vld [vmem:[#allocation8 + $0x7ec] ss:$16 sps:$4 sm:$0xff]   ;;  %v4119_v30 = vld [vmem:[#allocation8 + $0x7e8] ss:$16 sps:$4 sm:$0xff]  }
 0x210   :  { %2429 = vmatprep.subr.bf16.mxu1 %v4070_v31  ;;  %v4691_v31 = vld [vmem:[%s4738_s4] sm:$0xf] }
 0x212   :  { %2948 = vmatpush1.bf16.msra.mxu0 %v4152_v19  ;;  %v786_v19 = vrot.slane %v4691_v31, %v4573_v43 }
 0x213   :  { %2430 = vmatpush1.bf16.msra.mxu1 %v4068_v62  ;;  %2949 = vmatprep.subr.bf16.mxu0 %v4157_v32  ;;  %v790_v62 = vrot.slane %v4691_v31, %v4578_v45 }
 0x214   :  { %2431 = vmatprep.subr.bf16.mxu1 %v4073_v33 }
 0x216   :  { %2950 = vmatpush1.bf16.msra.mxu0 %v4155_v35 }
 0x217   :  { %2432 = vmatpush1.bf16.msra.mxu1 %v4071_v36  ;;  %2951 = vmatprep.subr.bf16.mxu0 %v4160_v38 }
 0x218   :  { %2454 = vmatprep.subr.bf16.mxu1 %v4076_v17 }
 0x21a   :  { %2434 = vmatmul.mubr.bf16.vlgmr.msra.gmra.mrb[16].mxu1 %v4641_v0  ;;  %2952 = vmatpush1.bf16.msra.mxu0 %v4158_v55  ;;  %v4083_v0 = vld [vmem:[#allocation8 + $0x668] ss:$16 sps:$4 sm:$0xff]  }
 0x21b   :  { %2443 = vmatprep.mubr.bf16.mxu1 %v4648_v14  ;;  %2455 = vmatpush1.bf16.msra.mxu1 %v4074_v41  ;;  %v4086_v14 = vld [vmem:[#allocation8 + $0x688] ss:$16 sps:$4 sm:$0xff]  }
 0x21c   :  { %2456 = vmatprep.subr.bf16.mxu1 %v4079_v24  ;;  %2953 = vmatprep.subr.bf16.mxu0 %v4163_v37  ;;  %v4218_v37 = vld [vmem:[#allocation11 + $0x40] sm:$0xff]  }
 0x21e   :  { %2954 = vmatpush1.bf16.msra.mxu0 %v4161_v46  ;;  %v4219_v46 = vld [vmem:[#allocation11] sm:$0xff]  }
 0x21f   :  { %2457 = vmatpush1.bf16.msra.mxu1 %v4077_v48  ;;  %2955 = vmatprep.subr.bf16.mxu0 %v4166_v12  ;;  %v4220_v48 = vld [vmem:[#allocation11 + $0x48] sm:$0xff]   ;;  %v4173_v12 = vld [vmem:[#allocation10 + $0x110] ss:$8 sps:$4 sm:$0xff]  }
 0x220   :  { %2458 = vmatprep.subr.bf16.mxu1 %v4082_v49 }
 0x222   :  { %2444 = vmatmul.mubr.bf16.gmra.mrb[20].mxu1 %v4646_v34  ;;  %2956 = vmatpush1.bf16.msra.mxu0 %v4164_v15 }
 0x223   :  { %2459 = vmatpush1.bf16.msra.mxu1 %v4080_v50  ;;  %2486 = vmatprep.mubr.bf16.mxu1 %v4621_v8  ;;  %v4092_v8 = vld [vmem:[#allocation8 + $0x6c8] ss:$16 sps:$4 sm:$0xff]  }
 0x224   :  { %2460 = vmatprep.subr.bf16.mxu1 %v4085_v39  ;;  %2957 = vmatprep.subr.bf16.mxu0 %v4169_v18 }
 0x226   :  { %2958 = vmatpush1.bf16.msra.mxu0 %v4167_v22  ;;  %v4225_v22 = vld [vmem:[#allocation11 + $0x18] sm:$0xff]  }
 0x227   :  { %2461 = vmatpush1.bf16.msra.mxu1 %v4083_v0  ;;  %2980 = vmatprep.subr.bf16.mxu0 %v4172_v28  ;;  %v4228_v28 = vld [vmem:[#allocation11 + $0x68] sm:$0xff]  }
 0x228   :  { %2462 = vmatprep.subr.bf16.mxu1 %v4088_v10 }
 0x22b   :  { %2463 = vmatpush1.bf16.msra.mxu1 %v4086_v14 }
 0x22c   :  { %v4669_v52 = vpop.f32.mrb[8].mxu1  ;;  %2464 = vmatprep.subr.bf16.mxu1 %v4091_v44  ;;  %v4221_v44 = vld [vmem:[#allocation11 + $0x8] sm:$0xff]  }
 0x22d   :  { %v4671_v54 = vpop.f32.mrb[9].mxu1  ;;  %v2118_v32 = vadd.f32 %v4669_v52, %v786_v19 }
 0x22e   :  { %v4673_v56 = vpop.f32.mrb[10].mxu1  ;;  %v2120_v33 = vadd.f32 %v4671_v54, %v790_v62  ;;  %v4170_v54 = vld [vmem:[#allocation10 + $0x100] ss:$8 sps:$4 sm:$0xff]  }
 0x22f   :  { %2465 = vmatpush1.bf16.msra.mxu1 %v4089_v51  ;;  %v4675_v34 = vpop.f32.mrb[11].mxu1 }
 0x230   :  { %2466 = vmatprep.subr.bf16.mxu1 %v4094_v53  ;;  %v2124_v36 = vadd.f32 %v4675_v34, %v790_v62 }
 0x233   :  { %2467 = vmatpush1.bf16.msra.mxu1 %v4092_v8 }
 0x234   :  { %2468 = vmatprep.subr.bf16.mxu1 %v4097_v57  ;;  %v4677_v63 = vpop.f32.mrb[12].mxu1 }
 0x235   :  { %v4679_v1 = vpop.f32.mrb[13].mxu1  ;;  %v2128_v10 = vadd.f32 %v4677_v63, %v786_v19 }
 0x236   :  { %v4681_v2 = vpop.f32.mrb[14].mxu1  ;;  %v2130_v51 = vadd.f32 %v4679_v1, %v790_v62  ;;  %v4223_v1 = vld [vmem:[#allocation11 + $0x10] sm:$0xff]  }
 0x237   :  { %2469 = vmatpush1.bf16.msra.mxu1 %v4095_v59  ;;  %v4683_v5 = vpop.f32.mrb[15].mxu1  ;;  %v2132_v34 = vadd.f32 %v4681_v2, %v786_v19  ;;  %v4175_v59 = vld [vmem:[#allocation10 + $0x114] ss:$8 sps:$4 sm:$0xff]  }
 0x238   :  { %2470 = vmatprep.subr.bf16.mxu1 %v4100_v61  ;;  %v2134_v61 = vadd.f32 %v4683_v5, %v790_v62  ;;  %v4185_v62 = vld [vmem:[#allocation10 + $0x150] ss:$8 sps:$4 sm:$0xff]  }
 0x23b   :  { %2471 = vmatpush1.bf16.msra.mxu1 %v4098_v3 }
 0x23c   :  { %2472 = vmatprep.subr.bf16.mxu1 %v4103_v7 }
 0x23f   :  { %2473 = vmatpush1.bf16.msra.mxu1 %v4101_v9 }
 0x240   :  { %2474 = vmatprep.subr.bf16.mxu1 %v4106_v11 }
 0x243   :  { %2475 = vmatpush1.bf16.msra.mxu1 %v4104_v13  ;;  %v4224_v13 = vld [vmem:[#allocation11 + $0x58] sm:$0xff]  }
 0x244   :  { %2476 = vmatprep.subr.bf16.mxu1 %v4109_v16  ;;  %v4178_v16 = vld [vmem:[#allocation10 + $0x124] ss:$8 sps:$4 sm:$0xff]  }
 0x247   :  { %2477 = vmatpush1.bf16.msra.mxu1 %v4107_v20 }
 0x248   :  { %2478 = vmatprep.subr.bf16.mxu1 %v4112_v23 }
 0x24b   :  { %2479 = vmatpush1.bf16.msra.mxu1 %v4110_v25  ;;  %v4176_v25 = vld [vmem:[#allocation10 + $0x120] ss:$8 sps:$4 sm:$0xff]  }
 0x24c   :  { %2480 = vmatprep.subr.bf16.mxu1 %v4115_v60  ;;  %v4226_v60 = vld [vmem:[#allocation11 + $0x60] sm:$0xff]  }
 0x24f   :  { %2481 = vmatpush1.bf16.msra.mxu1 %v4113_v21  ;;  %v4181_v21 = vld [vmem:[#allocation10 + $0x134] ss:$8 sps:$4 sm:$0xff]  }
 0x250   :  { %2482 = vmatprep.subr.bf16.mxu1 %v4118_v26  ;;  %v4227_v26 = vld [vmem:[#allocation11 + $0x20] sm:$0xff]  }
 0x253   :  { %2483 = vmatpush1.bf16.msra.mxu1 %v4116_v27  ;;  %v4179_v27 = vld [vmem:[#allocation10 + $0x130] ss:$8 sps:$4 sm:$0xff]  }
 0x254   :  { %2484 = vmatprep.subr.bf16.mxu1 %v4121_v29  ;;  %v4184_v29 = vld [vmem:[#allocation10 + $0x144] ss:$8 sps:$4 sm:$0xff]  }
 0x257   :  { %2485 = vmatpush1.bf16.msra.mxu1 %v4119_v30  ;;  %v4182_v30 = vld [vmem:[#allocation10 + $0x140] ss:$8 sps:$4 sm:$0xff]  }
 0x258   :  { %3614 = vmatprep.subr.bf16.mxu1 %v4218_v37  ;;  %v4208_v37 = vld [vmem:[#allocation10 + $0x1c4] ss:$8 sps:$4 sm:$0xff]  }
 0x25a   :  { %2487 = vmatmul.mubr.bf16.vlgmr.msra.gmra.mrb[16].mxu1 %v4615_v58 }
 0x25b   :  { %2496 = vmatprep.mubr.bf16.mxu1 %v4637_v47  ;;  %v2122_v47 = vadd.f32 %v4673_v56, %v786_v19  ;;  %3615 = vmatpush3.bf16.msra.mxu1 %v4219_v46  ;;  %v4222_v56 = vld [vmem:[#allocation11 + $0x50] sm:$0xff]   ;;  %v4206_v46 = vld [vmem:[#allocation10 + $0x1c0] ss:$8 sps:$4 sm:$0xff]  }
 0x25c   :  { %3616 = vmatprep.subr.bf16.mxu1 %v4220_v48  ;;  %v4187_v19 = vld [vmem:[#allocation10 + $0x154] ss:$8 sps:$4 sm:$0xff]  }
 0x25d   :  { %v4211_v48 = vld [vmem:[#allocation10 + $0x1d4] ss:$8 sps:$4 sm:$0xff]  }
 0x25f   :  { %3617 = vmatpush3.bf16.msra.mxu1 %v4221_v44  ;;  %v798_v44 = vrot.slane %v4691_v31, %v152_v6 }
 0x260   :  { %3618 = vmatprep.subr.bf16.mxu1 %v4222_v56 }
 0x262   :  { %2497 = vmatmul.mubr.bf16.gmra.mrb[20].mxu1 %v4633_v40 }
 0x263   :  { %3619 = vmatpush3.bf16.msra.mxu1 %v4223_v1 }
 0x264   :  { %3620 = vmatprep.subr.bf16.mxu1 %v4224_v13 }
 0x267   :  { %3621 = vmatpush3.bf16.msra.mxu1 %v4225_v22  ;;  %v4229_v22 = vld [vmem:[#allocation11 + $0x28] sm:$0xff]  }
 0x268   :  { %3622 = vmatprep.subr.bf16.mxu1 %v4226_v60  ;;  %v4232_v60 = vld [vmem:[#allocation11 + $0x78] sm:$0xff]  }
 0x26b   :  { %3623 = vmatpush3.bf16.msra.mxu1 %v4227_v26  ;;  %v2595_v26 = vld [vmem:[%s4740_s6] sm:$0x3] }
 0x26c   :  { %3624 = vmatprep.subr.bf16.mxu1 %v4228_v28  ;;  %v2604_v28 = vrot.slane %v2595_v26, %v4578_v45 }
 0x26f   :  { %3625 = vmatpush3.bf16.msra.mxu1 %v4229_v22 }
 0x2bc   :  { %v2276_v58 = vpop.f32.mrb[24].mxu0 }
 0x2bd   :  { %v3643_v35 = vadd.f32 %v2276_v58, %v2118_v32  ;;  %v2278_v40 = vpop.f32.mrb[25].mxu0  ;;  %v4190_v32 = vld [vmem:[#allocation10 + $0x164] ss:$8 sps:$4 sm:$0xff]   ;;  %v4193_v58 = vld [vmem:[#allocation10 + $0x174] ss:$8 sps:$4 sm:$0xff]  }
 0x2be   :  { %v3645_v38 = vadd.f32 %v2278_v40, %v2120_v33  ;;  %v2280_v17 = vpop.f32.mrb[26].mxu0  ;;  %v4188_v33 = vld [vmem:[#allocation10 + $0x160] ss:$8 sps:$4 sm:$0xff]  }
 0x2bf   :  { %v3647_v55 = vadd.f32 %v2280_v17, %v2122_v47  ;;  %v2282_v41 = vpop.f32.mrb[27].mxu0  ;;  %v2507_v49 = vmax.f32 %v3643_v35, 0.0  ;;  %v4191_v47 = vld [vmem:[#allocation10 + $0x170] ss:$8 sps:$4 sm:$0xff]   ;;  %v4196_v35 = vld [vmem:[#allocation10 + $0x184] ss:$8 sps:$4 sm:$0xff]  }
 0x2c0   :  { %v3649_v24 = vadd.f32 %v2282_v41, %v2124_v36  ;;  %v2508_v39 = vmax.f32 %v3645_v38, 0.0  ;;  %v4194_v40 = vld [vmem:[#allocation10 + $0x180] ss:$8 sps:$4 sm:$0xff]   ;;  %v4199_v36 = vld [vmem:[#allocation10 + $0x194] ss:$8 sps:$4 sm:$0xff]  }
 0x2c1   :  { %v2511_v50 = vmax.f32 %v3647_v55, 0.0  ;;  %v4197_v38 = vld [vmem:[#allocation10 + $0x190] ss:$8 sps:$4 sm:$0xff]   ;;  %v4202_v17 = vld [vmem:[#allocation10 + $0x1a4] ss:$8 sps:$4 sm:$0xff]  }
 0x2c2   :  { %v2512_v0 = vmax.f32 %v3649_v24, 0.0  ;;  %v4200_v55 = vld [vmem:[#allocation10 + $0x1a0] ss:$8 sps:$4 sm:$0xff]   ;;  %v4205_v41 = vld [vmem:[#allocation10 + $0x1b4] ss:$8 sps:$4 sm:$0xff]  }
 0x2c3   :  { %v2523_v14 = vpack.c.bf16 %v2511_v50, %v2507_v49  ;;  %v4203_v24 = vld [vmem:[#allocation10 + $0x1b0] ss:$8 sps:$4 sm:$0xff]   ;;  %v4214_v50 = vld [vmem:[#allocation10 + $0x1e4] ss:$8 sps:$4 sm:$0xff]  }
 0x2c4   :  { %v2524_v52 = vpack.c.bf16 %v2512_v0, %v2508_v39  ;;  %v2286_v53 = vpop.f32.mrb[28].mxu0  ;;  %v4209_v49 = vld [vmem:[#allocation10 + $0x1d0] ss:$8 sps:$4 sm:$0xff]   ;;  %v4212_v39 = vld [vmem:[#allocation10 + $0x1e0] ss:$8 sps:$4 sm:$0xff]  }
 0x2c5   :  { %v3651_v8 = vadd.f32 %v2286_v53, %v2128_v10  ;;  %v2288_v57 = vpop.f32.mrb[29].mxu0  ;;  %v4217_v0 = vld [vmem:[#allocation10 + $0x1f4] ss:$8 sps:$4 sm:$0xff]   ;;  %v4215_v10 = vld [vmem:[#allocation10 + $0x1f0] ss:$8 sps:$4 sm:$0xff]  }
 0x2c6   :  { %v3653_v3 = vadd.f32 %v2288_v57, %v2130_v51  ;;  %v2290_v7 = vpop.f32.mrb[30].mxu0  ;;  %2959 = vmatprep.mubr.bf16.mxu0 %v2524_v52 }
 0x2c7   :  { %v3655_v63 = vadd.f32 %v2290_v7, %v2132_v34  ;;  %v2292_v9 = vpop.f32.mrb[31].mxu0  ;;  %2960 = vmatmul.mubr.bf16.vlgmr.msra.gmra.mrb[32].mxu0 %v2523_v14  ;;  %v2515_v15 = vmax.f32 %v3651_v8, 0.0  ;;  %v794_v14 = vrot.slane %v4691_v31, %v148_v4 }
 0x2c8   :  { %v3657_v11 = vadd.f32 %v2292_v9, %v2134_v61  ;;  %2981 = vmatpush1.bf16.msra.mxu0 %v4170_v54  ;;  %v2516_v18 = vmax.f32 %v3653_v3, 0.0 }
 0x2c9   :  { %v2519_v2 = vmax.f32 %v3655_v63, 0.0  ;;  %2982 = vmatprep.subr.bf16.mxu0 %v4175_v59 }
 0x2ca   :  { %v2520_v20 = vmax.f32 %v3657_v11, 0.0 }
 0x2cb   :  { %v2527_v5 = vpack.c.bf16 %v2519_v2, %v2515_v15 }
 0x2cc   :  { %v2528_v23 = vpack.c.bf16 %v2520_v20, %v2516_v18  ;;  %2983 = vmatpush1.bf16.msra.mxu0 %v4173_v12 }
 0x2cd   :  { %2984 = vmatprep.subr.bf16.mxu0 %v4178_v16 }
 0x2ce   :  { %2969 = vmatprep.mubr.bf16.mxu0 %v2528_v23  ;;  %v4230_v23 = vld [vmem:[#allocation11 + $0x70] sm:$0xff]  }
 0x2cf   :  { %2970 = vmatmul.mubr.bf16.gmra.mrb[36].mxu0 %v2527_v5  ;;  %3626 = vmatprep.subr.bf16.mxu1 %v4230_v23 }
 0x2d0   :  { %2985 = vmatpush1.bf16.msra.mxu0 %v4176_v25  ;;  %v4231_v25 = vld [vmem:[#allocation11 + $0x30] sm:$0xff]  }
 0x2d1   :  { %2986 = vmatprep.subr.bf16.mxu0 %v4181_v21  ;;  %3627 = vmatpush3.bf16.msra.mxu1 %v4231_v25  ;;  %v4233_v21 = vld [vmem:[#allocation11 + $0x38] sm:$0xff]  }
 0x2d2   :  { %3628 = vmatprep.subr.bf16.mxu1 %v4232_v60 }
 0x2d4   :  { %2987 = vmatpush1.bf16.msra.mxu0 %v4179_v27  ;;  %v2600_v27 = vrot.slane %v2595_v26, %v4573_v43 }
 0x2d5   :  { %2988 = vmatprep.subr.bf16.mxu0 %v4184_v29  ;;  %3629 = vmatpush3.bf16.msra.mxu1 %v4233_v21 }
 0x2d8   :  { %2989 = vmatpush1.bf16.msra.mxu0 %v4182_v30 }
 0x2d9   :  { %2990 = vmatprep.subr.bf16.mxu0 %v4187_v19 }
 0x2dc   :  { %2991 = vmatpush1.bf16.msra.mxu0 %v4185_v62 }
 0x2dd   :  { %2992 = vmatprep.subr.bf16.mxu0 %v4190_v32 }
 0x2e0   :  { %2993 = vmatpush1.bf16.msra.mxu0 %v4188_v33 }
 0x2e1   :  { %2994 = vmatprep.subr.bf16.mxu0 %v4193_v58 }
 0x2e4   :  { %2995 = vmatpush1.bf16.msra.mxu0 %v4191_v47 }
 0x2e5   :  { %2996 = vmatprep.subr.bf16.mxu0 %v4196_v35 }
 0x2e8   :  { %2997 = vmatpush1.bf16.msra.mxu0 %v4194_v40 }
 0x2e9   :  { %2998 = vmatprep.subr.bf16.mxu0 %v4199_v36 }
 0x2ec   :  { %2999 = vmatpush1.bf16.msra.mxu0 %v4197_v38 }
 0x2ed   :  { %3000 = vmatprep.subr.bf16.mxu0 %v4202_v17 }
 0x2f0   :  { %3001 = vmatpush1.bf16.msra.mxu0 %v4200_v55 }
 0x2f1   :  { %3002 = vmatprep.subr.bf16.mxu0 %v4205_v41 }
 0x2f4   :  { %3003 = vmatpush1.bf16.msra.mxu0 %v4203_v24 }
 0x2f5   :  { %3004 = vmatprep.subr.bf16.mxu0 %v4208_v37 }
 0x2f8   :  { %3005 = vmatpush1.bf16.msra.mxu0 %v4206_v46 }
 0x2f9   :  { %3006 = vmatprep.subr.bf16.mxu0 %v4211_v48 }
 0x2fc   :  { %3007 = vmatpush1.bf16.msra.mxu0 %v4209_v49 }
 0x2fd   :  { %3008 = vmatprep.subr.bf16.mxu0 %v4214_v50 }
 0x300   :  { %3009 = vmatpush1.bf16.msra.mxu0 %v4212_v39 }
 0x301   :  { %3010 = vmatprep.subr.bf16.mxu0 %v4217_v0 }
 0x304   :  { %3011 = vmatpush1.bf16.msra.mxu0 %v4215_v10 }
 0x32d   :  { %v2488_v51 = vpop.f32.mrb[16].mxu1 }
 0x32e   :  { %v3658_v52 = vadd.f32 %v2488_v51, %v794_v14  ;;  %v2490_v53 = vpop.f32.mrb[17].mxu1 }
 0x32f   :  { %v3659_v54 = vadd.f32 %v2490_v53, %v798_v44  ;;  %v2492_v56 = vpop.f32.mrb[18].mxu1 }
 0x330   :  { %v3660_v34 = vadd.f32 %v2492_v56, %v794_v14  ;;  %v2494_v8 = vpop.f32.mrb[19].mxu1  ;;  %v2509_v59 = vmax.f32 %v3658_v52, 0.0  ;;  %v3597_v52 = vld [vmem:[%s4742_s8] ss:$0 sm:$0xff]  ;;  %s4366_s8 = scalar_lea.vmem %s3239_s23, 512 }
 0x331   :  { %v3661_v57 = vadd.f32 %v2494_v8, %v798_v44  ;;  %v2510_v3 = vmax.f32 %v3659_v54, 0.0  ;;  %p4367_p6 = scmp.ne.s32.totalorder %s3239_s23, %s4366_s8  ;;  %p4372_p8 = scmp.lt.s32.totalorder %s4366_s8, %s4366_s8 }
 0x332   :  { %v2513_v61 = vmax.f32 %v3660_v34, 0.0 }
 0x333   :  { %v2514_v7 = vmax.f32 %v3661_v57, 0.0  ;;  %p4373_p9 = por %p4372_p8, %p4371_p7 }
 0x334   :  { %v2525_v63 = vpack.c.bf16 %v2513_v61, %v2509_v59 }
 0x335   :  { %v2526_v9 = vpack.c.bf16 %v2514_v7, %v2510_v3  ;;  %v2498_v1 = vpop.f32.mrb[20].mxu1  ;;  %p4374_p10 = pnand %p4373_p9, %p4367_p6 }
 0x336   :  { %v3662_v4 = vadd.f32 %v2498_v1, %v794_v14  ;;  %v2500_v11 = vpop.f32.mrb[21].mxu1 }
 0x337   :  { %v3663_v42 = vadd.f32 %v2500_v11, %v798_v44  ;;  %v2502_v12 = vpop.f32.mrb[22].mxu1  ;;  %3012 = vmatprep.mubr.bf16.mxu0 %v2526_v9 }
 0x338   :  { %v3664_v6 = vadd.f32 %v2502_v12, %v794_v14  ;;  %v2504_v31 = vpop.f32.mrb[23].mxu1  ;;  %3013 = vmatmul.mubr.bf16.vlgmr.msra.gmra.mrb[32].mxu0 %v2525_v63  ;;  %v2517_v15 = vmax.f32 %v3662_v4, 0.0 }
 0x339   :  { %v3665_v13 = vadd.f32 %v2504_v31, %v798_v44  ;;  %v2518_v16 = vmax.f32 %v3663_v42, 0.0 }
 0x33a   :  { %v2521_v2 = vmax.f32 %v3664_v6, 0.0 }
 0x33b   :  { %v2522_v18 = vmax.f32 %v3665_v13, 0.0 }
 0x33c   :  { %v2529_v20 = vpack.c.bf16 %v2521_v2, %v2517_v15 }
 0x33d   :  { %v2530_v5 = vpack.c.bf16 %v2522_v18, %v2518_v16 }
 0x33f   :  { %3022 = vmatprep.mubr.bf16.mxu0 %v2530_v5 }
 0x340   :  { %3023 = vmatmul.mubr.bf16.gmra.mrb[36].mxu0 %v2529_v20 }
 0x40b   :  { %v3014_v29 = vpop.f32.mrb[32].mxu0 }
 0x40c   :  { %v3666_v30 = vadd.f32 %v3014_v29, %v2600_v27  ;;  %v3016_v19 = vpop.f32.mrb[33].mxu0 }
 0x40d   :  { %v3667_v62 = vadd.f32 %v3016_v19, %v2604_v28  ;;  %v3018_v32 = vpop.f32.mrb[34].mxu0 }
 0x40e   :  { %v3668_v33 = vadd.f32 %v3018_v32, %v2600_v27  ;;  %v3020_v58 = vpop.f32.mrb[35].mxu0  ;;  %v3033_v35 = vmax.f32 %v3666_v30, 0.0 }
 0x40f   :  { %v3669_v47 = vadd.f32 %v3020_v58, %v2604_v28  ;;  %v3034_v36 = vmax.f32 %v3667_v62, 0.0 }
 0x410   :  { %v3035_v40 = vmax.f32 %v3668_v33, 0.0 }
 0x411   :  { %v3036_v38 = vmax.f32 %v3669_v47, 0.0 }
 0x412   :  { %v3041_v17 = vpack.c.bf16 %v3035_v40, %v3033_v35 }
 0x413   :  { %v3042_v55 = vpack.c.bf16 %v3036_v38, %v3034_v36  ;;  %v3024_v41 = vpop.f32.mrb[36].mxu0 }
 0x414   :  { %v3670_v24 = vadd.f32 %v3024_v41, %v2600_v27  ;;  %v3026_v37 = vpop.f32.mrb[37].mxu0 }
 0x415   :  { %v3671_v43 = vadd.f32 %v3026_v37, %v2604_v28  ;;  %v3028_v46 = vpop.f32.mrb[38].mxu0  ;;  %3212 = vmatprep.mubr.bf16.mxu1 %v3042_v55 }
 0x416   :  { %v3672_v45 = vadd.f32 %v3028_v46, %v2600_v27  ;;  %v3030_v48 = vpop.f32.mrb[39].mxu0  ;;  %3213 = vmatmul.mubr.bf16.vlgmr.msra.gmra.mrb[24].mxu1 %v3041_v17  ;;  %v3037_v50 = vmax.f32 %v3670_v24, 0.0 }
 0x417   :  { %v3673_v49 = vadd.f32 %v3030_v48, %v2604_v28  ;;  %v3038_v0 = vmax.f32 %v3671_v43, 0.0 }
 0x418   :  { %v3039_v39 = vmax.f32 %v3672_v45, 0.0 }
 0x419   :  { %v3040_v10 = vmax.f32 %v3673_v49, 0.0 }
 0x41a   :  { %v3043_v14 = vpack.c.bf16 %v3039_v39, %v3037_v50 }
 0x41b   :  { %v3044_v44 = vpack.c.bf16 %v3040_v10, %v3038_v0 }
 0x41d   :  { %3220 = vmatprep.mubr.bf16.mxu1 %v3044_v44 }
 0x41e   :  { %3221 = vmatmul.mubr.bf16.gmra.mrb[28].mxu1 %v3043_v14 }
 0x4e9   :  { %v3630_v51 = vpop.f32.mrb[24].mxu1 }
 0x4ea   :  { %v3631_v53 = vpop.f32.mrb[25].mxu1 }
 0x4eb   :  { %v3632_v54 = vadd.f32 %v3631_v53, %v3630_v51  ;;  %v3633_v56 = vpop.f32.mrb[26].mxu1 }
 0x4ec   :  { %v3634_v34 = vpop.f32.mrb[27].mxu1 }
 0x4ed   :  { %v3215_v8 = vadd.f32 %v3632_v54, %v3597_v52  ;;  %v3635_v57 = vadd.f32 %v3634_v34, %v3633_v56 }
 0x4ef   :  { %3229 = vst [vmem:[#allocation13] sm:$0xff] %v3215_v8  ;;  %v3218_v59 = vadd.f32 %v3635_v57, %v3597_v52 }
 0x4f1   :  { %3230 = vst [vmem:[#allocation13 + $0x8] sm:$0xff] %v3218_v59  ;;  %v3636_v61 = vpop.f32.mrb[28].mxu1 }
 0x4f2   :  { %v3637_v3 = vpop.f32.mrb[29].mxu1 }
 0x4f3   :  { %v3638_v7 = vadd.f32 %v3637_v3, %v3636_v61  ;;  %v3639_v63 = vpop.f32.mrb[30].mxu1 }
 0x4f4   :  { %v3640_v9 = vpop.f32.mrb[31].mxu1 }
 0x4f5   :  { %v3223_v1 = vadd.f32 %v3638_v7, %v3597_v52  ;;  %v3641_v4 = vadd.f32 %v3640_v9, %v3639_v63 }
 0x4f7   :  { %3231 = vst [vmem:[#allocation13 + $0x10] sm:$0xff] %v3223_v1  ;;  %v3226_v11 = vadd.f32 %v3641_v4, %v3597_v52 }
 0x4f9   :  { %3232 = vst [vmem:[#allocation13 + $0x18] sm:$0xff] %v3226_v11 }
 0x4fa   :  { %4377 = shalt.err (!%p4374_p10)
}
 0x4fb   :  { %s4378_s27 = scalar_lea.hbm %s4743_s9, 512 }
 0x4fc   :  { %p4379_p11 = scmp.ne.s32.totalorder %s4743_s9, %s4378_s27  ;;  %p4382_p12 = scmp.lt.u32.totalorder %s4378_s27, %s4743_s9 }
 0x4fe   :  { %p4384_p13 = pnand %p4382_p12, %p4379_p11 }
 0x500   :  { %4387 = shalt.err (!%p4384_p13)
}
 0x501   :  { %3244 = dma.vmem_to_hbm [thread:$0]  %s3239_s23, 512, %s4743_s9, [#allocation4], %s4405_s3, %s4405_s3, %s4406_s24  }
 0x502   :  { %4396 = dma.done.wait [#allocation4], 512  }
 0x503   :  { %4397 = vsyncadd [#allocation4], 4294966784 }
 0x504   :  { %3248 = vsyncpa [#allocation3], 1 }
 0x505   :  { %3249 = vsyncpa [#allocation6], 1 }
 0x506   :  { %3250 = vsyncpa [#allocation9], 1 }
 0x507   :  { %3251 = vsyncpa [#allocation12], 1 }
 0x508   :  { %3252 = vsyncpa [#allocation4], 1 }

</bundles_post_ra>
